<compile_context>
chip_gen: v7x
topology: tpu7x:2x2x1
jax: 0.10.0
libtpu: 0.0.40
codegen_flags: <defaults>
</compile_context>

<pallas_src>
import functools

import jax
import jax.numpy as jnp
from jax.experimental import pallas as pl
from jax.experimental.pallas import tpu as pltpu


def _basic_block_kernel(*refs, has_proj, stride, Ho, Wo, Cin, Cout):
    """One batch image per grid step; everything VMEM resident.

    x_ref   : (s*s, Hp//s, Wp//s, Cin) bf16  parity-decomposed padded input
    w1_ref  : (3, 3, Cin, Cout)  bf16   conv1 weights (HWIO)
    w2_ref  : (3, 3, Cout, Cout) bf16   conv2 weights (HWIO)
    wsc_ref : (Cin, Cout)        bf16   1x1 projection weight (only if has_proj)
    s*_ref / b*_ref : (1, Cout)  f32    folded BatchNorm scale / bias
    out_ref : (Ho, Wo, Cout)     f32
    pad_ref : VMEM scratch (Ho+2, Wo+2, Cout) bf16 (conv2 zero padding)
    acc_ref : VMEM scratch (Ho*Wo, Cout) f32 (matmul accumulator)
    """
    if has_proj:
        (x_ref, w1_ref, s1_ref, b1_ref, w2_ref, s2_ref, b2_ref,
         wsc_ref, ssc_ref, bsc_ref, out_ref, pad_ref, acc_ref) = refs
    else:
        (x_ref, w1_ref, s1_ref, b1_ref, w2_ref, s2_ref, b2_ref,
         out_ref, pad_ref, acc_ref) = refs

    f32 = jnp.float32
    bf16 = jnp.bfloat16
    s = stride
    M = Ho * Wo

    w1 = w1_ref[...]                      # (3,3,Cin,Cout) bf16, stays resident
    w2 = w2_ref[...]                      # (3,3,Cout,Cout) bf16

    def tap(kh, kw):
        # padded-input pixel x_pad[s*h + kh, s*w + kw] == parity group (kh%s, kw%s)
        # at offset (kh//s, kw//s): plain contiguous slice, no strided load.
        g = (kh % s) * s + (kw % s)
        h0, w0 = kh // s, kw // s
        p = x_ref[g:g + 1, h0:h0 + Ho, w0:w0 + Wo, :]
        return p.reshape(M, Cin)

    # ---- conv1 (3x3, stride=s, pad=1): 9 shifted-tap MXU matmuls, f32 accum ----
    for k in range(9):
        kh, kw = divmod(k, 3)
        prod = jnp.dot(tap(kh, kw), w1[kh, kw], preferred_element_type=f32)
        if k == 0:
            acc_ref[...] = prod
        else:
            acc_ref[...] += prod

    # bn1 (folded) + relu, cast to bf16 for the conv2 matmuls.
    y1 = jnp.maximum(acc_ref[...] * s1_ref[...] + b1_ref[...], 0.0)
    y1 = y1.astype(bf16).reshape(Ho, Wo, Cout)

    # ---- conv2 zero padding: zero ONLY the 1-pixel halo, write y1 interior ----
    pad_ref[0:1, :, :] = jnp.zeros((1, Wo + 2, Cout), bf16)
    pad_ref[Ho + 1:Ho + 2, :, :] = jnp.zeros((1, Wo + 2, Cout), bf16)
    pad_ref[1:Ho + 1, 0:1, :] = jnp.zeros((Ho, 1, Cout), bf16)
    pad_ref[1:Ho + 1, Wo + 1:Wo + 2, :] = jnp.zeros((Ho, 1, Cout), bf16)
    pad_ref[1:Ho + 1, 1:Wo + 1, :] = y1

    # ---- conv2 (3x3, stride=1, pad=1): 9 shifted-tap matmuls, f32 accum ----
    for k in range(9):
        kh, kw = divmod(k, 3)
        patch = pad_ref[kh:kh + Ho, kw:kw + Wo, :].reshape(M, Cout)
        prod = jnp.dot(patch, w2[kh, kw], preferred_element_type=f32)
        if k == 0:
            acc_ref[...] = prod
        else:
            acc_ref[...] += prod

    # ---- shortcut: reuse the centre tap of the resident input (no extra DMA) ----
    xsc = tap(1, 1)                       # == x[s*h, s*w] for both stride 1 and 2
    if has_proj:
        sc = jnp.dot(xsc, wsc_ref[...], preferred_element_type=f32)
        sc = sc * ssc_ref[...] + bsc_ref[...]
    else:
        sc = xsc.astype(f32)              # identity (Cin == Cout, stride == 1)

    out = jnp.maximum(acc_ref[...] * s2_ref[...] + b2_ref[...] + sc, 0.0)
    out_ref[...] = out.reshape(Ho, Wo, Cout)


def _fold_bn(p, eps=1e-5):
    scale = p["gamma"] / jnp.sqrt(p["var"] + eps)
    bias = p["beta"] - p["mean"] * scale
    return (scale.reshape(1, -1).astype(jnp.float32),
            bias.reshape(1, -1).astype(jnp.float32))


def basic_block_forward(x_nchw, params, stride):
    """PyTorch-semantics BasicBlock forward. Input/output are NCHW float32."""
    N, Cin, H, W = x_nchw.shape
    Cout = params["w1"].shape[0]
    s = stride
    Ho = (H + 2 - 3) // s + 1
    Wo = (W + 2 - 3) // s + 1
    has_proj = (s != 1) or (Cin != Cout)

    x = jnp.transpose(x_nchw, (0, 2, 3, 1))                       # NHWC f32
    # pad=1 on each side, rounded up to a multiple of the stride so the parity
    # ("space-to-batch") decomposition below is exact; extra rows/cols are zeros
    # that the 3x3 taps never reach.
    Hp = -((H + 2) // -s) * s
    Wp = -((W + 2) // -s) * s
    xp = jnp.pad(x, ((0, 0), (1, Hp - H - 1), (1, Wp - W - 1), (0, 0)))
    Hs, Ws = Hp // s, Wp // s
    # xs[n, a*s+b, i, j, c] == xp[n, s*i + a, s*j + b, c]   (total bytes = 1x input)
    xs = xp.reshape(N, Hs, s, Ws, s, Cin)
    xs = jnp.transpose(xs, (0, 2, 4, 1, 3, 5)).reshape(N, s * s, Hs, Ws, Cin)
    xs = xs.astype(jnp.bfloat16)

    # Weights to kernel layout (OIHW -> HWIO), bf16 for the MXU.
    w1 = jnp.transpose(params["w1"], (2, 3, 1, 0)).astype(jnp.bfloat16)   # (3,3,Cin,Cout)
    w2 = jnp.transpose(params["w2"], (2, 3, 1, 0)).astype(jnp.bfloat16)   # (3,3,Cout,Cout)
    s1, b1 = _fold_bn(params["bn1"])
    s2, b2 = _fold_bn(params["bn2"])

    inputs = [xs, w1, s1, b1, w2, s2, b2]
    const4 = lambda n: (0, 0, 0, 0)
    const2 = lambda n: (0, 0)
    in_specs = [
        pl.BlockSpec((None, s * s, Hs, Ws, Cin), lambda n: (n, 0, 0, 0, 0)),
        pl.BlockSpec((3, 3, Cin, Cout), const4),
        pl.BlockSpec((1, Cout), const2),
        pl.BlockSpec((1, Cout), const2),
        pl.BlockSpec((3, 3, Cout, Cout), const4),
        pl.BlockSpec((1, Cout), const2),
        pl.BlockSpec((1, Cout), const2),
    ]
    if has_proj:
        wsc = jnp.transpose(params["wsc"][:, :, 0, 0], (1, 0)).astype(jnp.bfloat16)
        ssc, bsc = _fold_bn(params["bnsc"])
        inputs += [wsc, ssc, bsc]
        in_specs += [
            pl.BlockSpec((Cin, Cout), const2),
            pl.BlockSpec((1, Cout), const2),
            pl.BlockSpec((1, Cout), const2),
        ]

    kernel = functools.partial(_basic_block_kernel, has_proj=has_proj,
                               stride=s, Ho=Ho, Wo=Wo, Cin=Cin, Cout=Cout)
    out_nhwc = pl.pallas_call(
        kernel,
        grid=(N,),
        out_shape=jax.ShapeDtypeStruct((N, Ho, Wo, Cout), jnp.float32),
        in_specs=in_specs,
        out_specs=pl.BlockSpec((None, Ho, Wo, Cout), lambda n: (n, 0, 0, 0)),
        scratch_shapes=[
            pltpu.VMEM((Ho + 2, Wo + 2, Cout), jnp.bfloat16),   # conv2 zero-pad buffer
            pltpu.VMEM((Ho * Wo, Cout), jnp.float32),           # f32 matmul accumulator
        ],
        compiler_params=pltpu.CompilerParams(
            dimension_semantics=("parallel",),
            vmem_limit_bytes=32 * 1024 * 1024,
        ),
    )(*inputs)
    return jnp.transpose(out_nhwc, (0, 3, 1, 2))                  # back to NCHW


# ------------------------- reference / parameter setup ------------------------

def init_params(key, in_planes, planes, stride):
    ks = jax.random.split(key, 6)

    def bn_params(k):
        k1, k2, k3, k4 = jax.random.split(k, 4)
        return {"gamma": 0.5 + jax.random.uniform(k1, (planes,), jnp.float32),
                "beta": 0.1 * jax.random.normal(k2, (planes,), jnp.float32),
                "mean": 0.1 * jax.random.normal(k3, (planes,), jnp.float32),
                "var": 0.5 + jax.random.uniform(k4, (planes,), jnp.float32)}

    params = {"w1": 0.1 * jax.random.normal(ks[0], (planes, in_planes, 3, 3), jnp.float32),
              "bn1": bn_params(ks[1]),
              "w2": 0.1 * jax.random.normal(ks[2], (planes, planes, 3, 3), jnp.float32),
              "bn2": bn_params(ks[3])}
    if stride != 1 or in_planes != planes:
        params["wsc"] = 0.1 * jax.random.normal(ks[4], (planes, in_planes, 1, 1), jnp.float32)
        params["bnsc"] = bn_params(ks[5])
    return params


def reference_forward(x, params, stride, eps=1e-5):
    def conv(v, w, s, pad):
        return jax.lax.conv_general_dilated(
            v, w, (s, s), [(pad, pad), (pad, pad)],
            dimension_numbers=("NCHW", "OIHW", "NCHW"),
            precision=jax.lax.Precision.HIGHEST)

    def bn(v, p):
        scale = p["gamma"] / jnp.sqrt(p["var"] + eps)
        bias = p["beta"] - p["mean"] * scale
        return v * scale[None, :, None, None] + bias[None, :, None, None]

    out = jax.nn.relu(bn(conv(x, params["w1"], stride, 1), params["bn1"]))
    out = bn(conv(out, params["w2"], 1, 1), params["bn2"])
    in_planes, planes = params["w1"].shape[1], params["w1"].shape[0]
    if stride != 1 or in_planes != planes:
        sc = bn(conv(x, params["wsc"], stride, 0), params["bnsc"])
    else:
        sc = x
    return jax.nn.relu(out + sc)


def _check(out, ref):
    # Kernel uses bf16 MXU operands (per perf review) -> bf16-class accuracy
    # against the f32 HIGHEST-precision reference.  Structural bugs give O(1)
    # errors, far above this bound.
    err = float(jnp.max(jnp.abs(out - ref)))
    bound = 2e-2 * float(jnp.max(jnp.abs(ref))) + 1e-2
    assert err <= bound, (err, bound)


if __name__ == "__main__":
    key = jax.random.PRNGKey(0)
    k_x1, k_p1, k_x2, k_p2 = jax.random.split(key, 4)

    # Case 1: projection shortcut (stride=2, channel change), x: [2, 4, 16, 16]
    x1 = jax.random.normal(k_x1, (2, 4, 16, 16), jnp.float32)
    p1 = init_params(k_p1, in_planes=4, planes=8, stride=2)
    out1 = jax.block_until_ready(basic_block_forward(x1, p1, stride=2))
    ref1 = reference_forward(x1, p1, stride=2)
    assert out1.shape == ref1.shape == (2, 8, 8, 8)
    _check(out1, ref1)

    # Case 2: identity shortcut (stride=1, same channels), x: [2, 8, 16, 16]
    x2 = jax.random.normal(k_x2, (2, 8, 16, 16), jnp.float32)
    p2 = init_params(k_p2, in_planes=8, planes=8, stride=1)
    out2 = jax.block_until_ready(basic_block_forward(x2, p2, stride=1))
    ref2 = reference_forward(x2, p2, stride=1)
    assert out2.shape == ref2.shape == (2, 8, 16, 16)
    _check(out2, ref2)

    print("KERNEL_OK")
</pallas_src>

<mosaic_0001>
module attributes {stable_mosaic.version = 11 : i64} {
  func.func @_basic_block_kernel(%arg0: i32, %arg1: memref<1x4x9x9x4xbf16, #tpu.memory_space<vmem>>, %arg2: memref<3x3x4x8xbf16, #tpu.memory_space<vmem>>, %arg3: memref<1x8xf32, #tpu.memory_space<vmem>>, %arg4: memref<1x8xf32, #tpu.memory_space<vmem>>, %arg5: memref<3x3x8x8xbf16, #tpu.memory_space<vmem>>, %arg6: memref<1x8xf32, #tpu.memory_space<vmem>>, %arg7: memref<1x8xf32, #tpu.memory_space<vmem>>, %arg8: memref<4x8xbf16, #tpu.memory_space<vmem>>, %arg9: memref<1x8xf32, #tpu.memory_space<vmem>>, %arg10: memref<1x8xf32, #tpu.memory_space<vmem>>, %arg11: memref<1x8x8x8xf32, #tpu.memory_space<vmem>>, %arg12: memref<10x10x8xbf16, #tpu.memory_space<vmem>>, %arg13: memref<64x8xf32, #tpu.memory_space<vmem>>) attributes {dimension_semantics = [#tpu.dimension_semantics<parallel>], iteration_bounds = array<i64: 2>, scalar_prefetch = 0 : i64, scratch_operands = 2 : i64, tpu.core_type = #tpu.core_type<tc>, window_params = [{transform_indices = @transform_0, window_bounds = array<i64: 1, 4, 9, 9, 4>}, {pipeline_mode = #tpu.pipeline_mode<synchronous>, transform_indices = @transform_1, window_bounds = array<i64: 3, 3, 4, 8>}, {pipeline_mode = #tpu.pipeline_mode<synchronous>, transform_indices = @transform_2, window_bounds = array<i64: 1, 8>}, {pipeline_mode = #tpu.pipeline_mode<synchronous>, transform_indices = @transform_3, window_bounds = array<i64: 1, 8>}, {pipeline_mode = #tpu.pipeline_mode<synchronous>, transform_indices = @transform_4, window_bounds = array<i64: 3, 3, 8, 8>}, {pipeline_mode = #tpu.pipeline_mode<synchronous>, transform_indices = @transform_5, window_bounds = array<i64: 1, 8>}, {pipeline_mode = #tpu.pipeline_mode<synchronous>, transform_indices = @transform_6, window_bounds = array<i64: 1, 8>}, {pipeline_mode = #tpu.pipeline_mode<synchronous>, transform_indices = @transform_7, window_bounds = array<i64: 4, 8>}, {pipeline_mode = #tpu.pipeline_mode<synchronous>, transform_indices = @transform_8, window_bounds = array<i64: 1, 8>}, {pipeline_mode = #tpu.pipeline_mode<synchronous>, transform_indices = @transform_9, window_bounds = array<i64: 1, 8>}, {transform_indices = @transform_10, window_bounds = array<i64: 1, 8, 8, 8>}]} {
    %c0 = arith.constant 0 : index
    %c0_0 = arith.constant 0 : index
    %c0_1 = arith.constant 0 : index
    %c0_2 = arith.constant 0 : index
    %0 = vector.load %arg2[%c0, %c0_0, %c0_1, %c0_2] : memref<3x3x4x8xbf16, #tpu.memory_space<vmem>>, vector<3x3x4x8xbf16>
    %c0_3 = arith.constant 0 : index
    %c0_4 = arith.constant 0 : index
    %c0_5 = arith.constant 0 : index
    %c0_6 = arith.constant 0 : index
    %1 = vector.load %arg5[%c0_3, %c0_4, %c0_5, %c0_6] : memref<3x3x8x8xbf16, #tpu.memory_space<vmem>>, vector<3x3x8x8xbf16>
    %c0_7 = arith.constant 0 : index
    %c0_8 = arith.constant 0 : index
    %c0_9 = arith.constant 0 : index
    %c0_10 = arith.constant 0 : index
    %c0_11 = arith.constant 0 : index
    %2 = vector.load %arg1[%c0_7, %c0_8, %c0_9, %c0_10, %c0_11] : memref<1x4x9x9x4xbf16, #tpu.memory_space<vmem>>, vector<1x1x8x8x4xbf16>
    %3 = vector.shape_cast %2 : vector<1x1x8x8x4xbf16> to vector<1x8x8x4xbf16>
    %4 = vector.shape_cast %3 : vector<1x8x8x4xbf16> to vector<64x4xbf16>
    %5 = vector.extract_strided_slice %0 {offsets = [0, 0, 0, 0], sizes = [1, 1, 4, 8], strides = [1, 1, 1, 1]} : vector<3x3x4x8xbf16> to vector<1x1x4x8xbf16>
    %6 = vector.shape_cast %5 : vector<1x1x4x8xbf16> to vector<4x8xbf16>
    %cst = arith.constant dense<0.000000e+00> : vector<64x8xf32>
    %7 = tpu.matmul %4, %6, %cst {dimension_numbers = #tpu.dot_dimension_numbers<[1], [0], [0], [1], [0, 0, 1, 1], [], []>} : vector<64x4xbf16>, vector<4x8xbf16>, vector<64x8xf32> -> vector<64x8xf32>
    %c0_12 = arith.constant 0 : index
    %c0_13 = arith.constant 0 : index
    %8 = vector.load %arg13[%c0_12, %c0_13] : memref<64x8xf32, #tpu.memory_space<vmem>>, vector<64x8xf32>
    tpu.vector_store %arg13[%c0_12, %c0_13], %7 {strides = array<i32>} : memref<64x8xf32, #tpu.memory_space<vmem>>, vector<64x8xf32>,
    %c0_14 = arith.constant 0 : index
    %c1 = arith.constant 1 : index
    %c0_15 = arith.constant 0 : index
    %c0_16 = arith.constant 0 : index
    %c0_17 = arith.constant 0 : index
    %9 = vector.load %arg1[%c0_14, %c1, %c0_15, %c0_16, %c0_17] : memref<1x4x9x9x4xbf16, #tpu.memory_space<vmem>>, vector<1x1x8x8x4xbf16>
    %10 = vector.shape_cast %9 : vector<1x1x8x8x4xbf16> to vector<1x8x8x4xbf16>
    %11 = vector.shape_cast %10 : vector<1x8x8x4xbf16> to vector<64x4xbf16>
    %12 = vector.extract_strided_slice %0 {offsets = [0, 1, 0, 0], sizes = [1, 1, 4, 8], strides = [1, 1, 1, 1]} : vector<3x3x4x8xbf16> to vector<1x1x4x8xbf16>
    %13 = vector.shape_cast %12 : vector<1x1x4x8xbf16> to vector<4x8xbf16>
    %cst_18 = arith.constant dense<0.000000e+00> : vector<64x8xf32>
    %14 = tpu.matmul %11, %13, %cst_18 {dimension_numbers = #tpu.dot_dimension_numbers<[1], [0], [0], [1], [0, 0, 1, 1], [], []>} : vector<64x4xbf16>, vector<4x8xbf16>, vector<64x8xf32> -> vector<64x8xf32>
    %c0_19 = arith.constant 0 : index
    %c0_20 = arith.constant 0 : index
    %15 = vector.load %arg13[%c0_19, %c0_20] : memref<64x8xf32, #tpu.memory_space<vmem>>, vector<64x8xf32>
    %16 = arith.addf %15, %14 : vector<64x8xf32>
    %c0_21 = arith.constant 0 : index
    %c0_22 = arith.constant 0 : index
    %17 = vector.load %arg13[%c0_21, %c0_22] : memref<64x8xf32, #tpu.memory_space<vmem>>, vector<64x8xf32>
    tpu.vector_store %arg13[%c0_21, %c0_22], %16 {strides = array<i32>} : memref<64x8xf32, #tpu.memory_space<vmem>>, vector<64x8xf32>,
    %c0_23 = arith.constant 0 : index
    %c0_24 = arith.constant 0 : index
    %c0_25 = arith.constant 0 : index
    %c1_26 = arith.constant 1 : index
    %c0_27 = arith.constant 0 : index
    %18 = vector.load %arg1[%c0_23, %c0_24, %c0_25, %c1_26, %c0_27] : memref<1x4x9x9x4xbf16, #tpu.memory_space<vmem>>, vector<1x1x8x8x4xbf16>
    %19 = vector.shape_cast %18 : vector<1x1x8x8x4xbf16> to vector<1x8x8x4xbf16>
    %20 = vector.shape_cast %19 : vector<1x8x8x4xbf16> to vector<64x4xbf16>
    %21 = vector.extract_strided_slice %0 {offsets = [0, 2, 0, 0], sizes = [1, 1, 4, 8], strides = [1, 1, 1, 1]} : vector<3x3x4x8xbf16> to vector<1x1x4x8xbf16>
    %22 = vector.shape_cast %21 : vector<1x1x4x8xbf16> to vector<4x8xbf16>
    %cst_28 = arith.constant dense<0.000000e+00> : vector<64x8xf32>
    %23 = tpu.matmul %20, %22, %cst_28 {dimension_numbers = #tpu.dot_dimension_numbers<[1], [0], [0], [1], [0, 0, 1, 1], [], []>} : vector<64x4xbf16>, vector<4x8xbf16>, vector<64x8xf32> -> vector<64x8xf32>
    %c0_29 = arith.constant 0 : index
    %c0_30 = arith.constant 0 : index
    %24 = vector.load %arg13[%c0_29, %c0_30] : memref<64x8xf32, #tpu.memory_space<vmem>>, vector<64x8xf32>
    %25 = arith.addf %24, %23 : vector<64x8xf32>
    %c0_31 = arith.constant 0 : index
    %c0_32 = arith.constant 0 : index
    %26 = vector.load %arg13[%c0_31, %c0_32] : memref<64x8xf32, #tpu.memory_space<vmem>>, vector<64x8xf32>
    tpu.vector_store %arg13[%c0_31, %c0_32], %25 {strides = array<i32>} : memref<64x8xf32, #tpu.memory_space<vmem>>, vector<64x8xf32>,
    %c0_33 = arith.constant 0 : index
    %c2 = arith.constant 2 : index
    %c0_34 = arith.constant 0 : index
    %c0_35 = arith.constant 0 : index
    %c0_36 = arith.constant 0 : index
    %27 = vector.load %arg1[%c0_33, %c2, %c0_34, %c0_35, %c0_36] : memref<1x4x9x9x4xbf16, #tpu.memory_space<vmem>>, vector<1x1x8x8x4xbf16>
    %28 = vector.shape_cast %27 : vector<1x1x8x8x4xbf16> to vector<1x8x8x4xbf16>
    %29 = vector.shape_cast %28 : vector<1x8x8x4xbf16> to vector<64x4xbf16>
    %30 = vector.extract_strided_slice %0 {offsets = [1, 0, 0, 0], sizes = [1, 1, 4, 8], strides = [1, 1, 1, 1]} : vector<3x3x4x8xbf16> to vector<1x1x4x8xbf16>
    %31 = vector.shape_cast %30 : vector<1x1x4x8xbf16> to vector<4x8xbf16>
    %cst_37 = arith.constant dense<0.000000e+00> : vector<64x8xf32>
    %32 = tpu.matmul %29, %31, %cst_37 {dimension_numbers = #tpu.dot_dimension_numbers<[1], [0], [0], [1], [0, 0, 1, 1], [], []>} : vector<64x4xbf16>, vector<4x8xbf16>, vector<64x8xf32> -> vector<64x8xf32>
    %c0_38 = arith.constant 0 : index
    %c0_39 = arith.constant 0 : index
    %33 = vector.load %arg13[%c0_38, %c0_39] : memref<64x8xf32, #tpu.memory_space<vmem>>, vector<64x8xf32>
    %34 = arith.addf %33, %32 : vector<64x8xf32>
    %c0_40 = arith.constant 0 : index
    %c0_41 = arith.constant 0 : index
    %35 = vector.load %arg13[%c0_40, %c0_41] : memref<64x8xf32, #tpu.memory_space<vmem>>, vector<64x8xf32>
    tpu.vector_store %arg13[%c0_40, %c0_41], %34 {strides = array<i32>} : memref<64x8xf32, #tpu.memory_space<vmem>>, vector<64x8xf32>,
    %c0_42 = arith.constant 0 : index
    %c3 = arith.constant 3 : index
    %c0_43 = arith.constant 0 : index
    %c0_44 = arith.constant 0 : index
    %c0_45 = arith.constant 0 : index
    %36 = vector.load %arg1[%c0_42, %c3, %c0_43, %c0_44, %c0_45] : memref<1x4x9x9x4xbf16, #tpu.memory_space<vmem>>, vector<1x1x8x8x4xbf16>
    %37 = vector.shape_cast %36 : vector<1x1x8x8x4xbf16> to vector<1x8x8x4xbf16>
    %38 = vector.shape_cast %37 : vector<1x8x8x4xbf16> to vector<64x4xbf16>
    %39 = vector.extract_strided_slice %0 {offsets = [1, 1, 0, 0], sizes = [1, 1, 4, 8], strides = [1, 1, 1, 1]} : vector<3x3x4x8xbf16> to vector<1x1x4x8xbf16>
    %40 = vector.shape_cast %39 : vector<1x1x4x8xbf16> to vector<4x8xbf16>
    %cst_46 = arith.constant dense<0.000000e+00> : vector<64x8xf32>
    %41 = tpu.matmul %38, %40, %cst_46 {dimension_numbers = #tpu.dot_dimension_numbers<[1], [0], [0], [1], [0, 0, 1, 1], [], []>} : vector<64x4xbf16>, vector<4x8xbf16>, vector<64x8xf32> -> vector<64x8xf32>
    %c0_47 = arith.constant 0 : index
    %c0_48 = arith.constant 0 : index
    %42 = vector.load %arg13[%c0_47, %c0_48] : memref<64x8xf32, #tpu.memory_space<vmem>>, vector<64x8xf32>
    %43 = arith.addf %42, %41 : vector<64x8xf32>
    %c0_49 = arith.constant 0 : index
    %c0_50 = arith.constant 0 : index
    %44 = vector.load %arg13[%c0_49, %c0_50] : memref<64x8xf32, #tpu.memory_space<vmem>>, vector<64x8xf32>
    tpu.vector_store %arg13[%c0_49, %c0_50], %43 {strides = array<i32>} : memref<64x8xf32, #tpu.memory_space<vmem>>, vector<64x8xf32>,
    %c0_51 = arith.constant 0 : index
    %c2_52 = arith.constant 2 : index
    %c0_53 = arith.constant 0 : index
    %c1_54 = arith.constant 1 : index
    %c0_55 = arith.constant 0 : index
    %45 = vector.load %arg1[%c0_51, %c2_52, %c0_53, %c1_54, %c0_55] : memref<1x4x9x9x4xbf16, #tpu.memory_space<vmem>>, vector<1x1x8x8x4xbf16>
    %46 = vector.shape_cast %45 : vector<1x1x8x8x4xbf16> to vector<1x8x8x4xbf16>
    %47 = vector.shape_cast %46 : vector<1x8x8x4xbf16> to vector<64x4xbf16>
    %48 = vector.extract_strided_slice %0 {offsets = [1, 2, 0, 0], sizes = [1, 1, 4, 8], strides = [1, 1, 1, 1]} : vector<3x3x4x8xbf16> to vector<1x1x4x8xbf16>
    %49 = vector.shape_cast %48 : vector<1x1x4x8xbf16> to vector<4x8xbf16>
    %cst_56 = arith.constant dense<0.000000e+00> : vector<64x8xf32>
    %50 = tpu.matmul %47, %49, %cst_56 {dimension_numbers = #tpu.dot_dimension_numbers<[1], [0], [0], [1], [0, 0, 1, 1], [], []>} : vector<64x4xbf16>, vector<4x8xbf16>, vector<64x8xf32> -> vector<64x8xf32>
    %c0_57 = arith.constant 0 : index
    %c0_58 = arith.constant 0 : index
    %51 = vector.load %arg13[%c0_57, %c0_58] : memref<64x8xf32, #tpu.memory_space<vmem>>, vector<64x8xf32>
    %52 = arith.addf %51, %50 : vector<64x8xf32>
    %c0_59 = arith.constant 0 : index
    %c0_60 = arith.constant 0 : index
    %53 = vector.load %arg13[%c0_59, %c0_60] : memref<64x8xf32, #tpu.memory_space<vmem>>, vector<64x8xf32>
    tpu.vector_store %arg13[%c0_59, %c0_60], %52 {strides = array<i32>} : memref<64x8xf32, #tpu.memory_space<vmem>>, vector<64x8xf32>,
    %c0_61 = arith.constant 0 : index
    %c0_62 = arith.constant 0 : index
    %c1_63 = arith.constant 1 : index
    %c0_64 = arith.constant 0 : index
    %c0_65 = arith.constant 0 : index
    %54 = vector.load %arg1[%c0_61, %c0_62, %c1_63, %c0_64, %c0_65] : memref<1x4x9x9x4xbf16, #tpu.memory_space<vmem>>, vector<1x1x8x8x4xbf16>
    %55 = vector.shape_cast %54 : vector<1x1x8x8x4xbf16> to vector<1x8x8x4xbf16>
    %56 = vector.shape_cast %55 : vector<1x8x8x4xbf16> to vector<64x4xbf16>
    %57 = vector.extract_strided_slice %0 {offsets = [2, 0, 0, 0], sizes = [1, 1, 4, 8], strides = [1, 1, 1, 1]} : vector<3x3x4x8xbf16> to vector<1x1x4x8xbf16>
    %58 = vector.shape_cast %57 : vector<1x1x4x8xbf16> to vector<4x8xbf16>
    %cst_66 = arith.constant dense<0.000000e+00> : vector<64x8xf32>
    %59 = tpu.matmul %56, %58, %cst_66 {dimension_numbers = #tpu.dot_dimension_numbers<[1], [0], [0], [1], [0, 0, 1, 1], [], []>} : vector<64x4xbf16>, vector<4x8xbf16>, vector<64x8xf32> -> vector<64x8xf32>
    %c0_67 = arith.constant 0 : index
    %c0_68 = arith.constant 0 : index
    %60 = vector.load %arg13[%c0_67, %c0_68] : memref<64x8xf32, #tpu.memory_space<vmem>>, vector<64x8xf32>
    %61 = arith.addf %60, %59 : vector<64x8xf32>
    %c0_69 = arith.constant 0 : index
    %c0_70 = arith.constant 0 : index
    %62 = vector.load %arg13[%c0_69, %c0_70] : memref<64x8xf32, #tpu.memory_space<vmem>>, vector<64x8xf32>
    tpu.vector_store %arg13[%c0_69, %c0_70], %61 {strides = array<i32>} : memref<64x8xf32, #tpu.memory_space<vmem>>, vector<64x8xf32>,
    %c0_71 = arith.constant 0 : index
    %c1_72 = arith.constant 1 : index
    %c1_73 = arith.constant 1 : index
    %c0_74 = arith.constant 0 : index
    %c0_75 = arith.constant 0 : index
    %63 = vector.load %arg1[%c0_71, %c1_72, %c1_73, %c0_74, %c0_75] : memref<1x4x9x9x4xbf16, #tpu.memory_space<vmem>>, vector<1x1x8x8x4xbf16>
    %64 = vector.shape_cast %63 : vector<1x1x8x8x4xbf16> to vector<1x8x8x4xbf16>
    %65 = vector.shape_cast %64 : vector<1x8x8x4xbf16> to vector<64x4xbf16>
    %66 = vector.extract_strided_slice %0 {offsets = [2, 1, 0, 0], sizes = [1, 1, 4, 8], strides = [1, 1, 1, 1]} : vector<3x3x4x8xbf16> to vector<1x1x4x8xbf16>
    %67 = vector.shape_cast %66 : vector<1x1x4x8xbf16> to vector<4x8xbf16>
    %cst_76 = arith.constant dense<0.000000e+00> : vector<64x8xf32>
    %68 = tpu.matmul %65, %67, %cst_76 {dimension_numbers = #tpu.dot_dimension_numbers<[1], [0], [0], [1], [0, 0, 1, 1], [], []>} : vector<64x4xbf16>, vector<4x8xbf16>, vector<64x8xf32> -> vector<64x8xf32>
    %c0_77 = arith.constant 0 : index
    %c0_78 = arith.constant 0 : index
    %69 = vector.load %arg13[%c0_77, %c0_78] : memref<64x8xf32, #tpu.memory_space<vmem>>, vector<64x8xf32>
    %70 = arith.addf %69, %68 : vector<64x8xf32>
    %c0_79 = arith.constant 0 : index
    %c0_80 = arith.constant 0 : index
    %71 = vector.load %arg13[%c0_79, %c0_80] : memref<64x8xf32, #tpu.memory_space<vmem>>, vector<64x8xf32>
    tpu.vector_store %arg13[%c0_79, %c0_80], %70 {strides = array<i32>} : memref<64x8xf32, #tpu.memory_space<vmem>>, vector<64x8xf32>,
    %c0_81 = arith.constant 0 : index
    %c0_82 = arith.constant 0 : index
    %c1_83 = arith.constant 1 : index
    %c1_84 = arith.constant 1 : index
    %c0_85 = arith.constant 0 : index
    %72 = vector.load %arg1[%c0_81, %c0_82, %c1_83, %c1_84, %c0_85] : memref<1x4x9x9x4xbf16, #tpu.memory_space<vmem>>, vector<1x1x8x8x4xbf16>
    %73 = vector.shape_cast %72 : vector<1x1x8x8x4xbf16> to vector<1x8x8x4xbf16>
    %74 = vector.shape_cast %73 : vector<1x8x8x4xbf16> to vector<64x4xbf16>
    %75 = vector.extract_strided_slice %0 {offsets = [2, 2, 0, 0], sizes = [1, 1, 4, 8], strides = [1, 1, 1, 1]} : vector<3x3x4x8xbf16> to vector<1x1x4x8xbf16>
    %76 = vector.shape_cast %75 : vector<1x1x4x8xbf16> to vector<4x8xbf16>
    %cst_86 = arith.constant dense<0.000000e+00> : vector<64x8xf32>
    %77 = tpu.matmul %74, %76, %cst_86 {dimension_numbers = #tpu.dot_dimension_numbers<[1], [0], [0], [1], [0, 0, 1, 1], [], []>} : vector<64x4xbf16>, vector<4x8xbf16>, vector<64x8xf32> -> vector<64x8xf32>
    %c0_87 = arith.constant 0 : index
    %c0_88 = arith.constant 0 : index
    %78 = vector.load %arg13[%c0_87, %c0_88] : memref<64x8xf32, #tpu.memory_space<vmem>>, vector<64x8xf32>
    %79 = arith.addf %78, %77 : vector<64x8xf32>
    %c0_89 = arith.constant 0 : index
    %c0_90 = arith.constant 0 : index
    %80 = vector.load %arg13[%c0_89, %c0_90] : memref<64x8xf32, #tpu.memory_space<vmem>>, vector<64x8xf32>
    tpu.vector_store %arg13[%c0_89, %c0_90], %79 {strides = array<i32>} : memref<64x8xf32, #tpu.memory_space<vmem>>, vector<64x8xf32>,
    %c0_91 = arith.constant 0 : index
    %c0_92 = arith.constant 0 : index
    %81 = vector.load %arg13[%c0_91, %c0_92] : memref<64x8xf32, #tpu.memory_space<vmem>>, vector<64x8xf32>
    %c0_93 = arith.constant 0 : index
    %c0_94 = arith.constant 0 : index
    %82 = vector.load %arg3[%c0_93, %c0_94] : memref<1x8xf32, #tpu.memory_space<vmem>>, vector<1x8xf32>
    %83 = vector.broadcast %82 : vector<1x8xf32> to vector<64x8xf32>
    %84 = arith.mulf %81, %83 : vector<64x8xf32>
    %c0_95 = arith.constant 0 : index
    %c0_96 = arith.constant 0 : index
    %85 = vector.load %arg4[%c0_95, %c0_96] : memref<1x8xf32, #tpu.memory_space<vmem>>, vector<1x8xf32>
    %86 = vector.broadcast %85 : vector<1x8xf32> to vector<64x8xf32>
    %87 = arith.addf %84, %86 : vector<64x8xf32>
    %cst_97 = arith.constant 0.000000e+00 : f32
    %88 = vector.broadcast %cst_97 : f32 to vector<64x8xf32>
    %89 = arith.maximumf %87, %88 : vector<64x8xf32>
    %90 = arith.truncf %89 : vector<64x8xf32> to vector<64x8xbf16>
    %91 = vector.shape_cast %90 : vector<64x8xbf16> to vector<8x8x8xbf16>
    %cst_98 = arith.constant 0.000000e+00 : bf16
    %92 = vector.broadcast %cst_98 : bf16 to vector<1x10x8xbf16>
    %c0_99 = arith.constant 0 : index
    %c0_100 = arith.constant 0 : index
    %c0_101 = arith.constant 0 : index
    %93 = vector.load %arg12[%c0_99, %c0_100, %c0_101] : memref<10x10x8xbf16, #tpu.memory_space<vmem>>, vector<1x10x8xbf16>
    tpu.vector_store %arg12[%c0_99, %c0_100, %c0_101], %92 {strides = array<i32>} : memref<10x10x8xbf16, #tpu.memory_space<vmem>>, vector<1x10x8xbf16>,
    %cst_102 = arith.constant 0.000000e+00 : bf16
    %94 = vector.broadcast %cst_102 : bf16 to vector<1x10x8xbf16>
    %c9 = arith.constant 9 : index
    %c0_103 = arith.constant 0 : index
    %c0_104 = arith.constant 0 : index
    %95 = vector.load %arg12[%c9, %c0_103, %c0_104] : memref<10x10x8xbf16, #tpu.memory_space<vmem>>, vector<1x10x8xbf16>
    tpu.vector_store %arg12[%c9, %c0_103, %c0_104], %94 {strides = array<i32>} : memref<10x10x8xbf16, #tpu.memory_space<vmem>>, vector<1x10x8xbf16>,
    %cst_105 = arith.constant 0.000000e+00 : bf16
    %96 = vector.broadcast %cst_105 : bf16 to vector<8x1x8xbf16>
    %c1_106 = arith.constant 1 : index
    %c0_107 = arith.constant 0 : index
    %c0_108 = arith.constant 0 : index
    %97 = vector.load %arg12[%c1_106, %c0_107, %c0_108] : memref<10x10x8xbf16, #tpu.memory_space<vmem>>, vector<8x1x8xbf16>
    tpu.vector_store %arg12[%c1_106, %c0_107, %c0_108], %96 {strides = array<i32>} : memref<10x10x8xbf16, #tpu.memory_space<vmem>>, vector<8x1x8xbf16>,
    %cst_109 = arith.constant 0.000000e+00 : bf16
    %98 = vector.broadcast %cst_109 : bf16 to vector<8x1x8xbf16>
    %c1_110 = arith.constant 1 : index
    %c9_111 = arith.constant 9 : index
    %c0_112 = arith.constant 0 : index
    %99 = vector.load %arg12[%c1_110, %c9_111, %c0_112] : memref<10x10x8xbf16, #tpu.memory_space<vmem>>, vector<8x1x8xbf16>
    tpu.vector_store %arg12[%c1_110, %c9_111, %c0_112], %98 {strides = array<i32>} : memref<10x10x8xbf16, #tpu.memory_space<vmem>>, vector<8x1x8xbf16>,
    %c1_113 = arith.constant 1 : index
    %c1_114 = arith.constant 1 : index
    %c0_115 = arith.constant 0 : index
    %100 = vector.load %arg12[%c1_113, %c1_114, %c0_115] : memref<10x10x8xbf16, #tpu.memory_space<vmem>>, vector<8x8x8xbf16>
    tpu.vector_store %arg12[%c1_113, %c1_114, %c0_115], %91 {strides = array<i32>} : memref<10x10x8xbf16, #tpu.memory_space<vmem>>, vector<8x8x8xbf16>,
    %c0_116 = arith.constant 0 : index
    %c0_117 = arith.constant 0 : index
    %c0_118 = arith.constant 0 : index
    %101 = vector.load %arg12[%c0_116, %c0_117, %c0_118] : memref<10x10x8xbf16, #tpu.memory_space<vmem>>, vector<8x8x8xbf16>
    %102 = vector.shape_cast %101 : vector<8x8x8xbf16> to vector<64x8xbf16>
    %103 = vector.extract_strided_slice %1 {offsets = [0, 0, 0, 0], sizes = [1, 1, 8, 8], strides = [1, 1, 1, 1]} : vector<3x3x8x8xbf16> to vector<1x1x8x8xbf16>
    %104 = vector.shape_cast %103 : vector<1x1x8x8xbf16> to vector<8x8xbf16>
    %cst_119 = arith.constant dense<0.000000e+00> : vector<64x8xf32>
    %105 = tpu.matmul %102, %104, %cst_119 {dimension_numbers = #tpu.dot_dimension_numbers<[1], [0], [0], [1], [0, 0, 1, 1], [], []>} : vector<64x8xbf16>, vector<8x8xbf16>, vector<64x8xf32> -> vector<64x8xf32>
    %c0_120 = arith.constant 0 : index
    %c0_121 = arith.constant 0 : index
    %106 = vector.load %arg13[%c0_120, %c0_121] : memref<64x8xf32, #tpu.memory_space<vmem>>, vector<64x8xf32>
    tpu.vector_store %arg13[%c0_120, %c0_121], %105 {strides = array<i32>} : memref<64x8xf32, #tpu.memory_space<vmem>>, vector<64x8xf32>,
    %c0_122 = arith.constant 0 : index
    %c1_123 = arith.constant 1 : index
    %c0_124 = arith.constant 0 : index
    %107 = vector.load %arg12[%c0_122, %c1_123, %c0_124] : memref<10x10x8xbf16, #tpu.memory_space<vmem>>, vector<8x8x8xbf16>
    %108 = vector.shape_cast %107 : vector<8x8x8xbf16> to vector<64x8xbf16>
    %109 = vector.extract_strided_slice %1 {offsets = [0, 1, 0, 0], sizes = [1, 1, 8, 8], strides = [1, 1, 1, 1]} : vector<3x3x8x8xbf16> to vector<1x1x8x8xbf16>
    %110 = vector.shape_cast %109 : vector<1x1x8x8xbf16> to vector<8x8xbf16>
    %cst_125 = arith.constant dense<0.000000e+00> : vector<64x8xf32>
    %111 = tpu.matmul %108, %110, %cst_125 {dimension_numbers = #tpu.dot_dimension_numbers<[1], [0], [0], [1], [0, 0, 1, 1], [], []>} : vector<64x8xbf16>, vector<8x8xbf16>, vector<64x8xf32> -> vector<64x8xf32>
    %c0_126 = arith.constant 0 : index
    %c0_127 = arith.constant 0 : index
    %112 = vector.load %arg13[%c0_126, %c0_127] : memref<64x8xf32, #tpu.memory_space<vmem>>, vector<64x8xf32>
    %113 = arith.addf %112, %111 : vector<64x8xf32>
    %c0_128 = arith.constant 0 : index
    %c0_129 = arith.constant 0 : index
    %114 = vector.load %arg13[%c0_128, %c0_129] : memref<64x8xf32, #tpu.memory_space<vmem>>, vector<64x8xf32>
    tpu.vector_store %arg13[%c0_128, %c0_129], %113 {strides = array<i32>} : memref<64x8xf32, #tpu.memory_space<vmem>>, vector<64x8xf32>,
    %c0_130 = arith.constant 0 : index
    %c2_131 = arith.constant 2 : index
    %c0_132 = arith.constant 0 : index
    %115 = vector.load %arg12[%c0_130, %c2_131, %c0_132] : memref<10x10x8xbf16, #tpu.memory_space<vmem>>, vector<8x8x8xbf16>
    %116 = vector.shape_cast %115 : vector<8x8x8xbf16> to vector<64x8xbf16>
    %117 = vector.extract_strided_slice %1 {offsets = [0, 2, 0, 0], sizes = [1, 1, 8, 8], strides = [1, 1, 1, 1]} : vector<3x3x8x8xbf16> to vector<1x1x8x8xbf16>
    %118 = vector.shape_cast %117 : vector<1x1x8x8xbf16> to vector<8x8xbf16>
    %cst_133 = arith.constant dense<0.000000e+00> : vector<64x8xf32>
    %119 = tpu.matmul %116, %118, %cst_133 {dimension_numbers = #tpu.dot_dimension_numbers<[1], [0], [0], [1], [0, 0, 1, 1], [], []>} : vector<64x8xbf16>, vector<8x8xbf16>, vector<64x8xf32> -> vector<64x8xf32>
    %c0_134 = arith.constant 0 : index
    %c0_135 = arith.constant 0 : index
    %120 = vector.load %arg13[%c0_134, %c0_135] : memref<64x8xf32, #tpu.memory_space<vmem>>, vector<64x8xf32>
    %121 = arith.addf %120, %119 : vector<64x8xf32>
    %c0_136 = arith.constant 0 : index
    %c0_137 = arith.constant 0 : index
    %122 = vector.load %arg13[%c0_136, %c0_137] : memref<64x8xf32, #tpu.memory_space<vmem>>, vector<64x8xf32>
    tpu.vector_store %arg13[%c0_136, %c0_137], %121 {strides = array<i32>} : memref<64x8xf32, #tpu.memory_space<vmem>>, vector<64x8xf32>,
    %c1_138 = arith.constant 1 : index
    %c0_139 = arith.constant 0 : index
    %c0_140 = arith.constant 0 : index
    %123 = vector.load %arg12[%c1_138, %c0_139, %c0_140] : memref<10x10x8xbf16, #tpu.memory_space<vmem>>, vector<8x8x8xbf16>
    %124 = vector.shape_cast %123 : vector<8x8x8xbf16> to vector<64x8xbf16>
    %125 = vector.extract_strided_slice %1 {offsets = [1, 0, 0, 0], sizes = [1, 1, 8, 8], strides = [1, 1, 1, 1]} : vector<3x3x8x8xbf16> to vector<1x1x8x8xbf16>
    %126 = vector.shape_cast %125 : vector<1x1x8x8xbf16> to vector<8x8xbf16>
    %cst_141 = arith.constant dense<0.000000e+00> : vector<64x8xf32>
    %127 = tpu.matmul %124, %126, %cst_141 {dimension_numbers = #tpu.dot_dimension_numbers<[1], [0], [0], [1], [0, 0, 1, 1], [], []>} : vector<64x8xbf16>, vector<8x8xbf16>, vector<64x8xf32> -> vector<64x8xf32>
    %c0_142 = arith.constant 0 : index
    %c0_143 = arith.constant 0 : index
    %128 = vector.load %arg13[%c0_142, %c0_143] : memref<64x8xf32, #tpu.memory_space<vmem>>, vector<64x8xf32>
    %129 = arith.addf %128, %127 : vector<64x8xf32>
    %c0_144 = arith.constant 0 : index
    %c0_145 = arith.constant 0 : index
    %130 = vector.load %arg13[%c0_144, %c0_145] : memref<64x8xf32, #tpu.memory_space<vmem>>, vector<64x8xf32>
    tpu.vector_store %arg13[%c0_144, %c0_145], %129 {strides = array<i32>} : memref<64x8xf32, #tpu.memory_space<vmem>>, vector<64x8xf32>,
    %c1_146 = arith.constant 1 : index
    %c1_147 = arith.constant 1 : index
    %c0_148 = arith.constant 0 : index
    %131 = vector.load %arg12[%c1_146, %c1_147, %c0_148] : memref<10x10x8xbf16, #tpu.memory_space<vmem>>, vector<8x8x8xbf16>
    %132 = vector.shape_cast %131 : vector<8x8x8xbf16> to vector<64x8xbf16>
    %133 = vector.extract_strided_slice %1 {offsets = [1, 1, 0, 0], sizes = [1, 1, 8, 8], strides = [1, 1, 1, 1]} : vector<3x3x8x8xbf16> to vector<1x1x8x8xbf16>
    %134 = vector.shape_cast %133 : vector<1x1x8x8xbf16> to vector<8x8xbf16>
    %cst_149 = arith.constant dense<0.000000e+00> : vector<64x8xf32>
    %135 = tpu.matmul %132, %134, %cst_149 {dimension_numbers = #tpu.dot_dimension_numbers<[1], [0], [0], [1], [0, 0, 1, 1], [], []>} : vector<64x8xbf16>, vector<8x8xbf16>, vector<64x8xf32> -> vector<64x8xf32>
    %c0_150 = arith.constant 0 : index
    %c0_151 = arith.constant 0 : index
    %136 = vector.load %arg13[%c0_150, %c0_151] : memref<64x8xf32, #tpu.memory_space<vmem>>, vector<64x8xf32>
    %137 = arith.addf %136, %135 : vector<64x8xf32>
    %c0_152 = arith.constant 0 : index
    %c0_153 = arith.constant 0 : index
    %138 = vector.load %arg13[%c0_152, %c0_153] : memref<64x8xf32, #tpu.memory_space<vmem>>, vector<64x8xf32>
    tpu.vector_store %arg13[%c0_152, %c0_153], %137 {strides = array<i32>} : memref<64x8xf32, #tpu.memory_space<vmem>>, vector<64x8xf32>,
    %c1_154 = arith.constant 1 : index
    %c2_155 = arith.constant 2 : index
    %c0_156 = arith.constant 0 : index
    %139 = vector.load %arg12[%c1_154, %c2_155, %c0_156] : memref<10x10x8xbf16, #tpu.memory_space<vmem>>, vector<8x8x8xbf16>
    %140 = vector.shape_cast %139 : vector<8x8x8xbf16> to vector<64x8xbf16>
    %141 = vector.extract_strided_slice %1 {offsets = [1, 2, 0, 0], sizes = [1, 1, 8, 8], strides = [1, 1, 1, 1]} : vector<3x3x8x8xbf16> to vector<1x1x8x8xbf16>
    %142 = vector.shape_cast %141 : vector<1x1x8x8xbf16> to vector<8x8xbf16>
    %cst_157 = arith.constant dense<0.000000e+00> : vector<64x8xf32>
    %143 = tpu.matmul %140, %142, %cst_157 {dimension_numbers = #tpu.dot_dimension_numbers<[1], [0], [0], [1], [0, 0, 1, 1], [], []>} : vector<64x8xbf16>, vector<8x8xbf16>, vector<64x8xf32> -> vector<64x8xf32>
    %c0_158 = arith.constant 0 : index
    %c0_159 = arith.constant 0 : index
    %144 = vector.load %arg13[%c0_158, %c0_159] : memref<64x8xf32, #tpu.memory_space<vmem>>, vector<64x8xf32>
    %145 = arith.addf %144, %143 : vector<64x8xf32>
    %c0_160 = arith.constant 0 : index
    %c0_161 = arith.constant 0 : index
    %146 = vector.load %arg13[%c0_160, %c0_161] : memref<64x8xf32, #tpu.memory_space<vmem>>, vector<64x8xf32>
    tpu.vector_store %arg13[%c0_160, %c0_161], %145 {strides = array<i32>} : memref<64x8xf32, #tpu.memory_space<vmem>>, vector<64x8xf32>,
    %c2_162 = arith.constant 2 : index
    %c0_163 = arith.constant 0 : index
    %c0_164 = arith.constant 0 : index
    %147 = vector.load %arg12[%c2_162, %c0_163, %c0_164] : memref<10x10x8xbf16, #tpu.memory_space<vmem>>, vector<8x8x8xbf16>
    %148 = vector.shape_cast %147 : vector<8x8x8xbf16> to vector<64x8xbf16>
    %149 = vector.extract_strided_slice %1 {offsets = [2, 0, 0, 0], sizes = [1, 1, 8, 8], strides = [1, 1, 1, 1]} : vector<3x3x8x8xbf16> to vector<1x1x8x8xbf16>
    %150 = vector.shape_cast %149 : vector<1x1x8x8xbf16> to vector<8x8xbf16>
    %cst_165 = arith.constant dense<0.000000e+00> : vector<64x8xf32>
    %151 = tpu.matmul %148, %150, %cst_165 {dimension_numbers = #tpu.dot_dimension_numbers<[1], [0], [0], [1], [0, 0, 1, 1], [], []>} : vector<64x8xbf16>, vector<8x8xbf16>, vector<64x8xf32> -> vector<64x8xf32>
    %c0_166 = arith.constant 0 : index
    %c0_167 = arith.constant 0 : index
    %152 = vector.load %arg13[%c0_166, %c0_167] : memref<64x8xf32, #tpu.memory_space<vmem>>, vector<64x8xf32>
    %153 = arith.addf %152, %151 : vector<64x8xf32>
    %c0_168 = arith.constant 0 : index
    %c0_169 = arith.constant 0 : index
    %154 = vector.load %arg13[%c0_168, %c0_169] : memref<64x8xf32, #tpu.memory_space<vmem>>, vector<64x8xf32>
    tpu.vector_store %arg13[%c0_168, %c0_169], %153 {strides = array<i32>} : memref<64x8xf32, #tpu.memory_space<vmem>>, vector<64x8xf32>,
    %c2_170 = arith.constant 2 : index
    %c1_171 = arith.constant 1 : index
    %c0_172 = arith.constant 0 : index
    %155 = vector.load %arg12[%c2_170, %c1_171, %c0_172] : memref<10x10x8xbf16, #tpu.memory_space<vmem>>, vector<8x8x8xbf16>
    %156 = vector.shape_cast %155 : vector<8x8x8xbf16> to vector<64x8xbf16>
    %157 = vector.extract_strided_slice %1 {offsets = [2, 1, 0, 0], sizes = [1, 1, 8, 8], strides = [1, 1, 1, 1]} : vector<3x3x8x8xbf16> to vector<1x1x8x8xbf16>
    %158 = vector.shape_cast %157 : vector<1x1x8x8xbf16> to vector<8x8xbf16>
    %cst_173 = arith.constant dense<0.000000e+00> : vector<64x8xf32>
    %159 = tpu.matmul %156, %158, %cst_173 {dimension_numbers = #tpu.dot_dimension_numbers<[1], [0], [0], [1], [0, 0, 1, 1], [], []>} : vector<64x8xbf16>, vector<8x8xbf16>, vector<64x8xf32> -> vector<64x8xf32>
    %c0_174 = arith.constant 0 : index
    %c0_175 = arith.constant 0 : index
    %160 = vector.load %arg13[%c0_174, %c0_175] : memref<64x8xf32, #tpu.memory_space<vmem>>, vector<64x8xf32>
    %161 = arith.addf %160, %159 : vector<64x8xf32>
    %c0_176 = arith.constant 0 : index
    %c0_177 = arith.constant 0 : index
    %162 = vector.load %arg13[%c0_176, %c0_177] : memref<64x8xf32, #tpu.memory_space<vmem>>, vector<64x8xf32>
    tpu.vector_store %arg13[%c0_176, %c0_177], %161 {strides = array<i32>} : memref<64x8xf32, #tpu.memory_space<vmem>>, vector<64x8xf32>,
    %c2_178 = arith.constant 2 : index
    %c2_179 = arith.constant 2 : index
    %c0_180 = arith.constant 0 : index
    %163 = vector.load %arg12[%c2_178, %c2_179, %c0_180] : memref<10x10x8xbf16, #tpu.memory_space<vmem>>, vector<8x8x8xbf16>
    %164 = vector.shape_cast %163 : vector<8x8x8xbf16> to vector<64x8xbf16>
    %165 = vector.extract_strided_slice %1 {offsets = [2, 2, 0, 0], sizes = [1, 1, 8, 8], strides = [1, 1, 1, 1]} : vector<3x3x8x8xbf16> to vector<1x1x8x8xbf16>
    %166 = vector.shape_cast %165 : vector<1x1x8x8xbf16> to vector<8x8xbf16>
    %cst_181 = arith.constant dense<0.000000e+00> : vector<64x8xf32>
    %167 = tpu.matmul %164, %166, %cst_181 {dimension_numbers = #tpu.dot_dimension_numbers<[1], [0], [0], [1], [0, 0, 1, 1], [], []>} : vector<64x8xbf16>, vector<8x8xbf16>, vector<64x8xf32> -> vector<64x8xf32>
    %c0_182 = arith.constant 0 : index
    %c0_183 = arith.constant 0 : index
    %168 = vector.load %arg13[%c0_182, %c0_183] : memref<64x8xf32, #tpu.memory_space<vmem>>, vector<64x8xf32>
    %169 = arith.addf %168, %167 : vector<64x8xf32>
    %c0_184 = arith.constant 0 : index
    %c0_185 = arith.constant 0 : index
    %170 = vector.load %arg13[%c0_184, %c0_185] : memref<64x8xf32, #tpu.memory_space<vmem>>, vector<64x8xf32>
    tpu.vector_store %arg13[%c0_184, %c0_185], %169 {strides = array<i32>} : memref<64x8xf32, #tpu.memory_space<vmem>>, vector<64x8xf32>,
    %c0_186 = arith.constant 0 : index
    %c3_187 = arith.constant 3 : index
    %c0_188 = arith.constant 0 : index
    %c0_189 = arith.constant 0 : index
    %c0_190 = arith.constant 0 : index
    %171 = vector.load %arg1[%c0_186, %c3_187, %c0_188, %c0_189, %c0_190] : memref<1x4x9x9x4xbf16, #tpu.memory_space<vmem>>, vector<1x1x8x8x4xbf16>
    %172 = vector.shape_cast %171 : vector<1x1x8x8x4xbf16> to vector<1x8x8x4xbf16>
    %173 = vector.shape_cast %172 : vector<1x8x8x4xbf16> to vector<64x4xbf16>
    %c0_191 = arith.constant 0 : index
    %c0_192 = arith.constant 0 : index
    %174 = vector.load %arg8[%c0_191, %c0_192] : memref<4x8xbf16, #tpu.memory_space<vmem>>, vector<4x8xbf16>
    %cst_193 = arith.constant dense<0.000000e+00> : vector<64x8xf32>
    %175 = tpu.matmul %173, %174, %cst_193 {dimension_numbers = #tpu.dot_dimension_numbers<[1], [0], [0], [1], [0, 0, 1, 1], [], []>} : vector<64x4xbf16>, vector<4x8xbf16>, vector<64x8xf32> -> vector<64x8xf32>
    %c0_194 = arith.constant 0 : index
    %c0_195 = arith.constant 0 : index
    %176 = vector.load %arg9[%c0_194, %c0_195] : memref<1x8xf32, #tpu.memory_space<vmem>>, vector<1x8xf32>
    %177 = vector.broadcast %176 : vector<1x8xf32> to vector<64x8xf32>
    %178 = arith.mulf %175, %177 : vector<64x8xf32>
    %c0_196 = arith.constant 0 : index
    %c0_197 = arith.constant 0 : index
    %179 = vector.load %arg10[%c0_196, %c0_197] : memref<1x8xf32, #tpu.memory_space<vmem>>, vector<1x8xf32>
    %180 = vector.broadcast %179 : vector<1x8xf32> to vector<64x8xf32>
    %181 = arith.addf %178, %180 : vector<64x8xf32>
    %c0_198 = arith.constant 0 : index
    %c0_199 = arith.constant 0 : index
    %182 = vector.load %arg13[%c0_198, %c0_199] : memref<64x8xf32, #tpu.memory_space<vmem>>, vector<64x8xf32>
    %c0_200 = arith.constant 0 : index
    %c0_201 = arith.constant 0 : index
    %183 = vector.load %arg6[%c0_200, %c0_201] : memref<1x8xf32, #tpu.memory_space<vmem>>, vector<1x8xf32>
    %184 = vector.broadcast %183 : vector<1x8xf32> to vector<64x8xf32>
    %185 = arith.mulf %182, %184 : vector<64x8xf32>
    %c0_202 = arith.constant 0 : index
    %c0_203 = arith.constant 0 : index
    %186 = vector.load %arg7[%c0_202, %c0_203] : memref<1x8xf32, #tpu.memory_space<vmem>>, vector<1x8xf32>
    %187 = vector.broadcast %186 : vector<1x8xf32> to vector<64x8xf32>
    %188 = arith.addf %185, %187 : vector<64x8xf32>
    %189 = arith.addf %188, %181 : vector<64x8xf32>
    %cst_204 = arith.constant 0.000000e+00 : f32
    %190 = vector.broadcast %cst_204 : f32 to vector<64x8xf32>
    %191 = arith.maximumf %189, %190 : vector<64x8xf32>
    %192 = vector.shape_cast %191 : vector<64x8xf32> to vector<8x8x8xf32>
    %c0_205 = arith.constant 0 : index
    %c0_206 = arith.constant 0 : index
    %c0_207 = arith.constant 0 : index
    %c0_208 = arith.constant 0 : index
    %193 = vector.load %arg11[%c0_205, %c0_206, %c0_207, %c0_208] : memref<1x8x8x8xf32, #tpu.memory_space<vmem>>, vector<1x8x8x8xf32>
    %194 = vector.shape_cast %193 : vector<1x8x8x8xf32> to vector<8x8x8xf32>
    %195 = vector.shape_cast %192 : vector<8x8x8xf32> to vector<1x8x8x8xf32>
    tpu.vector_store %arg11[%c0_205, %c0_206, %c0_207, %c0_208], %195 {strides = array<i32>} : memref<1x8x8x8xf32, #tpu.memory_space<vmem>>, vector<1x8x8x8xf32>,
    return
  }
  func.func @transform_0(%arg0: i32) -> (i32, i32, i32, i32, i32) {
    %c0_i32 = arith.constant 0 : i32
    %c0_i32_0 = arith.constant 0 : i32
    %c0_i32_1 = arith.constant 0 : i32
    %c0_i32_2 = arith.constant 0 : i32
    %c0_i32_3 = arith.constant 0 : i32
    return %arg0, %c0_i32, %c0_i32_0, %c0_i32_1, %c0_i32_2 : i32, i32, i32, i32, i32
  }
  func.func @transform_1(%arg0: i32) -> (i32, i32, i32, i32) {
    %c0_i32 = arith.constant 0 : i32
    %c0_i32_0 = arith.constant 0 : i32
    %c0_i32_1 = arith.constant 0 : i32
    %c0_i32_2 = arith.constant 0 : i32
    %c0_i32_3 = arith.constant 0 : i32
    return %c0_i32, %c0_i32_0, %c0_i32_1, %c0_i32_2 : i32, i32, i32, i32
  }
  func.func @transform_2(%arg0: i32) -> (i32, i32) {
    %c0_i32 = arith.constant 0 : i32
    %c0_i32_0 = arith.constant 0 : i32
    %c0_i32_1 = arith.constant 0 : i32
    return %c0_i32, %c0_i32_0 : i32, i32
  }
  func.func @transform_3(%arg0: i32) -> (i32, i32) {
    %c0_i32 = arith.constant 0 : i32
    %c0_i32_0 = arith.constant 0 : i32
    %c0_i32_1 = arith.constant 0 : i32
    return %c0_i32, %c0_i32_0 : i32, i32
  }
  func.func @transform_4(%arg0: i32) -> (i32, i32, i32, i32) {
    %c0_i32 = arith.constant 0 : i32
    %c0_i32_0 = arith.constant 0 : i32
    %c0_i32_1 = arith.constant 0 : i32
    %c0_i32_2 = arith.constant 0 : i32
    %c0_i32_3 = arith.constant 0 : i32
    return %c0_i32, %c0_i32_0, %c0_i32_1, %c0_i32_2 : i32, i32, i32, i32
  }
  func.func @transform_5(%arg0: i32) -> (i32, i32) {
    %c0_i32 = arith.constant 0 : i32
    %c0_i32_0 = arith.constant 0 : i32
    %c0_i32_1 = arith.constant 0 : i32
    return %c0_i32, %c0_i32_0 : i32, i32
  }
  func.func @transform_6(%arg0: i32) -> (i32, i32) {
    %c0_i32 = arith.constant 0 : i32
    %c0_i32_0 = arith.constant 0 : i32
    %c0_i32_1 = arith.constant 0 : i32
    return %c0_i32, %c0_i32_0 : i32, i32
  }
  func.func @transform_7(%arg0: i32) -> (i32, i32) {
    %c0_i32 = arith.constant 0 : i32
    %c0_i32_0 = arith.constant 0 : i32
    %c0_i32_1 = arith.constant 0 : i32
    return %c0_i32, %c0_i32_0 : i32, i32
  }
  func.func @transform_8(%arg0: i32) -> (i32, i32) {
    %c0_i32 = arith.constant 0 : i32
    %c0_i32_0 = arith.constant 0 : i32
    %c0_i32_1 = arith.constant 0 : i32
    return %c0_i32, %c0_i32_0 : i32, i32
  }
  func.func @transform_9(%arg0: i32) -> (i32, i32) {
    %c0_i32 = arith.constant 0 : i32
    %c0_i32_0 = arith.constant 0 : i32
    %c0_i32_1 = arith.constant 0 : i32
    return %c0_i32, %c0_i32_0 : i32, i32
  }
  func.func @transform_10(%arg0: i32) -> (i32, i32, i32, i32) {
    %c0_i32 = arith.constant 0 : i32
    %c0_i32_0 = arith.constant 0 : i32
    %c0_i32_1 = arith.constant 0 : i32
    %c0_i32_2 = arith.constant 0 : i32
    return %arg0, %c0_i32, %c0_i32_0, %c0_i32_1 : i32, i32, i32, i32
  }
}

</mosaic_0001>

<bundles_post_ra>
// kernel: tpu_custom_call.1
= control target key start
LH: loop header
LB: loop body
LE: loop exit
PB: predicated region body
PF: predicated region fallthrough
CT: control target
= control target key end

     0   :  { %15 = vsyncpa [#allocation5], 0  ;;  %s5832_s0 = inlined_call_operand.vmem [shape: bf16[2,4,9,9,4], index: 0, kind: input, shape index: {}]   ;;  %s5833_s1 = inlined_call_operand.vmem [shape: bf16[3,3,4,8], index: 1, kind: input, shape index: {}]   ;;  %s5834_s2 = inlined_call_operand.vmem [shape: f32[1,8], index: 2, kind: input, shape index: {}]   ;;  %s5835_s3 = inlined_call_operand.vmem [shape: f32[1,8], index: 3, kind: input, shape index: {}]   ;;  %s5836_s4 = inlined_call_operand.vmem [shape: bf16[3,3,8,8], index: 4, kind: input, shape index: {}]   ;;  %s5837_s5 = inlined_call_operand.vmem [shape: f32[1,8], index: 5, kind: input, shape index: {}]   ;;  %s5838_s6 = inlined_call_operand.vmem [shape: f32[1,8], index: 6, kind: input, shape index: {}]   ;;  %s5839_s7 = inlined_call_operand.vmem [shape: bf16[4,8], index: 7, kind: input, shape index: {}]   ;;  %s5840_s8 = inlined_call_operand.vmem [shape: f32[1,8], index: 8, kind: input, shape index: {}]   ;;  %s5841_s9 = inlined_call_operand.vmem [shape: f32[1,8], index: 9, kind: input, shape index: {}]   ;;  %s5842_s10 = inlined_call_operand.hbm [shape: f32[2,8,8,8], index: 10, kind: output, shape index: {}]  }
   0x1   :  { %17 = vsyncpa [#allocation5 + $0x1], 0  ;;  %s4894_s13 = smov 0   ;;  %s4896_s14 = smov 0  }
   0x2   :  { %s4898_s15 = smov 0   ;;  %s4900_s16 = smov 0  }
   0x3 LB: > { %s4915_s17 = sadd.s32 4294967295, %s4833_s16   ;;  %s4091_s18 = sadd.s32 4294967294, %s4833_s16   ;;  %s4833_s16 = sphi %s4900_s16, %s5858_s16   ;;  %s4829_s15 = sphi %s4898_s15, %s5857_s15   ;;  %s4825_s14 = sphi %s4896_s14, %s5856_s14   ;;  %s4821_s13 = sphi %s4894_s13, %s5855_s13  }
   0x4   : > { %s4919_s19 = sadd.s32 1, %s4833_s16   ;;  %s245_s20 = sadd.s32 1, %s4829_s15 }
   0x5   : > { %s242_s21 = ssub.s32 %s4833_s16, %s4919_s19  ;;  %p255_p0 = scmp.ne.s32.totalorder %s4829_s15, %s4825_s14 }
   0x6   : > { %p243_p1 = scmp.eq.s32.totalorder %s242_s21, 0  ;;  %p256_p2 = scmp.eq.s32.totalorder %s4915_s17, 1 }
   0x7   : > { %p261_p3 = scmp.ne.s32.totalorder %s4825_s14, %s4821_s13  ;;  %p262_p4 = scmp.eq.s32.totalorder %s4091_s18, 1 }
   0x8   : > { %s4930_s22 = scalar_select %p243_p1, %s4829_s15, %s245_s20  }
   0x9   : > { %p4932_p5 = por %p256_p2, %p255_p0  ;;  %p4936_p6 = por %p262_p4, %p261_p3 }
   0xa   : > { %p4094_p7 = scmp.ge.s32.totalorder %s4833_s16, 1  ;;  %p315_p8 = scmp.lt.s32.totalorder %s4833_s16, 3 }
   0xc   : > { %p316_p9 = pnand %p4094_p7, %p315_p8 }
   0xd   : > { %v359_v0 = vld [vmem:[%s5833_s1] sm:$0x3] (!%p316_p9)  ;;  %vm418_vm0 = vcmask (!%p316_p9), 1041408   ;;  %p353_p10 = scmp.lt.s32.totalorder (!%p316_p9), %s4915_s17, 1  ;;  %v360_v2 = vld [vmem:[%s5833_s1 + $0x2] sm:$0x3] (!%p316_p9) }
   0xe   : > { %319 = sbr.rel (%p316_p9) target bundleno = 704 (0x2c0), region = 60  ;;  %4669 = vmatprep.subr.msk.bf16.mxu1 (!%p316_p9), %vm418_vm0, %v359_v0  ;;  %4668 = vmatprep.subr.msk.bf16.mxu0 (!%p316_p9), %vm418_vm0, %v359_v0  ;;  %v420_v1 = vsel (!%p316_p9), %vm418_vm0, %v359_v0, 0  ;;  %v361_v3 = vld [vmem:[%s5833_s1 + $0x4] sm:$0x3] (!%p316_p9)  ;;  %v362_v4 = vld [vmem:[%s5833_s1 + $0x6] sm:$0x3] (!%p316_p9) }
   0xf   : > { %4667 = vmatpush3.bf16.msra.mxu1 (!%p316_p9), %v420_v1  ;;  %4477 = vmatpush3.bf16.msra.mxu0 (!%p316_p9), %v420_v1  ;;  %vm405_vm1 = vcmask (!%p316_p9), 31744   ;;  %v538_v5 = vsel (!%p316_p9), %vm418_vm0, %v360_v2, 0  ;;  %v785_v6 = vsel (!%p316_p9), %vm418_vm0, %v361_v3, 0  ;;  %v918_v7 = vsel (!%p316_p9), %vm418_vm0, %v362_v4, 0  ;;  %v363_v11 = vld [vmem:[%s5833_s1 + $0x8] sm:$0x3] (!%p316_p9) }
  0x10   : > { %4670 = vmatprep.subr.msk.bf16.mxu1 (!%p316_p9), %vm418_vm0, %v360_v2  ;;  %4671 = vmatprep.subr.msk.bf16.mxu0 (!%p316_p9), %vm418_vm0, %v361_v3  ;;  %vm645_vm2 = vsmask.f32 (!%p316_p9), 3328  ;;  %vm646_vm3 = vsmask.f32 (!%p316_p9), 7440  ;;  %v4995_v34 = vld [vmem:[%s5833_s1 + $0xa] sm:$0x3] (!%p316_p9) }
  0x11   : > { %vm5001_vm4 = vmor (!%p316_p9), %vm645_vm2, %vm646_vm3  ;;  %v1051_v52 = vsel (!%p316_p9), %vm418_vm0, %v363_v11, 0  ;;  %vm1968_vm5 = vcmask (!%p316_p9), 57344   ;;  %vm1975_vm6 = vsmask.f32 (!%p316_p9), 256  ;;  %vm2001_vm7 = vsmask.f32 (!%p316_p9), 7938 }
  0x12   : > { %vm5168_vm8 = vmand (!%p316_p9), %vm1968_vm5, %vm1975_vm6  ;;  %vm1966_vm10 = vcmask (!%p316_p9), 60416   ;;  %vm2197_vm12 = vcmask (!%p316_p9), 1043456   ;;  %vm487_vm13 = vcmask (!%p316_p9), 64512   ;;  %vm2550_vm14 = vcmask (!%p316_p9), 1042432   ;;  %s350_s25 = sand.u32 (!%p316_p9), 1, %s4825_s14   ;;  %s4836_s27 = smov (!%p316_p9), [#allocation4]  }
  0x13   : > { %vm5174_vm9 = vmand (!%p316_p9), %vm1968_vm5, %vm2001_vm7  ;;  %vm2551_vm15 = vcmask (!%p316_p9), 1046532   ;;  %s4095_s29 = sshll.u32 (!%p316_p9), %s350_s25, 6  ;;  %s4775_s28 = sshll.u32 (!%p316_p9), %s4836_s27, 4  ;;  %s4776_s28 = int_to_ptr.vmem [resolvable:$false] %s4775_s28 }
  0x14   : > { %vm5195_vm11 = vmand (!%p316_p9), %vm1966_vm10, %vm2001_vm7  ;;  %s5746_s30 = scalar_lea.vmem (!%p316_p9), [#allocation4], %s4095_s29  ;;  %s4777_s29 = scalar_lea.vmem (!%p316_p9), %s4776_s28, 2048 }
  0x15   : > { %s354_s11 = scalar_select %p353_p10, %s4915_s17, 1  ;;  %vm5427_vm2 = vmor %vm2550_vm14, %vm2551_vm15 }
  0x17   : > { %s4688_s20 = smul.u32 288, %s354_s11  ;;  %s4029_s11 = sshll.u32 %s5746_s30, 4  ;;  %s5781_s11 = int_to_ptr.vmem [resolvable:$true] %s4029_s11 }
  0x18   : > { %s4771_s21 = scalar_lea.vmem %s5781_s11, 1024  ;;  %p4778_p0 = scmp.lt.s32.totalorder %s5781_s11, %s4776_s28 }
  0x19   : > { %s4964_s26 = scalar_lea.vmem %s5832_s0, %s4688_s20  ;;  %p4772_p11 = scmp.ne.s32.totalorder %s5781_s11, %s4771_s21 }
  0x1a   : > { %v4731_v8 = vld [vmem:[%s4964_s26] ss:$8 sps:$4 sm:$0xff]   ;;  %v4733_v10 = vld [vmem:[%s4964_s26 + $0x10] ss:$8 sps:$4 sm:$0xff]   ;;  %v630_v15 = vld [vmem:[%s4964_s26 + $0x4] sm:$0x1]  ;;  %p4779_p1 = scmp.lt.s32.totalorder %s4777_s29, %s4771_s21 }
  0x1b   : > { %v4732_v9 = vld [vmem:[%s4964_s26 + $0x20] ss:$8 sps:$4 sm:$0xff]   ;;  %4478 = vmatprep.mubr.msk.bf16.mxu0 %vm405_vm1, %v4731_v8  ;;  %v4734_v12 = vld [vmem:[%s4964_s26 + $0x30] ss:$8 sps:$4 sm:$0xff]   ;;  %v632_v18 = vld [vmem:[%s4964_s26 + $0xc] sm:$0x1]  ;;  %p4773_p12 = pnand %p4772_p11, %p4932_p5 }
  0x1c   : > { %4482 = vmatprep.mubr.msk.bf16.mxu1 %vm405_vm1, %v4732_v9  ;;  %4479 = vmatmul.mubr.msk.bf16.vlgmr.msra.gmra.mrb[0].mxu0 %vm405_vm1, %v4733_v10  ;;  %v4735_v13 = vld [vmem:[%s4964_s26 + $0x48] ss:$8 sps:$4 sm:$0xff]   ;;  %v629_v14 = vld [vmem:[%s4964_s26] sm:$0xf]  ;;  %v658_v21 = vshll.u32 %v630_v15, 16  ;;  %v672_v24 = vshll.u32 %v632_v18, 16  ;;  %p4780_p2 = por %p4779_p1, %p4778_p0 }
  0x1d   : > { %4483 = vmatmul.mubr.msk.bf16.vlgmr.msra.gmra.mrb[0].mxu1 %vm405_vm1, %v4734_v12  ;;  %4497 = vmatpush3.bf16.msra.mxu0 %v785_v6  ;;  %v631_v16 = vld [vmem:[%s4964_s26 + $0x8] sm:$0xf]  ;;  %v4736_v17 = vld [vmem:[%s4964_s26 + $0x58] ss:$8 sps:$4 sm:$0xff]   ;;  %v649_v19 = vshrl.u32 %v629_v14, 16  ;;  %v652_v20 = vshll.u32 %v629_v14, 16  ;;  %p4774_p13 = pneg %p4773_p12 }
  0x1e   : > { %4487 = vmatpush3.bf16.msra.mxu1 %v538_v5  ;;  %4488 = vmatprep.mubr.msk.bf16.mxu1 %vm405_vm1, %v4735_v13  ;;  %v663_v22 = vshrl.u32 %v631_v16, 16  ;;  %v666_v23 = vshll.u32 %v631_v16, 16  ;;  %v660_v27 = vrot.slane %v658_v21, 5  ;;  %v4737_v29 = vld [vmem:[%s4964_s26 + $0x68] ss:$8 sps:$4 sm:$0xff]   ;;  %v674_v31 = vrot.slane %v672_v24, 5 }
  0x1f   : > { %4672 = vmatprep.subr.msk.bf16.mxu1 %vm418_vm0, %v362_v4  ;;  %4673 = vmatprep.subr.msk.bf16.mxu0 %vm418_vm0, %v363_v11  ;;  %v651_v25 = vrot.slane %v649_v19, 4  ;;  %v654_v26 = vrot.slane %v652_v20, 5  ;;  %v633_v32 = vld [vmem:[%s4964_s26 + $0x10] sm:$0xf]  ;;  %v634_v33 = vld [vmem:[%s4964_s26 + $0x14] sm:$0x1]  ;;  %p4781_p3 = pnand %p4780_p2, %p4774_p13 }
  0x20   : > { %v665_v28 = vrot.slane %v663_v22, 4  ;;  %v668_v30 = vrot.slane %v666_v23, 5  ;;  %v635_v36 = vld [vmem:[%s4964_s26 + $0x18] sm:$0xf]  ;;  %v636_v37 = vld [vmem:[%s4964_s26 + $0x1c] sm:$0x1] }
  0x21   : > { %v655_v35 = vor.u32 %v654_v26, %v651_v25  ;;  %v677_v38 = vshrl.u32 %v633_v32, 16  ;;  %v680_v39 = vshll.u32 %v633_v32, 16  ;;  %v686_v42 = vshll.u32 %v634_v33, 16  ;;  %v4738_v57 = vld [vmem:[%s4964_s26 + $0x78] ss:$8 sps:$4 sm:$0xff]  }
  0x22   : > { %v669_v41 = vor.u32 %v668_v30, %v665_v28  ;;  %v691_v43 = vshrl.u32 %v635_v36, 16  ;;  %v694_v44 = vshll.u32 %v635_v36, 16  ;;  %v700_v48 = vshll.u32 %v636_v37, 16  ;;  %v637_v58 = vld [vmem:[%s4964_s26 + $0x20] sm:$0xf] }
  0x23   : > { %v656_v45 = vrot.slane %v655_v35, 4  ;;  %v679_v46 = vrot.slane %v677_v38, 4  ;;  %v682_v47 = vrot.slane %v680_v39, 5  ;;  %v688_v55 = vrot.slane %v686_v42, 5  ;;  %v638_v59 = vld [vmem:[%s4964_s26 + $0x24] sm:$0x1] }
  0x24   : > { %v670_v49 = vrot.slane %v669_v41, 4  ;;  %v693_v50 = vrot.slane %v691_v43, 4  ;;  %v696_v51 = vrot.slane %v694_v44, 5  ;;  %v702_v56 = vrot.slane %v700_v48, 5  ;;  %v639_v62 = vld [vmem:[%s4964_s26 + $0x28] sm:$0xf] }
  0x25   : > { %4489 = vmatmul.mubr.msk.bf16.vlgmr.msra.gmra.mrb[4].mxu1 %vm405_vm1, %v4736_v17  ;;  %v661_v53 = vsel %vm5001_vm4, %v656_v45, %v660_v27  ;;  %v683_v54 = vor.u32 %v682_v47, %v679_v46  ;;  %v640_v63 = vld [vmem:[%s4964_s26 + $0x2c] sm:$0x1]  ;;  %v705_v0 = vshrl.u32 %v637_v58, 16  ;;  %v708_v1 = vshll.u32 %v637_v58, 16  ;;  %v641_v6 = vld [vmem:[%s4964_s26 + $0x30] sm:$0xf] }
  0x26   : > { %4507 = vmatpush3.bf16.msra.mxu1 %v918_v7  ;;  %4492 = vmatprep.mubr.msk.bf16.mxu1 %vm405_vm1, %v4737_v29  ;;  %v675_v60 = vsel %vm5001_vm4, %v670_v49, %v674_v31  ;;  %v697_v61 = vor.u32 %v696_v51, %v693_v50  ;;  %v714_v4 = vshll.u32 %v638_v59, 16  ;;  %v719_v5 = vshrl.u32 %v639_v62, 16  ;;  %v642_v11 = vld [vmem:[%s4964_s26 + $0x34] sm:$0x1]  ;;  %v643_v16 = vld [vmem:[%s4964_s26 + $0x38] sm:$0xf] }
  0x27   : > { %4674 = vmatprep.subr.msk.bf16.mxu1 %vm418_vm0, %v4995_v34  ;;  %v4121_v2 = vcombine.low %v661_v53, %v675_v60  ;;  %v684_v3 = vrot.slane %v683_v54, 4  ;;  %v707_v8 = vrot.slane %v705_v0, 4  ;;  %v710_v9 = vrot.slane %v708_v1, 5  ;;  %v644_v20 = vld [vmem:[%s4964_s26 + $0x3c] sm:$0x1] }
  0x28   : > { %v698_v7 = vrot.slane %v697_v61, 4  ;;  %v722_v10 = vshll.u32 %v639_v62, 16  ;;  %v716_v13 = vrot.slane %v714_v4, 5  ;;  %v721_v14 = vrot.slane %v719_v5, 4  ;;  %v365_v22 = vld [vmem:[%s5833_s1 + $0xc] sm:$0x3] }
  0x29   : > { %4498 = vmatprep.mubr.msk.bf16.mxu0 %vm405_vm1, %v4121_v2  ;;  %v689_v12 = vsel %vm5001_vm4, %v684_v3, %v688_v55  ;;  %v728_v15 = vshll.u32 %v640_v63, 16  ;;  %v711_v18 = vor.u32 %v710_v9, %v707_v8  ;;  %v733_v21 = vshrl.u32 %v641_v6, 16  ;;  %v4739_v31 = vld [vmem:[%s4964_s26 + $0x90] ss:$8 sps:$4 sm:$0xff]   ;;  %v4740_v41 = vld [vmem:[%s4964_s26 + $0xa0] ss:$8 sps:$4 sm:$0xff]  }
  0x2a   : > { %v703_v17 = vsel %vm5001_vm4, %v698_v7, %v702_v56  ;;  %v724_v19 = vrot.slane %v722_v10, 5  ;;  %v736_v25 = vshll.u32 %v641_v6, 16  ;;  %v742_v26 = vshll.u32 %v642_v11, 16  ;;  %v4741_v46 = vld [vmem:[%s4964_s26 + $0xb0] ss:$8 sps:$4 sm:$0xff]  }
  0x2b   : > { %v4122_v23 = vcombine.low %v689_v12, %v703_v17  ;;  %v730_v24 = vrot.slane %v728_v15, 5  ;;  %v712_v27 = vrot.slane %v711_v18, 4  ;;  %v735_v29 = vrot.slane %v733_v21, 4  ;;  %v366_v50 = vld [vmem:[%s5833_s1 + $0xe] sm:$0x3] }
  0x2c   : > { %v725_v28 = vor.u32 %v724_v19, %v721_v14  ;;  %v747_v30 = vshrl.u32 %v643_v16, 16  ;;  %v738_v32 = vrot.slane %v736_v25, 5  ;;  %v750_v33 = vshll.u32 %v643_v16, 16  ;;  %v4742_v56 = vld [vmem:[%s4964_s26 + $0xc0] ss:$8 sps:$4 sm:$0xff]  }
  0x2d   : > { %4493 = vmatmul.mubr.msk.bf16.gmra.mrb[8].mxu1 %vm405_vm1, %v4738_v57  ;;  %4499 = vmatmul.mubr.msk.bf16.vlgmr.msra.gmra.mrb[4].mxu0 %vm405_vm1, %v4122_v23  ;;  %v756_v35 = vshll.u32 %v644_v20, 16  ;;  %v1295_v36 = vsel %vm418_vm0, %v4995_v34, 0  ;;  %v717_v37 = vsel %vm5001_vm4, %v712_v27, %v716_v13  ;;  %v744_v43 = vrot.slane %v742_v26, 5  ;;  %v4743_v57 = vld [vmem:[%s4964_s26 + $0xd8] ss:$8 sps:$4 sm:$0xff]  }
  0x2e   : > { %v726_v38 = vrot.slane %v725_v28, 4  ;;  %4517 = vmatpush3.bf16.msra.mxu0 %v1051_v52  ;;  %v749_v39 = vrot.slane %v747_v30, 4  ;;  %4508 = vmatprep.mubr.msk.bf16.mxu1 %vm405_vm1, %v4739_v31  ;;  %v739_v42 = vor.u32 %v738_v32, %v735_v29  ;;  %v752_v44 = vrot.slane %v750_v33, 5  ;;  %v4161_v59 = vld [vmem:[%s4964_s26 + $0x90] sm:$0xf] }
  0x2f   : > { %4675 = vmatprep.subr.msk.bf16.mxu0 %vm418_vm0, %v365_v22  ;;  %v758_v49 = vrot.slane %v756_v35, 5  ;;  %v5053_v53 = vsel %vm418_vm0, %v365_v22, 0  ;;  %v5056_v54 = vsel %vm418_vm0, %v366_v50, 0  ;;  %v4162_v60 = vld [vmem:[%s4964_s26 + $0x94] sm:$0x1]  ;;  %v1159_v63 = vshrl.u32 %v4161_v59, 16 }
  0x30   : > { %v731_v45 = vsel %vm5001_vm4, %v726_v38, %v730_v24  ;;  %v740_v47 = vrot.slane %v739_v42, 4  ;;  %v753_v48 = vor.u32 %v752_v44, %v749_v39  ;;  %v4163_v61 = vld [vmem:[%s4964_s26 + $0x98] sm:$0xf]  ;;  %v4164_v62 = vld [vmem:[%s4964_s26 + $0x9c] sm:$0x1]  ;;  %v1162_v0 = vshll.u32 %v4161_v59, 16 }
  0x31   : > { %v4123_v34 = vcombine.low %v717_v37, %v731_v45  ;;  %v1168_v1 = vshll.u32 %v4162_v60, 16  ;;  %v1173_v2 = vshrl.u32 %v4163_v61, 16  ;;  %v1176_v3 = vshll.u32 %v4163_v61, 16  ;;  %v4165_v5 = vld [vmem:[%s4964_s26 + $0xa0] sm:$0xf] }
  0x32   : > { %v745_v51 = vsel %vm5001_vm4, %v740_v47, %v744_v43  ;;  %v754_v52 = vrot.slane %v753_v48, 4  ;;  %v1182_v4 = vshll.u32 %v4164_v62, 16  ;;  %v4166_v6 = vld [vmem:[%s4964_s26 + $0xa4] sm:$0x1]  ;;  %v1161_v7 = vrot.slane %v1159_v63, 4 }
  0x33   : > { %4502 = vmatprep.mubr.msk.bf16.mxu0 %vm405_vm1, %v4123_v34  ;;  %v1164_v8 = vrot.slane %v1162_v0, 5  ;;  %v1170_v9 = vrot.slane %v1168_v1, 5  ;;  %v1175_v10 = vrot.slane %v1173_v2, 4  ;;  %v4167_v11 = vld [vmem:[%s4964_s26 + $0xa8] sm:$0xf]  ;;  %v1178_v13 = vrot.slane %v1176_v3, 5 }
  0x34   : > { %v759_v55 = vsel %vm5001_vm4, %v754_v52, %v758_v49  ;;  %v4744_v12 = vld [vmem:[%s4964_s26 + $0xe8] ss:$8 sps:$4 sm:$0xff]   ;;  %v1184_v14 = vrot.slane %v1182_v4, 5  ;;  %v4168_v15 = vld [vmem:[%s4964_s26 + $0xac] sm:$0x1]  ;;  %v1187_v16 = vshrl.u32 %v4165_v5, 16 }
  0x35   : > { %4509 = vmatmul.mubr.msk.bf16.vlgmr.msra.gmra.mrb[12].mxu1 %vm405_vm1, %v4740_v41  ;;  %v4124_v58 = vcombine.low %v745_v51, %v759_v55  ;;  %v1190_v17 = vshll.u32 %v4165_v5, 16  ;;  %v4745_v18 = vld [vmem:[%s4964_s26 + $0xf8] ss:$8 sps:$4 sm:$0xff]   ;;  %v1165_v19 = vor.u32 %v1164_v8, %v1161_v7  ;;  %v1196_v20 = vshll.u32 %v4166_v6, 16  ;;  %v4169_v23 = vld [vmem:[%s4964_s26 + $0xb0] sm:$0xf] }
  0x36   : > { %4512 = vmatprep.mubr.msk.bf16.mxu1 %vm405_vm1, %v4741_v46  ;;  %4527 = vmatpush3.bf16.msra.mxu1 %v1295_v36  ;;  %v1201_v21 = vshrl.u32 %v4167_v11, 16  ;;  %v1204_v22 = vshll.u32 %v4167_v11, 16  ;;  %v1179_v24 = vor.u32 %v1178_v13, %v1175_v10  ;;  %v1189_v25 = vrot.slane %v1187_v16, 4  ;;  %v4170_v28 = vld [vmem:[%s4964_s26 + $0xb4] sm:$0x1] }
  0x37   : > { %4676 = vmatprep.subr.msk.bf16.mxu1 %vm418_vm0, %v366_v50  ;;  %4503 = vmatmul.mubr.msk.bf16.gmra.mrb[8].mxu0 %vm405_vm1, %v4124_v58  ;;  %v1192_v26 = vrot.slane %v1190_v17, 5  ;;  %v1210_v27 = vshll.u32 %v4168_v15, 16  ;;  %v1166_v29 = vrot.slane %v1165_v19, 4  ;;  %v1198_v30 = vrot.slane %v1196_v20, 5  ;;  %v4171_v33 = vld [vmem:[%s4964_s26 + $0xb8] sm:$0xf] }
  0x38   : > { %4518 = vmatprep.mubr.msk.bf16.mxu0 %vm405_vm1, %v4743_v57  ;;  %v1203_v31 = vrot.slane %v1201_v21, 4  ;;  %v1206_v32 = vrot.slane %v1204_v22, 5  ;;  %v1180_v35 = vrot.slane %v1179_v24, 4  ;;  %v1215_v38 = vshrl.u32 %v4169_v23, 16  ;;  %v367_v39 = vld [vmem:[%s5833_s1 + $0x10] sm:$0x3] }
  0x39   : > { %v1193_v36 = vor.u32 %v1192_v26, %v1189_v25  ;;  %v1212_v37 = vrot.slane %v1210_v27, 5  ;;  %v1171_v41 = vsel %vm5001_vm4, %v1166_v29, %v1170_v9  ;;  %v4172_v43 = vld [vmem:[%s4964_s26 + $0xbc] sm:$0x1]  ;;  %v1218_v44 = vshll.u32 %v4169_v23, 16  ;;  %v4173_v46 = vld [vmem:[%s4964_s26 + $0xc0] sm:$0xf] }
  0x3a   : > { %v1207_v42 = vor.u32 %v1206_v32, %v1203_v31  ;;  %v1224_v45 = vshll.u32 %v4170_v28, 16  ;;  %v1185_v34 = vsel %vm5001_vm4, %v1180_v35, %v1184_v14  ;;  %v1217_v48 = vrot.slane %v1215_v38, 4  ;;  %v4174_v50 = vld [vmem:[%s4964_s26 + $0xc4] sm:$0x1]  ;;  %v4175_v57 = vld [vmem:[%s4964_s26 + $0xc8] sm:$0xf] }
  0x3b   : > { %v1194_v47 = vrot.slane %v1193_v36, 4  ;;  %v1229_v49 = vshrl.u32 %v4171_v33, 16  ;;  %v4177_v51 = vcombine.low %v1171_v41, %v1185_v34  ;;  %v1220_v55 = vrot.slane %v1218_v44, 5  ;;  %v4746_v58 = vld [vmem:[%s4964_s26 + $0x108] ss:$8 sps:$4 sm:$0xff]  }
  0x3c   : > { %v1208_v52 = vrot.slane %v1207_v42, 4  ;;  %v1232_v61 = vshll.u32 %v4171_v33, 16  ;;  %v1238_v62 = vshll.u32 %v4172_v43, 16  ;;  %v4176_v0 = vld [vmem:[%s4964_s26 + $0xcc] sm:$0x1]  ;;  %v1243_v1 = vshrl.u32 %v4173_v46, 16 }
  0x3d   : > { %4513 = vmatmul.mubr.msk.bf16.gmra.mrb[16].mxu1 %vm405_vm1, %v4742_v56  ;;  %v1226_v56 = vrot.slane %v1224_v45, 5  ;;  %v1199_v59 = vsel %vm5001_vm4, %v1194_v47, %v1198_v30  ;;  %v1231_v60 = vrot.slane %v1229_v49, 4  ;;  %v1221_v63 = vor.u32 %v1220_v55, %v1217_v48  ;;  %v4747_v6 = vld [vmem:[%s4964_s26 + $0x8] ss:$8 sps:$4 sm:$0xff]   ;;  %v4748_v27 = vld [vmem:[%s4964_s26 + $0x18] ss:$8 sps:$4 sm:$0xff]  }
  0x3e   : > { %4528 = vmatprep.mubr.msk.bf16.mxu1 %vm405_vm1, %v4177_v51  ;;  %v1246_v2 = vshll.u32 %v4173_v46, 16  ;;  %v1234_v4 = vrot.slane %v1232_v61, 5  ;;  %v1252_v5 = vshll.u32 %v4174_v50, 16  ;;  %v1245_v8 = vrot.slane %v1243_v1, 4  ;;  %v4749_v29 = vld [vmem:[%s4964_s26 + $0x28] ss:$8 sps:$4 sm:$0xff]  }
  0x3f   : > { %4519 = vmatmul.mubr.msk.bf16.vlgmr.msra.gmra.mrb[12].mxu0 %vm405_vm1, %v4744_v12  ;;  %v1222_v7 = vrot.slane %v1221_v63, 4  ;;  %v1257_v10 = vshrl.u32 %v4175_v57, 16  ;;  %v1240_v12 = vrot.slane %v1238_v62, 5  ;;  %v1260_v13 = vshll.u32 %v4175_v57, 16  ;;  %v4751_v31 = vld [vmem:[%s4964_s26 + $0x50] ss:$8 sps:$4 sm:$0xff]  }
  0x40   : > { %4522 = vmatprep.mubr.msk.bf16.mxu0 %vm405_vm1, %v4745_v18  ;;  %4537 = vmatpush3.bf16.msra.mxu0 %v5053_v53  ;;  %v1213_v53 = vsel %vm5001_vm4, %v1208_v52, %v1212_v37  ;;  %v1248_v9 = vrot.slane %v1246_v2, 5  ;;  %v1235_v11 = vor.u32 %v1234_v4, %v1231_v60  ;;  %v1266_v14 = vshll.u32 %v4176_v0, 16  ;;  %v4217_v32 = vld [vmem:[%s4964_s26 + $0x8] sm:$0xf]  ;;  %v4218_v35 = vld [vmem:[%s4964_s26 + $0xc] sm:$0x1] }
  0x41   : > { %4677 = vmatprep.subr.msk.bf16.mxu0 %vm418_vm0, %v367_v39  ;;  %v4178_v3 = vcombine.low %v1199_v59, %v1213_v53  ;;  %v1259_v16 = vrot.slane %v1257_v10, 4  ;;  %v1227_v17 = vsel %vm5001_vm4, %v1222_v7, %v1226_v56  ;;  %v1254_v19 = vrot.slane %v1252_v5, 5  ;;  %v4219_v36 = vld [vmem:[%s4964_s26 + $0x10] sm:$0xf]  ;;  %v4220_v37 = vld [vmem:[%s4964_s26 + $0x14] sm:$0x1] }
  0x42   : > { %v1249_v15 = vor.u32 %v1248_v9, %v1245_v8  ;;  %v1236_v18 = vrot.slane %v1235_v11, 4  ;;  %v1262_v20 = vrot.slane %v1260_v13, 5  ;;  %v1268_v23 = vrot.slane %v1266_v14, 5  ;;  %v4221_v43 = vld [vmem:[%s4964_s26 + $0x18] sm:$0xf] }
  0x43   : > { %v1805_v28 = vsel %vm418_vm0, %v367_v39, 0  ;;  %v1669_v38 = vshrl.u32 %v4217_v32, 16  ;;  %v1672_v41 = vshll.u32 %v4217_v32, 16  ;;  %v1678_v39 = vshll.u32 %v4218_v35, 16  ;;  %v4222_v46 = vld [vmem:[%s4964_s26 + $0x1c] sm:$0x1] }
  0x44   : > { %v1250_v21 = vrot.slane %v1249_v15, 4  ;;  %v1263_v22 = vor.u32 %v1262_v20, %v1259_v16  ;;  %v1683_v42 = vshrl.u32 %v4219_v36, 16  ;;  %v1686_v44 = vshll.u32 %v4219_v36, 16  ;;  %v4223_v34 = vld [vmem:[%s4964_s26 + $0x20] sm:$0xf] }
  0x45   : > { %4529 = vmatmul.mubr.msk.bf16.vlgmr.msra.gmra.mrb[20].mxu1 %vm405_vm1, %v4178_v3  ;;  %v1692_v45 = vshll.u32 %v4220_v37, 16  ;;  %v4750_v47 = vld [vmem:[%s4964_s26 + $0x38] ss:$8 sps:$4 sm:$0xff]   ;;  %v1671_v48 = vrot.slane %v1669_v38, 4  ;;  %v1674_v49 = vrot.slane %v1672_v41, 5  ;;  %v1680_v50 = vrot.slane %v1678_v39, 5 }
  0x46   : > { %4547 = vmatpush3.bf16.msra.mxu1 %v5056_v54  ;;  %v1241_v54 = vsel %vm5001_vm4, %v1236_v18, %v1240_v12  ;;  %v1255_v25 = vsel %vm5001_vm4, %v1250_v21, %v1254_v19  ;;  %v1264_v26 = vrot.slane %v1263_v22, 4  ;;  %v1685_v51 = vrot.slane %v1683_v42, 4  ;;  %v4224_v52 = vld [vmem:[%s4964_s26 + $0x24] sm:$0x1]  ;;  %v4752_v55 = vld [vmem:[%s4964_s26 + $0x60] ss:$8 sps:$4 sm:$0xff]  }
  0x47   : > { %4523 = vmatmul.mubr.msk.bf16.gmra.mrb[16].mxu0 %vm405_vm1, %v4746_v58  ;;  %v4179_v24 = vcombine.low %v1227_v17, %v1241_v54  ;;  %v1688_v56 = vrot.slane %v1686_v44, 5  ;;  %v1694_v57 = vrot.slane %v1692_v45, 5  ;;  %v1697_v58 = vshrl.u32 %v4221_v43, 16  ;;  %v4753_v60 = vld [vmem:[%s4964_s26 + $0x70] ss:$8 sps:$4 sm:$0xff]  }
  0x48   : > { %4538 = vmatprep.mubr.msk.bf16.mxu0 %vm405_vm1, %v4747_v6  ;;  %v1269_v30 = vsel %vm5001_vm4, %v1264_v26, %v1268_v23  ;;  %v1700_v59 = vshll.u32 %v4221_v43, 16  ;;  %v1675_v61 = vor.u32 %v1674_v49, %v1671_v48  ;;  %v1706_v62 = vshll.u32 %v4222_v46, 16  ;;  %v4225_v0 = vld [vmem:[%s4964_s26 + $0x28] sm:$0xf]  ;;  %v4226_v5 = vld [vmem:[%s4964_s26 + $0x2c] sm:$0x1] }
  0x49   : > { %4532 = vmatprep.mubr.msk.bf16.mxu1 %vm405_vm1, %v4179_v24  ;;  %v4180_v33 = vcombine.low %v1255_v25, %v1269_v30  ;;  %v1711_v53 = vshrl.u32 %v4223_v34, 16  ;;  %v1714_v63 = vshll.u32 %v4223_v34, 16  ;;  %v1689_v1 = vor.u32 %v1688_v56, %v1685_v51  ;;  %v4227_v10 = vld [vmem:[%s4964_s26 + $0x30] sm:$0xf]  ;;  %v4228_v14 = vld [vmem:[%s4964_s26 + $0x34] sm:$0x1] }
  0x4a   : > { %v1699_v2 = vrot.slane %v1697_v58, 4  ;;  %v1702_v3 = vrot.slane %v1700_v59, 5  ;;  %v1720_v4 = vshll.u32 %v4224_v52, 16  ;;  %v1676_v6 = vrot.slane %v1675_v61, 4  ;;  %v4229_v20 = vld [vmem:[%s4964_s26 + $0x38] sm:$0xf] }
  0x4b   : > { %v1708_v7 = vrot.slane %v1706_v62, 5  ;;  %v1713_v8 = vrot.slane %v1711_v53, 4  ;;  %v1716_v9 = vrot.slane %v1714_v63, 5  ;;  %v1690_v11 = vrot.slane %v1689_v1, 4  ;;  %v4230_v21 = vld [vmem:[%s4964_s26 + $0x3c] sm:$0x1] }
  0x4c   : > { %v1703_v12 = vor.u32 %v1702_v3, %v1699_v2  ;;  %v1722_v13 = vrot.slane %v1720_v4, 5  ;;  %v1725_v15 = vshrl.u32 %v4225_v0, 16  ;;  %v1681_v16 = vsel %vm5001_vm4, %v1676_v6, %v1680_v50  ;;  %v4231_v25 = vld [vmem:[%s4964_s26 + $0x40] sm:$0xf]  ;;  %v2009_v6 = vld [vmem:[#allocation2 + $0x1c] sm:$0x1] }
  0x4d   : > { %4533 = vmatmul.mubr.msk.bf16.gmra.mrb[24].mxu1 %vm405_vm1, %v4180_v33  ;;  %v1717_v17 = vor.u32 %v1716_v9, %v1713_v8  ;;  %v1728_v18 = vshll.u32 %v4225_v0, 16  ;;  %v1734_v19 = vshll.u32 %v4226_v5, 16  ;;  %v1695_v54 = vsel %vm5001_vm4, %v1690_v11, %v1694_v57  ;;  %v4754_v30 = vld [vmem:[%s4964_s26 + $0x80] ss:$8 sps:$4 sm:$0xff]   ;;  %v1983_v5 = vld [vmem:[#allocation2 + $0x18] sm:$0x1] }
  0x4e   : > { %4548 = vmatprep.mubr.msk.bf16.mxu1 %vm405_vm1, %v4751_v31  ;;  %v1704_v22 = vrot.slane %v1703_v12, 4  ;;  %v1727_v23 = vrot.slane %v1725_v15, 4  ;;  %v1739_v24 = vshrl.u32 %v4227_v10, 16  ;;  %v4233_v26 = vcombine.low %v1681_v16, %v1695_v54  ;;  %v1986_v12 = vld [vmem:[#allocation2 + $0x20] sm:$0x1] }
  0x4f   : > { %4539 = vmatmul.mubr.msk.bf16.vlgmr.msra.gmra.mrb[20].mxu0 %vm405_vm1, %v4748_v27  ;;  %v1718_v27 = vrot.slane %v1717_v17, 4  ;;  %v1742_v33 = vshll.u32 %v4227_v10, 16  ;;  %v1748_v35 = vshll.u32 %v4228_v14, 16  ;;  %v1753_v38 = vshrl.u32 %v4229_v20, 16  ;;  %v2003_v10 = vld [vmem:[#allocation2 + $0xc] sm:$0x1] }
  0x50   : > { %4542 = vmatprep.mubr.msk.bf16.mxu0 %vm405_vm1, %v4749_v29  ;;  %4557 = vmatpush3.bf16.msra.mxu0 %v1805_v28  ;;  %v1730_v28 = vrot.slane %v1728_v18, 5  ;;  %v4232_v29 = vld [vmem:[%s4964_s26 + $0x44] sm:$0x1]  ;;  %v1709_v31 = vsel %vm5001_vm4, %v1704_v22, %v1708_v7  ;;  %v1741_v32 = vrot.slane %v1739_v24, 4  ;;  %v1756_v41 = vshll.u32 %v4229_v20, 16 }
  0x51   : > { %v1723_v36 = vsel %vm5001_vm4, %v1718_v27, %v1722_v13  ;;  %v1736_v42 = vrot.slane %v1734_v19, 5  ;;  %v1744_v43 = vrot.slane %v1742_v33, 5  ;;  %v1762_v44 = vshll.u32 %v4230_v21, 16  ;;  %v1977_v7 = vld [vmem:[#allocation2 + $0x8] sm:$0x1] }
  0x52   : > { %v1731_v37 = vor.u32 %v1730_v28, %v1727_v23  ;;  %v4234_v39 = vcombine.low %v1709_v31, %v1723_v36  ;;  %v1755_v46 = vrot.slane %v1753_v38, 4  ;;  %v1758_v34 = vrot.slane %v1756_v41, 5  ;;  %v1980_v15 = vld [vmem:[#allocation2 + $0x10] sm:$0x1]  ;;  %v2006_v17 = vld [vmem:[#allocation2 + $0x14] sm:$0x1] }
  0x53   : > { %v1745_v48 = vor.u32 %v1744_v43, %v1741_v32  ;;  %v1750_v49 = vrot.slane %v1748_v35, 5  ;;  %v1770_v50 = vshll.u32 %v4231_v25, 16  ;;  %v1776_v51 = vshll.u32 %v4232_v29, 16  ;;  %v2012_v20 = vld [vmem:[#allocation2 + $0x24] sm:$0x1] }
  0x54   : > { %v1732_v45 = vrot.slane %v1731_v37, 4  ;;  %v1759_v52 = vor.u32 %v1758_v34, %v1755_v46  ;;  %v1764_v58 = vrot.slane %v1762_v44, 5  ;;  %v1984_v9 = vsel %vm5168_vm8, 0, %v1983_v5  ;;  %v1995_v21 = vld [vmem:[#allocation2 + $0x38] sm:$0x1] }
  0x55   : > { %4549 = vmatmul.mubr.msk.bf16.vlgmr.msra.gmra.mrb[28].mxu1 %vm405_vm1, %v4752_v55  ;;  %v1746_v57 = vrot.slane %v1745_v48, 4  ;;  %v1772_v59 = vrot.slane %v1770_v50, 5  ;;  %v1778_v53 = vrot.slane %v1776_v51, 5  ;;  %v1978_v11 = vsel %vm5168_vm8, 0, %v1977_v7  ;;  %1985 = vst [vmem:[#allocation2 + $0x18] sm:$0x1] %v1984_v9 }
  0x56   : > { %4552 = vmatprep.mubr.msk.bf16.mxu1 %vm405_vm1, %v4753_v60  ;;  %v1737_v56 = vsel %vm5001_vm4, %v1732_v45, %v1736_v42  ;;  %v1760_v60 = vrot.slane %v1759_v52, 4  ;;  %v2004_v13 = vsel %vm5174_vm9, 0, %v2003_v10  ;;  %v2010_v14 = vsel %vm5174_vm9, 0, %v2009_v6  ;;  %1979 = vst [vmem:[#allocation2 + $0x8] sm:$0x1] %v1978_v11 }
  0x57   : > { %4543 = vmatmul.mubr.msk.bf16.gmra.mrb[24].mxu0 %vm405_vm1, %v4750_v47  ;;  %v1767_v47 = vshrl.u32 %v4231_v25, 16  ;;  %v1751_v61 = vsel %vm5001_vm4, %v1746_v57, %v1750_v49  ;;  %v1987_v16 = vsel %vm5168_vm8, 0, %v1986_v12  ;;  %2005 = vst [vmem:[#allocation2 + $0xc] sm:$0x1] %v2004_v13  ;;  %2011 = vst [vmem:[#allocation2 + $0x1c] sm:$0x1] %v2010_v14 }
  0x58   : > { %4558 = vmatprep.mubr.msk.bf16.mxu0 %vm405_vm1, %v4233_v26  ;;  %v4235_v63 = vcombine.low %v1737_v56, %v1751_v61  ;;  %v1765_v0 = vsel %vm5001_vm4, %v1760_v60, %v1764_v58  ;;  %v1981_v18 = vsel %vm5168_vm8, 0, %v1980_v15  ;;  %1988 = vst [vmem:[#allocation2 + $0x20] sm:$0x1] %v1987_v16  ;;  %v2007_v19 = vsel %vm5174_vm9, 0, %v2006_v17  ;;  %v1989_v23 = vld [vmem:[#allocation2 + $0x28] sm:$0x1] }
  0x59   : > { %v1769_v55 = vrot.slane %v1767_v47, 4  ;;  %1982 = vst [vmem:[#allocation2 + $0x10] sm:$0x1] %v1981_v18  ;;  %2008 = vst [vmem:[#allocation2 + $0x14] sm:$0x1] %v2007_v19  ;;  %v2013_v54 = vsel %vm5174_vm9, 0, %v2012_v20 }
  0x5a   : > { %v1996_v24 = vsel %vm5168_vm8, 0, %v1995_v21  ;;  %2014 = vst [vmem:[#allocation2 + $0x24] sm:$0x1] %v2013_v54  ;;  %v1990_v25 = vsel %vm5168_vm8, 0, %v1989_v23  ;;  %v1992_v26 = vld [vmem:[#allocation2 + $0x30] sm:$0x1] }
  0x5b   : > { %v1773_v62 = vor.u32 %v1772_v59, %v1769_v55  ;;  %1997 = vst [vmem:[#allocation2 + $0x38] sm:$0x1] %v1996_v24  ;;  %1991 = vst [vmem:[#allocation2 + $0x28] sm:$0x1] %v1990_v25  ;;  %v4835_v27 = vmov 0   ;;  %v1993_v28 = vsel %vm5168_vm8, 0, %v1992_v26 }
  0x5c   : > { %1967 = vst.msk [vmem:[#allocation2] sm:$0xf] %vm1966_vm10, %v4835_v27  ;;  %1971 = vst.msk [vmem:[#allocation2 + $0x48] sm:$0xf] %vm1966_vm10, %v4835_v27  ;;  %v2015_v29 = vld [vmem:[#allocation2 + $0x2c] sm:$0x1] }
  0x5d   : > { %4553 = vmatmul.mubr.msk.bf16.gmra.mrb[32].mxu1 %vm405_vm1, %v4754_v30  ;;  %v1774_v1 = vrot.slane %v1773_v62, 4  ;;  %1969 = vst.msk [vmem:[#allocation2 + $0x4] sm:$0x1] %vm1968_vm5, %v4835_v27  ;;  %1972 = vst.msk [vmem:[#allocation2 + $0x4c] sm:$0x1] %vm1968_vm5, %v4835_v27  ;;  %v2016_v30 = vsel %vm5174_vm9, 0, %v2015_v29 }
  0x5e   : > { %1994 = vst [vmem:[#allocation2 + $0x30] sm:$0x1] %v1993_v28  ;;  %2017 = vst [vmem:[#allocation2 + $0x2c] sm:$0x1] %v2016_v30  ;;  %v368_v31 = vld [vmem:[%s5836_s4] sm:$0xf] }
  0x5f   : > { %4559 = vmatmul.mubr.msk.bf16.vlgmr.msra.gmra.mrb[28].mxu0 %vm405_vm1, %v4234_v39  ;;  %v1779_v2 = vsel %vm5001_vm4, %v1774_v1, %v1778_v53  ;;  %v369_v32 = vld [vmem:[%s5836_s4 + $0x4] sm:$0xf]  ;;  %4678 = vmatprep.subr.msk.bf16.mxu1 %vm2197_vm12, %v368_v31  ;;  %v2199_v33 = vsel %vm2197_vm12, %v368_v31, 0  ;;  %v5222_v36 = vld [vmem:[%s5836_s4 + $0x8] sm:$0xf] }
  0x60   : > { %4562 = vmatprep.mubr.msk.bf16.mxu0 %vm405_vm1, %v4235_v63  ;;  %v4236_v3 = vcombine.low %v1765_v0, %v1779_v2  ;;  %4679 = vmatprep.subr.msk.bf16.mxu0 %vm2197_vm12, %v369_v32  ;;  %v2427_v35 = vsel %vm2197_vm12, %v369_v32, 0  ;;  %v2021_v37 = vld [vmem:[#allocation2 + $0x3c] sm:$0x1]  ;;  %v2018_v38 = vld [vmem:[#allocation2 + $0x34] sm:$0x1] }
  0x61   : > { %4567 = vmatpush3.bf16.msra.mxu1 %v2199_v33  ;;  %4577 = vmatpush3.bf16.msra.mxu0 %v2427_v35  ;;  %v2022_v41 = vsel %vm5174_vm9, 0, %v2021_v37  ;;  %v2019_v39 = vsel %vm5174_vm9, 0, %v2018_v38  ;;  %v5240_v49 = vld [vmem:[%s5836_s4 + $0xc] sm:$0xf]  ;;  %v1998_v61 = vld [vmem:[#allocation2 + $0x40] sm:$0x1] }
  0x62   : > { %4680 = vmatprep.subr.msk.bf16.mxu1 %vm2197_vm12, %v5222_v36  ;;  %2023 = vst [vmem:[#allocation2 + $0x3c] sm:$0x1] %v2022_v41  ;;  %2020 = vst [vmem:[#allocation2 + $0x34] sm:$0x1] %v2019_v39  ;;  %4681 = vmatprep.subr.msk.bf16.mxu0 %vm2197_vm12, %v5240_v49  ;;  %v1999_v63 = vsel %vm5168_vm8, 0, %v1998_v61 }
  0x63   : > { %2000 = vst [vmem:[#allocation2 + $0x40] sm:$0x1] %v1999_v63  ;;  %v2024_v23 = vld [vmem:[#allocation2 + $0x44] sm:$0x1]  ;;  %v4769_v40 = vld [vmem:[%s4964_s26 + $0xf8] ss:$8 sps:$4 sm:$0xff]  }
  0x64   : > { %v2025_v27 = vsel %vm5174_vm9, 0, %v2024_v23 }
  0x65   : > { %2026 = vst [vmem:[#allocation2 + $0x44] sm:$0x1] %v2025_v27 }
  0x67   : > { %4563 = vmatmul.mubr.msk.bf16.gmra.mrb[32].mxu0 %vm405_vm1, %v4236_v3 }
  0xef   : > { %v4480_v42 = vpop.f32.mrb[0].mxu0 }
  0xf0   : > { %490 = vst.msk [vmem:[#allocation3 + $0x10] sm:$0xff] %vm487_vm13, %v4480_v42  ;;  %v4484_v43 = vpop.f32.mrb[0].mxu1  ;;  %v456_v44 = vpop.f32.mrb[1].mxu0 }
  0xf1   : > { %494 = vst.msk [vmem:[#allocation3 + $0x30] sm:$0xff] %vm487_vm13, %v4484_v43  ;;  %488 = vst.msk [vmem:[#allocation3] sm:$0xff] %vm487_vm13, %v456_v44  ;;  %v472_v45 = vpop.f32.mrb[1].mxu1  ;;  %v4481_v46 = vpop.f32.mrb[2].mxu0 }
  0xf2   : > { %492 = vst.msk [vmem:[#allocation3 + $0x20] sm:$0xff] %vm487_vm13, %v472_v45  ;;  %491 = vst.msk [vmem:[#allocation3 + $0x18] sm:$0xff] %vm487_vm13, %v4481_v46  ;;  %v4485_v34 = vpop.f32.mrb[2].mxu1  ;;  %v459_v47 = vpop.f32.mrb[3].mxu0 }
  0xf3   : > { %495 = vst.msk [vmem:[#allocation3 + $0x38] sm:$0xff] %vm487_vm13, %v4485_v34  ;;  %489 = vst.msk [vmem:[#allocation3 + $0x8] sm:$0xff] %vm487_vm13, %v459_v47  ;;  %v475_v48 = vpop.f32.mrb[3].mxu1 }
  0xf4   : > { %493 = vst.msk [vmem:[#allocation3 + $0x28] sm:$0xff] %vm487_vm13, %v475_v48 }
  0xf7   : > { %v607_v50 = vld [vmem:[#allocation3 + $0x10] sm:$0xff] }
  0xf8   : > { %v4490_v51 = vpop.f32.mrb[4].mxu1  ;;  %v605_v52 = vld [vmem:[#allocation3] sm:$0xff]  ;;  %v611_v2 = vld [vmem:[#allocation3 + $0x30] sm:$0xff] }
  0xf9   : > { %v615_v55 = vadd.f32 %v4490_v51, %v607_v50  ;;  %v574_v56 = vpop.f32.mrb[5].mxu1  ;;  %v608_v57 = vld [vmem:[#allocation3 + $0x18] sm:$0xff]  ;;  %v609_v6 = vld [vmem:[#allocation3 + $0x20] sm:$0xff] }
  0xfa   : > { %v613_v58 = vadd.f32 %v605_v52, %v574_v56  ;;  %v4491_v59 = vpop.f32.mrb[6].mxu1  ;;  %v606_v60 = vld [vmem:[#allocation3 + $0x8] sm:$0xff]  ;;  %v612_v12 = vld [vmem:[#allocation3 + $0x38] sm:$0xff] }
  0xfb   : > { %623 = vst.msk [vmem:[#allocation3 + $0x10] sm:$0xff] %vm487_vm13, %v615_v55  ;;  %v616_v62 = vadd.f32 %v4491_v59, %v608_v57  ;;  %v577_v53 = vpop.f32.mrb[7].mxu1  ;;  %v610_v18 = vld [vmem:[#allocation3 + $0x28] sm:$0xff] }
  0xfc   : > { %621 = vst.msk [vmem:[#allocation3] sm:$0xff] %vm487_vm13, %v613_v58  ;;  %v614_v0 = vadd.f32 %v606_v60, %v577_v53 }
  0xfd   : > { %624 = vst.msk [vmem:[#allocation3 + $0x18] sm:$0xff] %vm487_vm13, %v616_v62 }
  0xfe   : > { %622 = vst.msk [vmem:[#allocation3 + $0x8] sm:$0xff] %vm487_vm13, %v614_v0 }
 0x100   : > { %v4494_v1 = vpop.f32.mrb[8].mxu1  ;;  %v4500_v7 = vpop.f32.mrb[4].mxu0 }
 0x101   : > { %v619_v3 = vadd.f32 %v4494_v1, %v611_v2  ;;  %v590_v5 = vpop.f32.mrb[9].mxu1  ;;  %v821_v14 = vpop.f32.mrb[5].mxu0 }
 0x102   : > { %v854_v9 = vld [vmem:[#allocation3 + $0x10] sm:$0xff]  ;;  %v617_v10 = vadd.f32 %v609_v6, %v590_v5  ;;  %v4495_v11 = vpop.f32.mrb[10].mxu1  ;;  %v4501_v20 = vpop.f32.mrb[6].mxu0 }
 0x103   : > { %v862_v13 = vadd.f32 %v4500_v7, %v854_v9  ;;  %627 = vst.msk [vmem:[#allocation3 + $0x30] sm:$0xff] %vm487_vm13, %v619_v3  ;;  %v852_v15 = vld [vmem:[#allocation3] sm:$0xff]  ;;  %v620_v16 = vadd.f32 %v4495_v11, %v612_v12  ;;  %v593_v17 = vpop.f32.mrb[11].mxu1  ;;  %v824_v25 = vpop.f32.mrb[7].mxu0 }
 0x104   : > { %v860_v19 = vadd.f32 %v852_v15, %v821_v14  ;;  %625 = vst.msk [vmem:[#allocation3 + $0x20] sm:$0xff] %vm487_vm13, %v617_v10  ;;  %v855_v21 = vld [vmem:[#allocation3 + $0x18] sm:$0xff]  ;;  %v618_v54 = vadd.f32 %v610_v18, %v593_v17 }
 0x105   : > { %870 = vst.msk [vmem:[#allocation3 + $0x10] sm:$0xff] %vm487_vm13, %v862_v13  ;;  %v863_v24 = vadd.f32 %v4501_v20, %v855_v21  ;;  %628 = vst.msk [vmem:[#allocation3 + $0x38] sm:$0xff] %vm487_vm13, %v620_v16  ;;  %v853_v26 = vld [vmem:[#allocation3 + $0x8] sm:$0xff] }
 0x106   : > { %868 = vst.msk [vmem:[#allocation3] sm:$0xff] %vm487_vm13, %v860_v19  ;;  %v861_v28 = vadd.f32 %v853_v26, %v824_v25  ;;  %626 = vst.msk [vmem:[#allocation3 + $0x28] sm:$0xff] %vm487_vm13, %v618_v54 }
 0x107   : > { %871 = vst.msk [vmem:[#allocation3 + $0x18] sm:$0xff] %vm487_vm13, %v863_v24 }
 0x108   : > { %869 = vst.msk [vmem:[#allocation3 + $0x8] sm:$0xff] %vm487_vm13, %v861_v28  ;;  %v4510_v29 = vpop.f32.mrb[12].mxu1 }
 0x109   : > { %v954_v30 = vpop.f32.mrb[13].mxu1 }
 0x10a   : > { %v4511_v31 = vpop.f32.mrb[14].mxu1  ;;  %v858_v32 = vld [vmem:[#allocation3 + $0x30] sm:$0xff]  ;;  %v4504_v38 = vpop.f32.mrb[8].mxu0 }
 0x10b   : > { %v957_v33 = vpop.f32.mrb[15].mxu1  ;;  %v856_v35 = vld [vmem:[#allocation3 + $0x20] sm:$0xff]  ;;  %v866_v42 = vadd.f32 %v4504_v38, %v858_v32  ;;  %v837_v43 = vpop.f32.mrb[9].mxu0 }
 0x10c   : > { %v987_v37 = vld [vmem:[#allocation3 + $0x10] sm:$0xff]  ;;  %v859_v8 = vld [vmem:[#allocation3 + $0x38] sm:$0xff]  ;;  %v864_v34 = vadd.f32 %v856_v35, %v837_v43  ;;  %v4505_v47 = vpop.f32.mrb[10].mxu0 }
 0x10d   : > { %v995_v41 = vadd.f32 %v4510_v29, %v987_v37  ;;  %v985_v39 = vld [vmem:[#allocation3] sm:$0xff]  ;;  %v857_v44 = vld [vmem:[#allocation3 + $0x28] sm:$0xff]  ;;  %874 = vst.msk [vmem:[#allocation3 + $0x30] sm:$0xff] %vm487_vm13, %v866_v42  ;;  %v867_v51 = vadd.f32 %v4505_v47, %v859_v8  ;;  %v840_v52 = vpop.f32.mrb[11].mxu0 }
 0x10e   : > { %v993_v45 = vadd.f32 %v985_v39, %v954_v30  ;;  %v988_v46 = vld [vmem:[#allocation3 + $0x18] sm:$0xff]  ;;  %872 = vst.msk [vmem:[#allocation3 + $0x20] sm:$0xff] %vm487_vm13, %v864_v34  ;;  %v865_v57 = vadd.f32 %v857_v44, %v840_v52 }
 0x10f   : > { %1003 = vst.msk [vmem:[#allocation3 + $0x10] sm:$0xff] %vm487_vm13, %v995_v41  ;;  %v996_v48 = vadd.f32 %v4511_v31, %v988_v46  ;;  %v986_v50 = vld [vmem:[#allocation3 + $0x8] sm:$0xff]  ;;  %875 = vst.msk [vmem:[#allocation3 + $0x38] sm:$0xff] %vm487_vm13, %v867_v51 }
 0x110   : > { %1001 = vst.msk [vmem:[#allocation3] sm:$0xff] %vm487_vm13, %v993_v45  ;;  %v994_v55 = vadd.f32 %v986_v50, %v957_v33  ;;  %v4514_v56 = vpop.f32.mrb[16].mxu1  ;;  %873 = vst.msk [vmem:[#allocation3 + $0x28] sm:$0xff] %vm487_vm13, %v865_v57 }
 0x111   : > { %1004 = vst.msk [vmem:[#allocation3 + $0x18] sm:$0xff] %vm487_vm13, %v996_v48  ;;  %v970_v58 = vpop.f32.mrb[17].mxu1 }
 0x112   : > { %1002 = vst.msk [vmem:[#allocation3 + $0x8] sm:$0xff] %vm487_vm13, %v994_v55  ;;  %v4515_v59 = vpop.f32.mrb[18].mxu1  ;;  %v4520_v61 = vpop.f32.mrb[12].mxu0 }
 0x113   : > { %v973_v60 = vpop.f32.mrb[19].mxu1  ;;  %v1087_v53 = vpop.f32.mrb[13].mxu0 }
 0x114   : > { %v991_v63 = vld [vmem:[#allocation3 + $0x30] sm:$0xff]  ;;  %v4521_v2 = vpop.f32.mrb[14].mxu0 }
 0x115   : > { %v999_v3 = vadd.f32 %v4514_v56, %v991_v63  ;;  %v989_v5 = vld [vmem:[#allocation3 + $0x20] sm:$0xff]  ;;  %v1090_v9 = vpop.f32.mrb[15].mxu0 }
 0x116   : > { %v1120_v62 = vld [vmem:[#allocation3 + $0x10] sm:$0xff]  ;;  %v997_v10 = vadd.f32 %v989_v5, %v970_v58  ;;  %v992_v11 = vld [vmem:[#allocation3 + $0x38] sm:$0xff] }
 0x117   : > { %v1128_v0 = vadd.f32 %v4520_v61, %v1120_v62  ;;  %v1118_v1 = vld [vmem:[#allocation3] sm:$0xff]  ;;  %1007 = vst.msk [vmem:[#allocation3 + $0x30] sm:$0xff] %vm487_vm13, %v999_v3  ;;  %v1000_v14 = vadd.f32 %v4515_v59, %v992_v11  ;;  %v990_v15 = vld [vmem:[#allocation3 + $0x28] sm:$0xff] }
 0x118   : > { %v1126_v6 = vadd.f32 %v1118_v1, %v1087_v53  ;;  %v1121_v7 = vld [vmem:[#allocation3 + $0x18] sm:$0xff]  ;;  %1005 = vst.msk [vmem:[#allocation3 + $0x20] sm:$0xff] %vm487_vm13, %v997_v10  ;;  %v998_v17 = vadd.f32 %v990_v15, %v973_v60  ;;  %v4530_v18 = vpop.f32.mrb[20].mxu1 }
 0x119   : > { %1136 = vst.msk [vmem:[#allocation3 + $0x10] sm:$0xff] %vm487_vm13, %v1128_v0  ;;  %v1129_v12 = vadd.f32 %v4521_v2, %v1121_v7  ;;  %v1119_v13 = vld [vmem:[#allocation3 + $0x8] sm:$0xff]  ;;  %1008 = vst.msk [vmem:[#allocation3 + $0x38] sm:$0xff] %vm487_vm13, %v1000_v14  ;;  %v1331_v19 = vpop.f32.mrb[21].mxu1 }
 0x11a   : > { %1134 = vst.msk [vmem:[#allocation3] sm:$0xff] %vm487_vm13, %v1126_v6  ;;  %v1127_v16 = vadd.f32 %v1119_v13, %v1090_v9  ;;  %1006 = vst.msk [vmem:[#allocation3 + $0x28] sm:$0xff] %vm487_vm13, %v998_v17  ;;  %v4524_v20 = vpop.f32.mrb[16].mxu0  ;;  %v4531_v21 = vpop.f32.mrb[22].mxu1 }
 0x11b   : > { %1137 = vst.msk [vmem:[#allocation3 + $0x18] sm:$0xff] %vm487_vm13, %v1129_v12  ;;  %v1103_v54 = vpop.f32.mrb[17].mxu0  ;;  %v1334_v23 = vpop.f32.mrb[23].mxu1 }
 0x11c   : > { %1135 = vst.msk [vmem:[#allocation3 + $0x8] sm:$0xff] %vm487_vm13, %v1127_v16  ;;  %v4525_v24 = vpop.f32.mrb[18].mxu0 }
 0x11d   : > { %v1106_v26 = vpop.f32.mrb[19].mxu0 }
 0x11e   : > { %v1124_v27 = vld [vmem:[#allocation3 + $0x30] sm:$0xff] }
 0x11f   : > { %v1132_v30 = vadd.f32 %v4524_v20, %v1124_v27  ;;  %v1122_v31 = vld [vmem:[#allocation3 + $0x20] sm:$0xff] }
 0x120   : > { %v1364_v25 = vld [vmem:[#allocation3 + $0x10] sm:$0xff]  ;;  %v1130_v35 = vadd.f32 %v1122_v31, %v1103_v54  ;;  %v1125_v37 = vld [vmem:[#allocation3 + $0x38] sm:$0xff]  ;;  %v4534_v45 = vpop.f32.mrb[24].mxu1 }
 0x121   : > { %v1372_v28 = vadd.f32 %v4530_v18, %v1364_v25  ;;  %v1362_v29 = vld [vmem:[#allocation3] sm:$0xff]  ;;  %1140 = vst.msk [vmem:[#allocation3 + $0x30] sm:$0xff] %vm487_vm13, %v1132_v30  ;;  %v1133_v41 = vadd.f32 %v4525_v24, %v1125_v37  ;;  %v1123_v39 = vld [vmem:[#allocation3 + $0x28] sm:$0xff]  ;;  %v1347_v34 = vpop.f32.mrb[25].mxu1 }
 0x122   : > { %v1370_v32 = vadd.f32 %v1362_v29, %v1331_v19  ;;  %v1365_v33 = vld [vmem:[#allocation3 + $0x18] sm:$0xff]  ;;  %1138 = vst.msk [vmem:[#allocation3 + $0x20] sm:$0xff] %vm487_vm13, %v1130_v35  ;;  %v1131_v43 = vadd.f32 %v1123_v39, %v1106_v26  ;;  %v4540_v44 = vpop.f32.mrb[20].mxu0  ;;  %v4535_v48 = vpop.f32.mrb[26].mxu1 }
 0x123   : > { %1380 = vst.msk [vmem:[#allocation3 + $0x10] sm:$0xff] %vm487_vm13, %v1372_v28  ;;  %v1373_v38 = vadd.f32 %v4531_v21, %v1365_v33  ;;  %v1363_v8 = vld [vmem:[#allocation3 + $0x8] sm:$0xff]  ;;  %1141 = vst.msk [vmem:[#allocation3 + $0x38] sm:$0xff] %vm487_vm13, %v1133_v41  ;;  %v1464_v46 = vpop.f32.mrb[21].mxu0  ;;  %v1350_v51 = vpop.f32.mrb[27].mxu1 }
 0x124   : > { %1378 = vst.msk [vmem:[#allocation3] sm:$0xff] %vm487_vm13, %v1370_v32  ;;  %v1371_v42 = vadd.f32 %v1363_v8, %v1334_v23  ;;  %1139 = vst.msk [vmem:[#allocation3 + $0x28] sm:$0xff] %vm487_vm13, %v1131_v43  ;;  %v4541_v47 = vpop.f32.mrb[22].mxu0 }
 0x125   : > { %1381 = vst.msk [vmem:[#allocation3 + $0x18] sm:$0xff] %vm487_vm13, %v1373_v38  ;;  %v1467_v50 = vpop.f32.mrb[23].mxu0 }
 0x126   : > { %1379 = vst.msk [vmem:[#allocation3 + $0x8] sm:$0xff] %vm487_vm13, %v1371_v42 }
 0x128   : > { %v1368_v55 = vld [vmem:[#allocation3 + $0x30] sm:$0xff]  ;;  %v4550_v7 = vpop.f32.mrb[28].mxu1 }
 0x129   : > { %v1376_v58 = vadd.f32 %v4534_v45, %v1368_v55  ;;  %v1366_v59 = vld [vmem:[#allocation3 + $0x20] sm:$0xff]  ;;  %v1597_v11 = vpop.f32.mrb[29].mxu1 }
 0x12a   : > { %v1497_v52 = vld [vmem:[#allocation3 + $0x10] sm:$0xff]  ;;  %v1374_v62 = vadd.f32 %v1366_v59, %v1347_v34  ;;  %v1369_v53 = vld [vmem:[#allocation3 + $0x38] sm:$0xff]  ;;  %v4544_v1 = vpop.f32.mrb[24].mxu0  ;;  %v4551_v13 = vpop.f32.mrb[30].mxu1 }
 0x12b   : > { %v1505_v56 = vadd.f32 %v4540_v44, %v1497_v52  ;;  %v1495_v57 = vld [vmem:[#allocation3] sm:$0xff]  ;;  %1384 = vst.msk [vmem:[#allocation3 + $0x30] sm:$0xff] %vm487_vm13, %v1376_v58  ;;  %v1377_v2 = vadd.f32 %v4535_v48, %v1369_v53  ;;  %v1367_v3 = vld [vmem:[#allocation3 + $0x28] sm:$0xff]  ;;  %v1480_v6 = vpop.f32.mrb[25].mxu0  ;;  %v1600_v14 = vpop.f32.mrb[31].mxu1 }
 0x12c   : > { %v1503_v60 = vadd.f32 %v1495_v57, %v1464_v46  ;;  %v1498_v61 = vld [vmem:[#allocation3 + $0x18] sm:$0xff]  ;;  %1382 = vst.msk [vmem:[#allocation3 + $0x20] sm:$0xff] %vm487_vm13, %v1374_v62  ;;  %v1375_v9 = vadd.f32 %v1367_v3, %v1350_v51  ;;  %v4545_v10 = vpop.f32.mrb[26].mxu0  ;;  %v2274_v58 = vld [vmem:[#allocation2] sm:$0xf] }
 0x12d   : > { %1513 = vst.msk [vmem:[#allocation3 + $0x10] sm:$0xff] %vm487_vm13, %v1505_v56  ;;  %v1506_v63 = vadd.f32 %v4541_v47, %v1498_v61  ;;  %v1496_v0 = vld [vmem:[#allocation3 + $0x8] sm:$0xff]  ;;  %1385 = vst.msk [vmem:[#allocation3 + $0x38] sm:$0xff] %vm487_vm13, %v1377_v2  ;;  %v1483_v12 = vpop.f32.mrb[27].mxu0  ;;  %v5317_v3 = vld [vmem:[%s5835_s3] ss:$0 sm:$0xff] }
 0x12e   : > { %1511 = vst.msk [vmem:[#allocation3] sm:$0xff] %vm487_vm13, %v1503_v60  ;;  %v1504_v5 = vadd.f32 %v1496_v0, %v1467_v50  ;;  %1383 = vst.msk [vmem:[#allocation3 + $0x28] sm:$0xff] %vm487_vm13, %v1375_v9  ;;  %v2294_v0 = vshll.u32 %v2274_v58, 16 }
 0x12f   : > { %1514 = vst.msk [vmem:[#allocation3 + $0x18] sm:$0xff] %vm487_vm13, %v1506_v63  ;;  %v2291_v63 = vshrl.u32 %v2274_v58, 16 }
 0x130   : > { %1512 = vst.msk [vmem:[#allocation3 + $0x8] sm:$0xff] %vm487_vm13, %v1504_v5  ;;  %v4554_v24 = vpop.f32.mrb[32].mxu1 }
 0x131   : > { %v1613_v30 = vpop.f32.mrb[33].mxu1  ;;  %v2293_v5 = vrot.slane %v2291_v63, 4 }
 0x132   : > { %v1501_v16 = vld [vmem:[#allocation3 + $0x30] sm:$0xff]  ;;  %v4560_v19 = vpop.f32.mrb[28].mxu0  ;;  %v4555_v37 = vpop.f32.mrb[34].mxu1 }
 0x133   : > { %v1509_v20 = vadd.f32 %v4544_v1, %v1501_v16  ;;  %v1499_v21 = vld [vmem:[#allocation3 + $0x20] sm:$0xff]  ;;  %v1841_v25 = vpop.f32.mrb[29].mxu0  ;;  %v1616_v41 = vpop.f32.mrb[35].mxu1  ;;  %v5312_v1 = vld [vmem:[%s5834_s2] ss:$0 sm:$0xff] }
 0x134   : > { %v1630_v15 = vld [vmem:[#allocation3 + $0x10] sm:$0xff]  ;;  %v1507_v26 = vadd.f32 %v1499_v21, %v1480_v6  ;;  %v1502_v27 = vld [vmem:[#allocation3 + $0x38] sm:$0xff]  ;;  %v4561_v31 = vpop.f32.mrb[30].mxu0  ;;  %v2296_v6 = vrot.slane %v2294_v0, 5 }
 0x135   : > { %v1638_v17 = vadd.f32 %v4550_v7, %v1630_v15  ;;  %v1628_v18 = vld [vmem:[#allocation3] sm:$0xff]  ;;  %1517 = vst.msk [vmem:[#allocation3 + $0x30] sm:$0xff] %vm487_vm13, %v1509_v20  ;;  %v1510_v32 = vadd.f32 %v4545_v10, %v1502_v27  ;;  %v1500_v33 = vld [vmem:[#allocation3 + $0x28] sm:$0xff]  ;;  %v1844_v38 = vpop.f32.mrb[31].mxu0  ;;  %v2275_v15 = vld [vmem:[#allocation2 + $0x4] sm:$0x1] }
 0x136   : > { %v1636_v54 = vadd.f32 %v1628_v18, %v1597_v11  ;;  %v1631_v23 = vld [vmem:[#allocation3 + $0x18] sm:$0xff]  ;;  %1515 = vst.msk [vmem:[#allocation3 + $0x20] sm:$0xff] %vm487_vm13, %v1507_v26  ;;  %v1508_v8 = vadd.f32 %v1500_v33, %v1483_v12 }
 0x137   : > { %1646 = vst.msk [vmem:[#allocation3 + $0x10] sm:$0xff] %vm487_vm13, %v1638_v17  ;;  %v1639_v28 = vadd.f32 %v4551_v13, %v1631_v23  ;;  %v1629_v29 = vld [vmem:[#allocation3 + $0x8] sm:$0xff]  ;;  %1518 = vst.msk [vmem:[#allocation3 + $0x38] sm:$0xff] %vm487_vm13, %v1510_v32 }
 0x138   : > { %1644 = vst.msk [vmem:[#allocation3] sm:$0xff] %vm487_vm13, %v1636_v54  ;;  %v1637_v35 = vadd.f32 %v1629_v29, %v1600_v14  ;;  %1516 = vst.msk [vmem:[#allocation3 + $0x28] sm:$0xff] %vm487_vm13, %v1508_v8  ;;  %v2300_v29 = vshll.u32 %v2275_v15, 16 }
 0x139   : > { %1647 = vst.msk [vmem:[#allocation3 + $0x18] sm:$0xff] %vm487_vm13, %v1639_v28 }
 0x13a   : > { %1645 = vst.msk [vmem:[#allocation3 + $0x8] sm:$0xff] %vm487_vm13, %v1637_v35  ;;  %v4564_v45 = vpop.f32.mrb[32].mxu0 }
 0x13b   : > { %v1857_v50 = vpop.f32.mrb[33].mxu0 }
 0x13c   : > { %v1634_v42 = vld [vmem:[#allocation3 + $0x30] sm:$0xff]  ;;  %v4565_v57 = vpop.f32.mrb[34].mxu0 }
 0x13d   : > { %v1642_v46 = vadd.f32 %v4554_v24, %v1634_v42  ;;  %v1632_v34 = vld [vmem:[#allocation3 + $0x20] sm:$0xff]  ;;  %v1860_v62 = vpop.f32.mrb[35].mxu0 }
 0x13e   : > { %v1874_v39 = vld [vmem:[#allocation3 + $0x10] sm:$0xff]  ;;  %v1640_v51 = vadd.f32 %v1632_v34, %v1613_v30  ;;  %v1635_v52 = vld [vmem:[#allocation3 + $0x38] sm:$0xff] }
 0x13f   : > { %v1882_v43 = vadd.f32 %v4560_v19, %v1874_v39  ;;  %v1872_v44 = vld [vmem:[#allocation3] sm:$0xff]  ;;  %1650 = vst.msk [vmem:[#allocation3 + $0x30] sm:$0xff] %vm487_vm13, %v1642_v46  ;;  %v1643_v59 = vadd.f32 %v4555_v37, %v1635_v52  ;;  %v1633_v60 = vld [vmem:[#allocation3 + $0x28] sm:$0xff]  ;;  %v5328_v30 = vld [vmem:[#allocation2] sm:$0xe]  ;;  %v5343_v46 = vrot.slane %v2300_v29, 5 }
 0x140   : > { %v1880_v47 = vadd.f32 %v1872_v44, %v1841_v25  ;;  %v1875_v48 = vld [vmem:[#allocation3 + $0x18] sm:$0xff]  ;;  %1648 = vst.msk [vmem:[#allocation3 + $0x20] sm:$0xff] %vm487_vm13, %v1640_v51  ;;  %v1641_v53 = vadd.f32 %v1633_v60, %v1616_v41  ;;  %v2297_v25 = vor.u32 %v2296_v6, %v2293_v5  ;;  %v4267_v39 = vrot.slane %v5328_v30, 9  ;;  %v2121_v5 = vld [vmem:[#allocation2 + $0x18] sm:$0xf] }
 0x141   : > { %1890 = vst.msk [vmem:[#allocation3 + $0x10] sm:$0xff] %vm487_vm13, %v1882_v43  ;;  %v1883_v55 = vadd.f32 %v4561_v31, %v1875_v48  ;;  %v1873_v56 = vld [vmem:[#allocation3 + $0x8] sm:$0xff]  ;;  %1651 = vst.msk [vmem:[#allocation3 + $0x38] sm:$0xff] %vm487_vm13, %v1643_v59  ;;  %v5330_v31 = vld [vmem:[#allocation2 + $0x4] sm:$0x1] }
 0x142   : > { %1888 = vst.msk [vmem:[#allocation3] sm:$0xff] %vm487_vm13, %v1880_v47  ;;  %v1881_v61 = vadd.f32 %v1873_v56, %v1844_v38  ;;  %1649 = vst.msk [vmem:[#allocation3 + $0x28] sm:$0xff] %vm487_vm13, %v1641_v53  ;;  %v5337_v38 = vsel %vm2197_vm12, %v5222_v36, 0  ;;  %v2555_v42 = vrot.slane %v5330_v31, 5  ;;  %v5363_v29 = vld [vmem:[%s5836_s4 + $0x10] sm:$0xf] }
 0x143   : > { %1891 = vst.msk [vmem:[#allocation3 + $0x18] sm:$0xff] %vm487_vm13, %v1883_v55 }
 0x144   : > { %1889 = vst.msk [vmem:[#allocation3 + $0x8] sm:$0xff] %vm487_vm13, %v1881_v61 }
 0x146   : > { %v1878_v10 = vld [vmem:[#allocation3 + $0x30] sm:$0xff] }
 0x147   : > { %v1886_v13 = vadd.f32 %v4564_v45, %v1878_v10  ;;  %v1876_v14 = vld [vmem:[#allocation3 + $0x20] sm:$0xff]  ;;  %v5341_v45 = vrot.slane %v2297_v25, 4 }
 0x148   : > { %v1898_v2 = vld [vmem:[#allocation3 + $0x10] sm:$0xff]  ;;  %v1884_v19 = vadd.f32 %v1876_v14, %v1857_v50  ;;  %v1879_v20 = vld [vmem:[#allocation3 + $0x38] sm:$0xff]  ;;  %v5347_v50 = vsel %vm2197_vm12, %v5240_v49, 0 }
 0x149   : > { %v1913_v7 = vmul.f32 %v5312_v1, %v1898_v2  ;;  %v1896_v9 = vld [vmem:[#allocation3] sm:$0xff]  ;;  %1894 = vst.msk [vmem:[#allocation3 + $0x30] sm:$0xff] %vm487_vm13, %v1886_v13  ;;  %v1887_v23 = vadd.f32 %v4565_v57, %v1879_v20  ;;  %v1877_v24 = vld [vmem:[#allocation3 + $0x28] sm:$0xff] }
 0x14a   : > { %v1911_v11 = vmul.f32 %v5312_v1, %v1896_v9  ;;  %v1899_v12 = vld [vmem:[#allocation3 + $0x18] sm:$0xff]  ;;  %1892 = vst.msk [vmem:[#allocation3 + $0x20] sm:$0xff] %vm487_vm13, %v1884_v19  ;;  %v1885_v28 = vadd.f32 %v1877_v24, %v1860_v62 }
 0x14b   : > { %v1928_v16 = vadd.f32 %v5317_v3, %v1913_v7  ;;  %v1914_v17 = vmul.f32 %v5312_v1, %v1899_v12  ;;  %v1897_v18 = vld [vmem:[#allocation3 + $0x8] sm:$0xff]  ;;  %1895 = vst.msk [vmem:[#allocation3 + $0x38] sm:$0xff] %vm487_vm13, %v1887_v23  ;;  %v2118_v23 = vld [vmem:[#allocation2 + $0x14] sm:$0x1] }
 0x14c   : > { %v1926_v21 = vadd.f32 %v5317_v3, %v1911_v11  ;;  %v1912_v54 = vmul.f32 %v5312_v1, %v1897_v18  ;;  %1893 = vst.msk [vmem:[#allocation3 + $0x28] sm:$0xff] %vm487_vm13, %v1885_v28  ;;  %v2109_v11 = vld [vmem:[#allocation2 + $0x8] sm:$0xf]  ;;  %v2124_v28 = vld [vmem:[#allocation2 + $0x1c] sm:$0x1] }
 0x14d   : > { %v1936_v26 = vmax.f32 %v1928_v16, 0.0  ;;  %v1929_v27 = vadd.f32 %v5317_v3, %v1914_v17  ;;  %v2115_v16 = vld [vmem:[#allocation2 + $0x10] sm:$0xf]  ;;  %v2127_v17 = vld [vmem:[#allocation2 + $0x20] sm:$0xf] }
 0x14e   : > { %v1934_v32 = vmax.f32 %v1926_v21, 0.0  ;;  %v1927_v33 = vadd.f32 %v5317_v3, %v1912_v54  ;;  %v2112_v54 = vld [vmem:[#allocation2 + $0xc] sm:$0x1] }
 0x14f   : > { %v4374_v35 = vpack.c.bf16 %v1936_v26, %v1936_v26  ;;  %v1937_v37 = vmax.f32 %v1929_v27, 0.0 }
 0x150   : > { %v4372_v8 = vpack.c.bf16 %v1934_v32, %v1934_v32  ;;  %v1935_v41 = vmax.f32 %v1927_v33, 0.0  ;;  %v1902_v56 = vld [vmem:[#allocation3 + $0x30] sm:$0xff] }
 0x151   : > { %v2044_v43 = vshrl.u32 %v4374_v35, 16  ;;  %v4375_v44 = vpack.c.bf16 %v1937_v37, %v1937_v37  ;;  %v2047_v34 = vshll.u32 %v4374_v35, 16  ;;  %v1917_v60 = vmul.f32 %v5312_v1, %v1902_v56  ;;  %v1900_v61 = vld [vmem:[#allocation3 + $0x20] sm:$0xff]  ;;  %v2130_v37 = vld [vmem:[#allocation2 + $0x24] sm:$0x1] }
 0x152   : > { %v2028_v47 = vshrl.u32 %v4372_v8, 16  ;;  %v4373_v48 = vpack.c.bf16 %v1935_v41, %v1935_v41  ;;  %v2031_v51 = vshll.u32 %v4372_v8, 16  ;;  %v1915_v0 = vmul.f32 %v5312_v1, %v1900_v61  ;;  %v1903_v2 = vld [vmem:[#allocation3 + $0x38] sm:$0xff]  ;;  %v5373_v8 = vld [vmem:[%s5836_s4 + $0x14] sm:$0xf] }
 0x153   : > { %v2046_v36 = vrot.slane %v2044_v43, 7  ;;  %v2052_v52 = vshrl.u32 %v4375_v44, 16  ;;  %v2055_v55 = vshll.u32 %v4375_v44, 16  ;;  %v1932_v9 = vadd.f32 %v5317_v3, %v1917_v60  ;;  %v1901_v10 = vld [vmem:[#allocation3 + $0x28] sm:$0xff] }
 0x154   : > { %v2030_v57 = vrot.slane %v2028_v47, 7  ;;  %v2036_v58 = vshrl.u32 %v4373_v48, 16  ;;  %v2039_v59 = vshll.u32 %v4373_v48, 16  ;;  %v1930_v14 = vadd.f32 %v5317_v3, %v1915_v0 }
 0x155   : > { %v2049_v62 = vor.u32 %v2047_v34, %v2046_v36  ;;  %v2050_v53 = vrot.slane %v2046_v36, 4  ;;  %v2054_v63 = vrot.slane %v2052_v52, 7  ;;  %v1918_v15 = vmul.f32 %v5312_v1, %v1903_v2  ;;  %v5382_v34 = vld [vmem:[%s5836_s4 + $0x18] sm:$0xf]  ;;  %v5390_v52 = vld [vmem:[#allocation2 + $0x48] sm:$0xf] }
 0x156   : > { %v2033_v49 = vor.u32 %v2031_v51, %v2030_v57  ;;  %v2034_v6 = vrot.slane %v2030_v57, 4  ;;  %v2038_v7 = vrot.slane %v2036_v58, 7  ;;  %v1940_v20 = vmax.f32 %v1932_v9, 0.0  ;;  %v2145_v57 = vld [vmem:[#allocation2 + $0x38] sm:$0xf] }
 0x157   : > { %v2057_v12 = vor.u32 %v2055_v55, %v2054_v63  ;;  %v2058_v13 = vrot.slane %v2054_v63, 4  ;;  %v1916_v21 = vmul.f32 %v5312_v1, %v1901_v10  ;;  %v1938_v24 = vmax.f32 %v1930_v14, 0.0  ;;  %v2136_v63 = vld [vmem:[#allocation2 + $0x2c] sm:$0x1] }
 0x158   : > { %v2041_v18 = vor.u32 %v2039_v59, %v2038_v7  ;;  %v2042_v19 = vrot.slane %v2038_v7, 4  ;;  %v1933_v25 = vadd.f32 %v5317_v3, %v1918_v15  ;;  %v2110_v26 = vsel %vm5195_vm11, %v2033_v49, %v2109_v11 }
 0x159   : > { %v2122_v27 = vsel %vm5195_vm11, %v2049_v62, %v2121_v5  ;;  %v4378_v32 = vpack.c.bf16 %v1940_v20, %v1940_v20  ;;  %v1931_v1 = vadd.f32 %v5317_v3, %v1916_v21  ;;  %2111 = vst [vmem:[#allocation2 + $0x8] sm:$0xf] %v2110_v26  ;;  %v2128_v35 = vsel %vm5195_vm11, %v2057_v12, %v2127_v17  ;;  %v2154_v20 = vld [vmem:[#allocation2 + $0x44] sm:$0x1] }
 0x15a   : > { %v2116_v33 = vsel %vm5195_vm11, %v2041_v18, %v2115_v16  ;;  %2123 = vst [vmem:[#allocation2 + $0x18] sm:$0xf] %v2122_v27  ;;  %v4376_v41 = vpack.c.bf16 %v1938_v24, %v1938_v24  ;;  %v1941_v43 = vmax.f32 %v1933_v25, 0.0  ;;  %2129 = vst [vmem:[#allocation2 + $0x20] sm:$0xf] %v2128_v35  ;;  %v2113_v3 = vsel %vm5168_vm8, %v2034_v6, %v2112_v54 }
 0x15b   : > { %2117 = vst [vmem:[#allocation2 + $0x10] sm:$0xf] %v2116_v33  ;;  %v2119_v44 = vsel %vm5168_vm8, %v2042_v19, %v2118_v23  ;;  %v2076_v47 = vshrl.u32 %v4378_v32, 16  ;;  %v1939_v48 = vmax.f32 %v1931_v1, 0.0  ;;  %2114 = vst [vmem:[#allocation2 + $0xc] sm:$0x1] %v2113_v3  ;;  %v2125_v36 = vsel %vm5168_vm8, %v2050_v53, %v2124_v28 }
 0x15c   : > { %2120 = vst [vmem:[#allocation2 + $0x14] sm:$0x1] %v2119_v44  ;;  %v5388_v51 = vsel %vm2197_vm12, %v5363_v29, 0  ;;  %v2060_v55 = vshrl.u32 %v4376_v41, 16  ;;  %v4379_v56 = vpack.c.bf16 %v1941_v43, %v1941_v43  ;;  %2126 = vst [vmem:[#allocation2 + $0x1c] sm:$0x1] %v2125_v36  ;;  %v2131_v58 = vsel %vm5168_vm8, %v2058_v13, %v2130_v37 }
 0x15d   : > { %v5396_v59 = vsel %vm2197_vm12, %v5373_v8, 0  ;;  %v2078_v60 = vrot.slane %v2076_v47, 7  ;;  %v2079_v61 = vshll.u32 %v4378_v32, 16  ;;  %v4377_v62 = vpack.c.bf16 %v1939_v48, %v1939_v48  ;;  %v2133_v53 = vld [vmem:[#allocation2 + $0x28] sm:$0xf] }
 0x15e   : > { %2132 = vst [vmem:[#allocation2 + $0x24] sm:$0x1] %v2131_v58  ;;  %v5400_v0 = vsel %vm2197_vm12, %v5382_v34, 0  ;;  %v2062_v2 = vrot.slane %v2060_v55, 7  ;;  %v2063_v5 = vshll.u32 %v4376_v41, 16  ;;  %v2084_v49 = vshrl.u32 %v4379_v56, 16 }
 0x15f   : > { %v2148_v6 = vld [vmem:[#allocation2 + $0x3c] sm:$0x1]  ;;  %v3505_v7 = vshrl.u32 %v5390_v52, 16  ;;  %v2081_v9 = vor.u32 %v2079_v61, %v2078_v60  ;;  %v2082_v10 = vrot.slane %v2078_v60, 4  ;;  %v2087_v11 = vshll.u32 %v4379_v56, 16 }
 0x160   : > { %v2068_v12 = vshrl.u32 %v4377_v62, 16  ;;  %v2151_v13 = vld [vmem:[#allocation2 + $0x40] sm:$0xf]  ;;  %v2065_v14 = vor.u32 %v2063_v5, %v2062_v2  ;;  %v2066_v15 = vrot.slane %v2062_v2, 4  ;;  %v2086_v16 = vrot.slane %v2084_v49, 7 }
 0x161   : > { %v4755_v17 = vld [vmem:[#allocation2] ss:$8 sps:$4 sm:$0xff]   ;;  %v2139_v18 = vld [vmem:[#allocation2 + $0x30] sm:$0xf]  ;;  %v2142_v19 = vld [vmem:[#allocation2 + $0x34] sm:$0x1]  ;;  %v2146_v23 = vsel %vm5195_vm11, %v2081_v9, %v2145_v57  ;;  %v2149_v24 = vsel %vm5168_vm8, %v2082_v10, %v2148_v6 }
 0x162   : > { %v2070_v21 = vrot.slane %v2068_v12, 7  ;;  %v2071_v54 = vshll.u32 %v4377_v62, 16  ;;  %v2089_v25 = vor.u32 %v2087_v11, %v2086_v16  ;;  %v2090_v26 = vrot.slane %v2086_v16, 4  ;;  %4568 = vmatprep.mubr.msk.bf16.mxu1 %vm487_vm13, %v4755_v17  ;;  %v4756_v27 = vld [vmem:[#allocation2 + $0x10] ss:$8 sps:$4 sm:$0xff]  }
 0x163   : > { %v2134_v28 = vsel %vm5195_vm11, %v2065_v14, %v2133_v53  ;;  %2147 = vst [vmem:[#allocation2 + $0x38] sm:$0xf] %v2146_v23  ;;  %v2137_v32 = vsel %vm5168_vm8, %v2066_v15, %v2136_v63  ;;  %2150 = vst [vmem:[#allocation2 + $0x3c] sm:$0x1] %v2149_v24  ;;  %v2276_v35 = vld [vmem:[#allocation2 + $0x8] sm:$0xf]  ;;  %4569 = vmatmul.mubr.msk.bf16.vlgmr.msra.gmra.mrb[36].mxu1 %vm487_vm13, %v4756_v27 }
 0x164   : > { %v2073_v1 = vor.u32 %v2071_v54, %v2070_v21  ;;  %v2074_v33 = vrot.slane %v2070_v21, 4  ;;  %2135 = vst [vmem:[#allocation2 + $0x28] sm:$0xf] %v2134_v28  ;;  %v2277_v37 = vld [vmem:[#allocation2 + $0xc] sm:$0x1]  ;;  %v3508_v41 = vshll.u32 %v5390_v52, 16  ;;  %v2152_v48 = vsel %vm5195_vm11, %v2089_v25, %v2151_v13  ;;  %4587 = vmatpush3.bf16.msra.mxu1 %v5337_v38 }
 0x165   : > { %2138 = vst [vmem:[#allocation2 + $0x2c] sm:$0x1] %v2137_v32  ;;  %v2305_v43 = vshrl.u32 %v2276_v35, 16  ;;  %v2308_v3 = vshll.u32 %v2276_v35, 16  ;;  %v2314_v44 = vshll.u32 %v2277_v37, 16  ;;  %v2155_v60 = vsel %vm5168_vm8, %v2090_v26, %v2154_v20  ;;  %4682 = vmatprep.subr.msk.bf16.mxu1 %vm2197_vm12, %v5363_v29 }
 0x166   : > { %v2278_v47 = vld [vmem:[#allocation2 + $0x10] sm:$0xf]  ;;  %v2140_v36 = vsel %vm5195_vm11, %v2073_v1, %v2139_v18  ;;  %v2279_v55 = vld [vmem:[#allocation2 + $0x14] sm:$0x1]  ;;  %v2280_v56 = vld [vmem:[#allocation2 + $0x18] sm:$0xf]  ;;  %v2143_v58 = vsel %vm5168_vm8, %v2074_v33, %v2142_v19  ;;  %v2303_v18 = vsel %vm5001_vm4, %v5341_v45, %v5343_v46  ;;  %v2556_v21 = vsel %vm5427_vm2, %v4267_v39, %v2555_v42 }
 0x167   : > { %v2281_v57 = vld [vmem:[#allocation2 + $0x1c] sm:$0x1]  ;;  %2153 = vst [vmem:[#allocation2 + $0x40] sm:$0xf] %v2152_v48  ;;  %v2307_v61 = vrot.slane %v2305_v43, 4  ;;  %v2310_v62 = vrot.slane %v2308_v3, 5 }
 0x168   : > { %v2316_v53 = vrot.slane %v2314_v44, 5  ;;  %2141 = vst [vmem:[#allocation2 + $0x30] sm:$0xf] %v2140_v36  ;;  %v2319_v63 = vshrl.u32 %v2278_v47, 16  ;;  %v2520_v2 = vld [vmem:[#allocation2 + $0x8] sm:$0xe] }
 0x169   : > { %2144 = vst [vmem:[#allocation2 + $0x34] sm:$0x1] %v2143_v58  ;;  %2156 = vst [vmem:[#allocation2 + $0x44] sm:$0x1] %v2155_v60  ;;  %v2322_v22 = vshll.u32 %v2278_v47, 16  ;;  %v2328_v38 = vshll.u32 %v2279_v55, 16  ;;  %v2311_v9 = vor.u32 %v2310_v62, %v2307_v61 }
 0x16a   : > { %v2333_v5 = vshrl.u32 %v2280_v56, 16  ;;  %v2336_v49 = vshll.u32 %v2280_v56, 16  ;;  %v2521_v6 = vld [vmem:[#allocation2 + $0xc] sm:$0x1]  ;;  %v2321_v10 = vrot.slane %v2319_v63, 4  ;;  %v2342_v11 = vshll.u32 %v2281_v57, 16 }
 0x16b   : > { %v4268_v12 = vrot.slane %v2520_v2, 9  ;;  %v2282_v13 = vld [vmem:[#allocation2 + $0x20] sm:$0xf]  ;;  %v2324_v14 = vrot.slane %v2322_v22, 5  ;;  %v2330_v15 = vrot.slane %v2328_v38, 5  ;;  %v2312_v19 = vrot.slane %v2311_v9, 4 }
 0x16c   : > { %v2335_v29 = vrot.slane %v2333_v5, 4  ;;  %v2338_v16 = vrot.slane %v2336_v49, 5  ;;  %v4757_v17 = vld [vmem:[#allocation2 + $0x20] ss:$8 sps:$4 sm:$0xff]   ;;  %v2344_v20 = vrot.slane %v2342_v11, 5  ;;  %v2559_v24 = vrot.slane %v2521_v6, 5 }
 0x16d   : > { %v2325_v54 = vor.u32 %v2324_v14, %v2321_v10  ;;  %v2283_v25 = vld [vmem:[#allocation2 + $0x24] sm:$0x1]  ;;  %v2284_v26 = vld [vmem:[#allocation2 + $0x28] sm:$0xf]  ;;  %v2347_v27 = vshrl.u32 %v2282_v13, 16  ;;  %4572 = vmatprep.mubr.msk.bf16.mxu1 %vm487_vm13, %v4757_v17  ;;  %v2317_v45 = vsel %vm5001_vm4, %v2312_v19, %v2316_v53  ;;  %v2350_v28 = vshll.u32 %v2282_v13, 16 }
 0x16e   : > { %v2339_v23 = vor.u32 %v2338_v16, %v2335_v29  ;;  %v2285_v46 = vld [vmem:[#allocation2 + $0x2c] sm:$0x1]  ;;  %v2356_v32 = vshll.u32 %v2283_v25, 16  ;;  %v2361_v31 = vshrl.u32 %v2284_v26, 16  ;;  %v4259_v1 = vcombine.low %v2303_v18, %v2317_v45  ;;  %v2522_v44 = vld [vmem:[#allocation2 + $0x10] sm:$0xe] }
 0x16f   : > { %v4758_v30 = vld [vmem:[#allocation2 + $0x30] ss:$8 sps:$4 sm:$0xff]   ;;  %v2326_v33 = vrot.slane %v2325_v54, 4  ;;  %v2560_v39 = vsel %vm5427_vm2, %v4268_v12, %v2559_v24  ;;  %v2349_v37 = vrot.slane %v2347_v27, 4  ;;  %v2352_v43 = vrot.slane %v2350_v28, 5 }
 0x170   : > { %v2340_v35 = vrot.slane %v2339_v23, 4  ;;  %v4275_v42 = vcombine.low %v2556_v21, %v2560_v39  ;;  %v2358_v3 = vrot.slane %v2356_v32, 5  ;;  %4578 = vmatprep.mubr.msk.bf16.mxu0 %vm487_vm13, %v4259_v1  ;;  %4573 = vmatmul.mubr.msk.bf16.gmra.mrb[40].mxu1 %vm487_vm13, %v4758_v30  ;;  %v2363_v36 = vrot.slane %v2361_v31, 4  ;;  %v2523_v56 = vld [vmem:[#allocation2 + $0x14] sm:$0x1] }
 0x171   : > { %v2331_v47 = vsel %vm5001_vm4, %v2326_v33, %v2330_v15  ;;  %v2364_v55 = vshll.u32 %v2284_v26, 16  ;;  %v2524_v57 = vld [vmem:[#allocation2 + $0x18] sm:$0xe]  ;;  %v2353_v60 = vor.u32 %v2352_v43, %v2349_v37  ;;  %v2370_v61 = vshll.u32 %v2285_v46, 16  ;;  %v2525_v62 = vld [vmem:[#allocation2 + $0x1c] sm:$0x1] }
 0x172   : > { %v2345_v48 = vsel %vm5001_vm4, %v2340_v35, %v2344_v20  ;;  %4588 = vmatprep.mubr.msk.bf16.mxu1 %vm487_vm13, %v4275_v42  ;;  %v4269_v53 = vrot.slane %v2522_v44, 9  ;;  %v2286_v63 = vld [vmem:[#allocation2 + $0x30] sm:$0xf]  ;;  %v2563_v22 = vrot.slane %v2523_v56, 5  ;;  %v4270_v38 = vrot.slane %v2524_v57, 9 }
 0x173   : > { %v4260_v58 = vcombine.low %v2331_v47, %v2345_v48  ;;  %v2366_v2 = vrot.slane %v2364_v55, 5  ;;  %v2567_v5 = vrot.slane %v2525_v62, 5  ;;  %v2287_v49 = vld [vmem:[#allocation2 + $0x34] sm:$0x1]  ;;  %v2354_v6 = vrot.slane %v2353_v60, 4 }
 0x174   : > { %v2372_v9 = vrot.slane %v2370_v61, 5  ;;  %v2288_v10 = vld [vmem:[#allocation2 + $0x38] sm:$0xf]  ;;  %v2289_v11 = vld [vmem:[#allocation2 + $0x3c] sm:$0x1]  ;;  %v2564_v13 = vsel %vm5427_vm2, %v4269_v53, %v2563_v22  ;;  %v2375_v15 = vshrl.u32 %v2286_v63, 16 }
 0x175   : > { %4579 = vmatmul.mubr.msk.bf16.vlgmr.msra.gmra.mrb[36].mxu0 %vm487_vm13, %v4260_v58  ;;  %v2367_v12 = vor.u32 %v2366_v2, %v2363_v36  ;;  %v2568_v14 = vsel %vm5427_vm2, %v4270_v38, %v2567_v5  ;;  %v2526_v29 = vld [vmem:[#allocation2 + $0x20] sm:$0xe]  ;;  %v2527_v16 = vld [vmem:[#allocation2 + $0x24] sm:$0x1]  ;;  %v2378_v18 = vshll.u32 %v2286_v63, 16  ;;  %v2384_v19 = vshll.u32 %v2287_v49, 16 }
 0x176   : > { %4597 = vmatpush3.bf16.msra.mxu0 %v5347_v50  ;;  %v4276_v17 = vcombine.low %v2564_v13, %v2568_v14  ;;  %v2528_v20 = vld [vmem:[#allocation2 + $0x28] sm:$0xe]  ;;  %v2529_v21 = vld [vmem:[#allocation2 + $0x2c] sm:$0x1]  ;;  %v2377_v50 = vrot.slane %v2375_v15, 4  ;;  %v2389_v23 = vshrl.u32 %v2288_v10, 16  ;;  %v2359_v25 = vsel %vm5001_vm4, %v2354_v6, %v2358_v3 }
 0x177   : > { %4683 = vmatprep.subr.msk.bf16.mxu0 %vm2197_vm12, %v5373_v8  ;;  %v2368_v54 = vrot.slane %v2367_v12, 4  ;;  %v2392_v24 = vshll.u32 %v2288_v10, 16  ;;  %v2380_v26 = vrot.slane %v2378_v18, 5  ;;  %v2398_v27 = vshll.u32 %v2289_v11, 16  ;;  %v2530_v35 = vld [vmem:[#allocation2 + $0x30] sm:$0xe] }
 0x178   : > { %v4271_v45 = vrot.slane %v2526_v29, 9  ;;  %4589 = vmatmul.mubr.msk.bf16.vlgmr.msra.gmra.mrb[44].mxu1 %vm487_vm13, %v4276_v17  ;;  %v2391_v28 = vrot.slane %v2389_v23, 4  ;;  %v2571_v31 = vrot.slane %v2527_v16, 5  ;;  %v2386_v30 = vrot.slane %v2384_v19, 5  ;;  %v2531_v39 = vld [vmem:[#allocation2 + $0x34] sm:$0x1] }
 0x179   : > { %v2373_v46 = vsel %vm5001_vm4, %v2368_v54, %v2372_v9  ;;  %v2394_v32 = vrot.slane %v2392_v24, 5  ;;  %v2381_v8 = vor.u32 %v2380_v26, %v2377_v50  ;;  %v4272_v33 = vrot.slane %v2528_v20, 9  ;;  %4607 = vmatpush3.bf16.msra.mxu1 %v5388_v51  ;;  %v2532_v43 = vld [vmem:[#allocation2 + $0x38] sm:$0xe]  ;;  %v2533_v3 = vld [vmem:[#allocation2 + $0x3c] sm:$0x1] }
 0x17a   : > { %v4261_v1 = vcombine.low %v2359_v25, %v2373_v46  ;;  %v2575_v37 = vrot.slane %v2529_v21, 5  ;;  %v4273_v44 = vrot.slane %v2530_v35, 9  ;;  %4684 = vmatprep.subr.msk.bf16.mxu1 %vm2197_vm12, %v5382_v34  ;;  %v2579_v48 = vrot.slane %v2531_v39, 5  ;;  %v5477_v60 = vld [vmem:[%s5836_s4 + $0x1c] sm:$0xf] }
 0x17b   : > { %v2395_v42 = vor.u32 %v2394_v32, %v2391_v28  ;;  %v2382_v47 = vrot.slane %v2381_v8, 4  ;;  %v4274_v36 = vrot.slane %v2532_v43, 9  ;;  %v2583_v55 = vrot.slane %v2533_v3, 5  ;;  %v2833_v63 = vld [vmem:[#allocation2 + $0x8] sm:$0xf] }
 0x17c   : > { %4582 = vmatprep.mubr.msk.bf16.mxu0 %vm487_vm13, %v4261_v1  ;;  %v2400_v57 = vrot.slane %v2398_v27, 5  ;;  %v2572_v51 = vsel %vm5427_vm2, %v4271_v45, %v2571_v31  ;;  %v2576_v58 = vsel %vm5427_vm2, %v4272_v33, %v2575_v37  ;;  %v2580_v62 = vsel %vm5427_vm2, %v4273_v44, %v2579_v48  ;;  %v2834_v2 = vld [vmem:[#allocation2 + $0xc] sm:$0x1]  ;;  %v2835_v22 = vld [vmem:[#allocation2 + $0x10] sm:$0xf] }
 0x17d   : > { %v2396_v56 = vrot.slane %v2395_v42, 4  ;;  %v2387_v34 = vsel %vm5001_vm4, %v2382_v47, %v2386_v30  ;;  %v4277_v61 = vcombine.low %v2572_v51, %v2576_v58  ;;  %v2584_v53 = vsel %vm5427_vm2, %v4274_v36, %v2583_v55  ;;  %v2836_v49 = vld [vmem:[#allocation2 + $0x14] sm:$0x1]  ;;  %v4759_v14 = vld [vmem:[#allocation2 + $0x8] ss:$8 sps:$4 sm:$0xff]  }
 0x17e   : > { %v4278_v5 = vcombine.low %v2580_v62, %v2584_v53  ;;  %v2850_v6 = vshrl.u32 %v2833_v63, 16  ;;  %v2853_v9 = vshll.u32 %v2833_v63, 16  ;;  %v2859_v11 = vshll.u32 %v2834_v2, 16  ;;  %v2837_v21 = vld [vmem:[#allocation2 + $0x18] sm:$0xf] }
 0x17f   : > { %v2401_v38 = vsel %vm5001_vm4, %v2396_v56, %v2400_v57  ;;  %4592 = vmatprep.mubr.msk.bf16.mxu1 %vm487_vm13, %v4277_v61  ;;  %v2864_v12 = vshrl.u32 %v2835_v22, 16  ;;  %v2867_v13 = vshll.u32 %v2835_v22, 16  ;;  %v5491_v16 = vsel %vm2197_vm12, %v5477_v60, 0  ;;  %v5501_v54 = vld [vmem:[%s5836_s4 + $0x20] sm:$0xf] }
 0x180   : > { %v4262_v10 = vcombine.low %v2387_v34, %v2401_v38  ;;  %4593 = vmatmul.mubr.msk.bf16.gmra.mrb[48].mxu1 %vm487_vm13, %v4278_v5  ;;  %v2852_v15 = vrot.slane %v2850_v6, 4  ;;  %v2855_v29 = vrot.slane %v2853_v9, 5  ;;  %v5495_v17 = vrot.slane %v3505_v7, 4  ;;  %v2838_v24 = vld [vmem:[#allocation2 + $0x1c] sm:$0x1] }
 0x181   : > { %v2866_v18 = vrot.slane %v2864_v12, 4  ;;  %v2869_v19 = vrot.slane %v2867_v13, 5  ;;  %v2873_v20 = vshll.u32 %v2836_v49, 16  ;;  %v5505_v50 = vrot.slane %v3508_v41, 5  ;;  %v2839_v25 = vld [vmem:[#allocation2 + $0x20] sm:$0xf] }
 0x182   : > { %4583 = vmatmul.mubr.msk.bf16.gmra.mrb[40].mxu0 %vm487_vm13, %v4262_v10  ;;  %v2856_v23 = vor.u32 %v2855_v29, %v2852_v15  ;;  %v2861_v7 = vrot.slane %v2859_v11, 5  ;;  %v2878_v26 = vshrl.u32 %v2837_v21, 16  ;;  %v2840_v45 = vld [vmem:[#allocation2 + $0x24] sm:$0x1]  ;;  %v2881_v46 = vshll.u32 %v2837_v21, 16 }
 0x183   : > { %4598 = vmatprep.mubr.msk.bf16.mxu0 %vm487_vm13, %v4759_v14  ;;  %v2870_v27 = vor.u32 %v2869_v19, %v2866_v18  ;;  %v2887_v28 = vshll.u32 %v2838_v24, 16  ;;  %v2892_v32 = vshrl.u32 %v2839_v25, 16  ;;  %v2895_v8 = vshll.u32 %v2839_v25, 16  ;;  %v4760_v33 = vld [vmem:[#allocation2 + $0x18] ss:$8 sps:$4 sm:$0xff]  }
 0x184   : > { %v2857_v31 = vrot.slane %v2856_v23, 4  ;;  %v2880_v1 = vrot.slane %v2878_v26, 4  ;;  %v2901_v30 = vshll.u32 %v2840_v45, 16  ;;  %v2875_v41 = vrot.slane %v2873_v20, 5  ;;  %v2841_v3 = vld [vmem:[#allocation2 + $0x28] sm:$0xf] }
 0x185   : > { %v2871_v52 = vrot.slane %v2870_v27, 4  ;;  %v2883_v35 = vrot.slane %v2881_v46, 5  ;;  %v2894_v39 = vrot.slane %v2892_v32, 4  ;;  %v2889_v42 = vrot.slane %v2887_v28, 5  ;;  %v2842_v55 = vld [vmem:[#allocation2 + $0x2c] sm:$0x1] }
 0x186   : > { %v2897_v37 = vrot.slane %v2895_v8, 5  ;;  %v2903_v43 = vrot.slane %v2901_v30, 5  ;;  %v5510_v44 = vsel %vm2197_vm12, %v5501_v54, 0  ;;  %v2862_v47 = vsel %vm5001_vm4, %v2857_v31, %v2861_v7  ;;  %v2843_v56 = vld [vmem:[#allocation2 + $0x30] sm:$0xf] }
 0x187   : > { %v2876_v48 = vsel %vm5001_vm4, %v2871_v52, %v2875_v41  ;;  %v2884_v36 = vor.u32 %v2883_v35, %v2880_v1  ;;  %v2844_v57 = vld [vmem:[#allocation2 + $0x34] sm:$0x1]  ;;  %v4761_v58 = vld [vmem:[#allocation2 + $0x28] ss:$8 sps:$4 sm:$0xff]   ;;  %v2906_v61 = vshrl.u32 %v2841_v3, 16  ;;  %v2909_v62 = vshll.u32 %v2841_v3, 16 }
 0x188   : > { %v4291_v51 = vcombine.low %v2862_v47, %v2876_v48  ;;  %v2898_v34 = vor.u32 %v2897_v37, %v2894_v39  ;;  %v3077_v53 = vld [vmem:[#allocation2 + $0x8] sm:$0xe]  ;;  %v2915_v2 = vshll.u32 %v2842_v55, 16  ;;  %v2920_v22 = vshrl.u32 %v2843_v56, 16  ;;  %v3078_v5 = vld [vmem:[#allocation2 + $0xc] sm:$0x1] }
 0x189   : > { %v2885_v63 = vrot.slane %v2884_v36, 4  ;;  %v2923_v38 = vshll.u32 %v2843_v56, 16  ;;  %v2908_v6 = vrot.slane %v2906_v61, 4  ;;  %v2911_v9 = vrot.slane %v2909_v62, 5  ;;  %v3079_v11 = vld [vmem:[#allocation2 + $0x10] sm:$0xe] }
 0x18a   : > { %4599 = vmatmul.mubr.msk.bf16.vlgmr.msra.gmra.mrb[44].mxu0 %vm487_vm13, %v4760_v33  ;;  %4608 = vmatprep.mubr.msk.bf16.mxu1 %vm487_vm13, %v4291_v51  ;;  %v2899_v49 = vrot.slane %v2898_v34, 4  ;;  %v2929_v10 = vshll.u32 %v2844_v57, 16  ;;  %v2922_v13 = vrot.slane %v2920_v22, 4  ;;  %v3080_v15 = vld [vmem:[#allocation2 + $0x14] sm:$0x1]  ;;  %v2917_v20 = vrot.slane %v2915_v2, 5 }
 0x18b   : > { %4602 = vmatprep.mubr.msk.bf16.mxu0 %vm487_vm13, %v4761_v58  ;;  %v2890_v12 = vsel %vm5001_vm4, %v2885_v63, %v2889_v42  ;;  %v2925_v14 = vrot.slane %v2923_v38, 5  ;;  %4617 = vmatpush3.bf16.msra.mxu0 %v5396_v59  ;;  %v2845_v29 = vld [vmem:[#allocation2 + $0x38] sm:$0xf]  ;;  %v2912_v19 = vor.u32 %v2911_v9, %v2908_v6  ;;  %v4299_v21 = vrot.slane %v3077_v53, 9  ;;  %v2846_v23 = vld [vmem:[#allocation2 + $0x3c] sm:$0x1] }
 0x18c   : > { %v2904_v18 = vsel %vm5001_vm4, %v2899_v49, %v2903_v43  ;;  %v2847_v7 = vld [vmem:[#allocation2 + $0x40] sm:$0xf]  ;;  %4685 = vmatprep.subr.msk.bf16.mxu0 %vm2197_vm12, %v5477_v60  ;;  %v3111_v27 = vrot.slane %v3078_v5, 5  ;;  %v4300_v45 = vrot.slane %v3079_v11, 9  ;;  %v2848_v46 = vld [vmem:[#allocation2 + $0x44] sm:$0x1] }
 0x18d   : > { %v4292_v24 = vcombine.low %v2890_v12, %v2904_v18  ;;  %v4762_v25 = vld [vmem:[#allocation2 + $0x38] ss:$8 sps:$4 sm:$0xff]   ;;  %v2926_v26 = vor.u32 %v2925_v14, %v2922_v13  ;;  %v2913_v59 = vrot.slane %v2912_v19, 4  ;;  %v3115_v28 = vrot.slane %v3080_v15, 5  ;;  %v3082_v8 = vld [vmem:[#allocation2 + $0x1c] sm:$0x1] }
 0x18e   : > { %v2934_v32 = vshrl.u32 %v2845_v29, 16  ;;  %v2937_v31 = vshll.u32 %v2845_v29, 16  ;;  %v3081_v1 = vld [vmem:[#allocation2 + $0x18] sm:$0xe]  ;;  %v2931_v33 = vrot.slane %v2929_v10, 5  ;;  %v2943_v52 = vshll.u32 %v2846_v23, 16 }
 0x18f   : > { %4609 = vmatmul.mubr.msk.bf16.vlgmr.msra.gmra.mrb[52].mxu1 %vm487_vm13, %v4292_v24  ;;  %v2927_v30 = vrot.slane %v2926_v26, 4  ;;  %v2948_v41 = vshrl.u32 %v2847_v7, 16  ;;  %v3083_v35 = vld [vmem:[#allocation2 + $0x20] sm:$0xe]  ;;  %v3112_v60 = vsel %vm5427_vm2, %v4299_v21, %v3111_v27  ;;  %v3116_v39 = vsel %vm5427_vm2, %v4300_v45, %v3115_v28  ;;  %v3084_v43 = vld [vmem:[#allocation2 + $0x24] sm:$0x1] }
 0x190   : > { %v2936_v42 = vrot.slane %v2934_v32, 4  ;;  %v2939_v37 = vrot.slane %v2937_v31, 5  ;;  %4627 = vmatpush3.bf16.msra.mxu1 %v5400_v0  ;;  %v2918_v3 = vsel %vm5001_vm4, %v2913_v59, %v2917_v20  ;;  %v4307_v48 = vcombine.low %v3112_v60, %v3116_v39  ;;  %v3085_v58 = vld [vmem:[#allocation2 + $0x28] sm:$0xe]  ;;  %v3086_v34 = vld [vmem:[#allocation2 + $0x2c] sm:$0x1] }
 0x191   : > { %v2932_v47 = vsel %vm5001_vm4, %v2927_v30, %v2931_v33  ;;  %v2950_v36 = vrot.slane %v2948_v41, 4  ;;  %4686 = vmatprep.subr.msk.bf16.mxu1 %vm2197_vm12, %v5501_v54  ;;  %v2951_v57 = vshll.u32 %v2847_v7, 16  ;;  %v2957_v51 = vshll.u32 %v2848_v46, 16  ;;  %v3087_v63 = vld [vmem:[#allocation2 + $0x30] sm:$0xe] }
 0x192   : > { %4603 = vmatmul.mubr.msk.bf16.gmra.mrb[48].mxu0 %vm487_vm13, %v4762_v25  ;;  %v4293_v55 = vcombine.low %v2918_v3, %v2932_v47  ;;  %v2940_v56 = vor.u32 %v2939_v37, %v2936_v42  ;;  %v4301_v0 = vrot.slane %v3081_v1, 9  ;;  %v3119_v61 = vrot.slane %v3082_v8, 5  ;;  %v3088_v5 = vld [vmem:[#allocation2 + $0x34] sm:$0x1]  ;;  %v3089_v14 = vld [vmem:[#allocation2 + $0x38] sm:$0xe] }
 0x193   : > { %4618 = vmatprep.mubr.msk.bf16.mxu0 %vm487_vm13, %v4307_v48  ;;  %v4302_v62 = vrot.slane %v3083_v35, 9  ;;  %v3123_v53 = vrot.slane %v3084_v43, 5  ;;  %v2945_v22 = vrot.slane %v2943_v52, 5  ;;  %v2953_v38 = vrot.slane %v2951_v57, 5  ;;  %v3090_v29 = vld [vmem:[#allocation2 + $0x3c] sm:$0x1] }
 0x194   : > { %4612 = vmatprep.mubr.msk.bf16.mxu1 %vm487_vm13, %v4293_v55  ;;  %v2941_v2 = vrot.slane %v2940_v56, 4  ;;  %v4303_v54 = vrot.slane %v3085_v58, 9  ;;  %v3127_v6 = vrot.slane %v3086_v34, 5  ;;  %v4304_v9 = vrot.slane %v3087_v63, 9  ;;  %v3091_v18 = vld [vmem:[#allocation2 + $0x40] sm:$0xe] }
 0x195   : > { %v3124_v49 = vsel %vm5427_vm2, %v4302_v62, %v3123_v53  ;;  %v2954_v10 = vor.u32 %v2953_v38, %v2950_v36  ;;  %v2959_v11 = vrot.slane %v2957_v51, 5  ;;  %v3120_v12 = vsel %vm5427_vm2, %v4301_v0, %v3119_v61  ;;  %v3092_v19 = vld [vmem:[#allocation2 + $0x44] sm:$0x1]  ;;  %v5549_v24 = vld [vmem:[#allocation2 + $0x4c] sm:$0x1] }
 0x196   : > { %v3131_v13 = vrot.slane %v3088_v5, 5  ;;  %v4308_v15 = vcombine.low %v3120_v12, %v3124_v49  ;;  %v3128_v21 = vsel %vm5427_vm2, %v4303_v54, %v3127_v6  ;;  %v4305_v7 = vrot.slane %v3089_v14, 9  ;;  %v5554_v25 = vld [vmem:[%s5839_s7] sm:$0x3]  ;;  %v3390_v32 = vld [vmem:[#allocation2 + $0x10] sm:$0xf] }
 0x197   : > { %v2955_v20 = vrot.slane %v2954_v10, 4  ;;  %v3135_v27 = vrot.slane %v3090_v29, 5  ;;  %v4306_v45 = vrot.slane %v3091_v18, 9  ;;  %v3139_v46 = vrot.slane %v3092_v19, 5  ;;  %v3391_v31 = vld [vmem:[#allocation2 + $0x14] sm:$0x1] }
 0x198   : > { %v3132_v23 = vsel %vm5427_vm2, %v4304_v9, %v3131_v13  ;;  %v2946_v59 = vsel %vm5001_vm4, %v2941_v2, %v2945_v22  ;;  %v3392_v1 = vld [vmem:[#allocation2 + $0x18] sm:$0xf]  ;;  %v3393_v30 = vld [vmem:[#allocation2 + $0x1c] sm:$0x1]  ;;  %v3407_v33 = vshrl.u32 %v3390_v32, 16  ;;  %v3410_v52 = vshll.u32 %v3390_v32, 16 }
 0x199   : > { %v4309_v26 = vcombine.low %v3128_v21, %v3132_v23  ;;  %v2960_v28 = vsel %vm5001_vm4, %v2955_v20, %v2959_v11  ;;  %v3511_v41 = vor.u32 %v5505_v50, %v5495_v17  ;;  %v4763_v35 = vld [vmem:[#allocation2 + $0x10] ss:$8 sps:$4 sm:$0xff]   ;;  %v3140_v60 = vsel %vm5427_vm2, %v4306_v45, %v3139_v46  ;;  %v3394_v47 = vld [vmem:[#allocation2 + $0x20] sm:$0xf]  ;;  %v3395_v55 = vld [vmem:[#allocation2 + $0x24] sm:$0x1] }
 0x19a   : > { %4619 = vmatmul.mubr.msk.bf16.vlgmr.msra.gmra.mrb[52].mxu0 %vm487_vm13, %v4308_v15  ;;  %v4294_v8 = vcombine.low %v2946_v59, %v2960_v28  ;;  %v3416_v39 = vshll.u32 %v3391_v31, 16  ;;  %v3421_v42 = vshrl.u32 %v3392_v1, 16  ;;  %v3424_v37 = vshll.u32 %v3392_v1, 16  ;;  %v3396_v58 = vld [vmem:[#allocation2 + $0x28] sm:$0xf] }
 0x19b   : > { %4637 = vmatpush3.bf16.msra.mxu0 %v5491_v16  ;;  %4622 = vmatprep.mubr.msk.bf16.mxu0 %vm487_vm13, %v4309_v26  ;;  %v3409_v16 = vrot.slane %v3407_v33, 4  ;;  %v3412_v43 = vrot.slane %v3410_v52, 5  ;;  %v3430_v3 = vshll.u32 %v3393_v30, 16  ;;  %v3514_v48 = vshll.u32 %v5549_v24, 16  ;;  %v3397_v34 = vld [vmem:[#allocation2 + $0x2c] sm:$0x1] }
 0x19c   : > { %4687 = vmatprep.subr.msk.bf16.mxu0 %vm418_vm0, %v5554_v25  ;;  %4613 = vmatmul.mubr.msk.bf16.gmra.mrb[56].mxu1 %vm487_vm13, %v4294_v8  ;;  %v3136_v17 = vsel %vm5427_vm2, %v4305_v7, %v3135_v27  ;;  %v3423_v50 = vrot.slane %v3421_v42, 4  ;;  %v3426_v36 = vrot.slane %v3424_v37, 5  ;;  %v3435_v56 = vshrl.u32 %v3394_v47, 16  ;;  %v3634_v22 = vld [vmem:[#allocation2 + $0x10] sm:$0xe] }
 0x19d   : > { %4628 = vmatprep.mubr.msk.bf16.mxu1 %vm487_vm13, %v4763_v35  ;;  %v4310_v57 = vcombine.low %v3136_v17, %v3140_v60  ;;  %v3413_v51 = vor.u32 %v3412_v43, %v3409_v16  ;;  %v3438_v0 = vshll.u32 %v3394_v47, 16  ;;  %v5574_v61 = vrot.slane %v3511_v41, 4  ;;  %v4764_v38 = vld [vmem:[#allocation2 + $0x20] ss:$8 sps:$4 sm:$0xff]   ;;  %v3635_v9 = vld [vmem:[#allocation2 + $0x14] sm:$0x1] }
 0x19e   : > { %v3418_v62 = vrot.slane %v3416_v39, 5  ;;  %v3427_v53 = vor.u32 %v3426_v36, %v3423_v50  ;;  %v3437_v63 = vrot.slane %v3435_v56, 4  ;;  %v3449_v2 = vshrl.u32 %v3396_v58, 16  ;;  %v4765_v10 = vld [vmem:[#allocation2 + $0x30] ss:$8 sps:$4 sm:$0xff]  }
 0x19f   : > { %v3414_v5 = vrot.slane %v3413_v51, 4  ;;  %v3432_v54 = vrot.slane %v3430_v3, 5  ;;  %v3440_v49 = vrot.slane %v3438_v0, 5  ;;  %v3452_v6 = vshll.u32 %v3396_v58, 16  ;;  %v3636_v15 = vld [vmem:[#allocation2 + $0x18] sm:$0xe] }
 0x1a0   : > { %v3428_v11 = vrot.slane %v3427_v53, 4  ;;  %v3444_v12 = vshll.u32 %v3395_v55, 16  ;;  %v3451_v13 = vrot.slane %v3449_v2, 4  ;;  %v3458_v14 = vshll.u32 %v3397_v34, 16  ;;  %v3637_v20 = vld [vmem:[#allocation2 + $0x1c] sm:$0x1] }
 0x1a1   : > { %v3419_v29 = vsel %vm5001_vm4, %v3414_v5, %v3418_v62  ;;  %v3441_v18 = vor.u32 %v3440_v49, %v3437_v63  ;;  %v3454_v19 = vrot.slane %v3452_v6, 5  ;;  %v4331_v21 = vrot.slane %v3634_v22, 9  ;;  %v3398_v23 = vld [vmem:[#allocation2 + $0x30] sm:$0xf]  ;;  %v3399_v45 = vld [vmem:[#allocation2 + $0x34] sm:$0x1] }
 0x1a2   : > { %4623 = vmatmul.mubr.msk.bf16.gmra.mrb[56].mxu0 %vm487_vm13, %v4310_v57  ;;  %v3433_v7 = vsel %vm5001_vm4, %v3428_v11, %v3432_v54  ;;  %v3668_v24 = vrot.slane %v3635_v9, 5  ;;  %v4332_v26 = vrot.slane %v3636_v15, 9  ;;  %v3672_v27 = vrot.slane %v3637_v20, 5  ;;  %v3400_v32 = vld [vmem:[#allocation2 + $0x38] sm:$0xf] }
 0x1a3   : > { %v4323_v46 = vcombine.low %v3419_v29, %v3433_v7  ;;  %v3442_v59 = vrot.slane %v3441_v18, 4  ;;  %v3455_v28 = vor.u32 %v3454_v19, %v3451_v13  ;;  %v3463_v31 = vshrl.u32 %v3398_v23, 16  ;;  %v3401_v8 = vld [vmem:[#allocation2 + $0x3c] sm:$0x1]  ;;  %v3640_v42 = vld [vmem:[#allocation2 + $0x28] sm:$0xe] }
 0x1a4   : > { %4629 = vmatmul.mubr.msk.bf16.vlgmr.msra.gmra.mrb[60].mxu1 %vm487_vm13, %v4764_v38  ;;  %v3446_v1 = vrot.slane %v3444_v12, 5  ;;  %v3466_v30 = vshll.u32 %v3398_v23, 16  ;;  %v5584_v33 = vrot.slane %v3514_v48, 5  ;;  %v3856_v52 = vsel %vm418_vm0, %v5554_v25, 0  ;;  %v3638_v47 = vld [vmem:[#allocation2 + $0x20] sm:$0xe] }
 0x1a5   : > { %4632 = vmatprep.mubr.msk.bf16.mxu1 %vm487_vm13, %v4765_v10  ;;  %4647 = vmatpush3.bf16.msra.mxu1 %v5510_v44  ;;  %v3456_v41 = vrot.slane %v3455_v28, 4  ;;  %v3460_v35 = vrot.slane %v3458_v14, 5  ;;  %v3465_v60 = vrot.slane %v3463_v31, 4  ;;  %v3472_v39 = vshll.u32 %v3399_v45, 16  ;;  %v3641_v44 = vld [vmem:[#allocation2 + $0x2c] sm:$0x1] }
 0x1a6   : > { %4638 = vmatprep.mubr.msk.bf16.mxu0 %vm487_vm13, %v4323_v46  ;;  %v3669_v37 = vsel %vm5427_vm2, %v4331_v21, %v3668_v24  ;;  %v3468_v16 = vrot.slane %v3466_v30, 5  ;;  %v3477_v43 = vshrl.u32 %v3400_v32, 16  ;;  %v3480_v3 = vshll.u32 %v3400_v32, 16  ;;  %v4766_v48 = vld [vmem:[#allocation2 + $0x40] ss:$8 sps:$4 sm:$0xff]  }
 0x1a7   : > { %v3447_v17 = vsel %vm5001_vm4, %v3442_v59, %v3446_v1  ;;  %v3461_v25 = vsel %vm5001_vm4, %v3456_v41, %v3460_v35  ;;  %v3673_v50 = vsel %vm5427_vm2, %v4332_v26, %v3672_v27  ;;  %v3486_v36 = vshll.u32 %v3401_v8, 16  ;;  %v3639_v55 = vld [vmem:[#allocation2 + $0x24] sm:$0x1]  ;;  %v3402_v56 = vld [vmem:[#allocation2 + $0x40] sm:$0xf] }
 0x1a8   : > { %v4324_v57 = vcombine.low %v3447_v17, %v3461_v25  ;;  %v3469_v51 = vor.u32 %v3468_v16, %v3465_v60  ;;  %v3479_v58 = vrot.slane %v3477_v43, 4  ;;  %v3482_v34 = vrot.slane %v3480_v3, 5  ;;  %v3642_v0 = vld [vmem:[#allocation2 + $0x30] sm:$0xe]  ;;  %v3643_v62 = vld [vmem:[#allocation2 + $0x34] sm:$0x1] }
 0x1a9   : > { %v4339_v53 = vcombine.low %v3669_v37, %v3673_v50  ;;  %v3474_v63 = vrot.slane %v3472_v39, 5  ;;  %v4334_v2 = vrot.slane %v3640_v42, 9  ;;  %v3680_v22 = vrot.slane %v3641_v44, 5  ;;  %v3403_v38 = vld [vmem:[#allocation2 + $0x44] sm:$0x1] }
 0x1aa   : > { %4639 = vmatmul.mubr.msk.bf16.vlgmr.msra.gmra.mrb[60].mxu0 %vm487_vm13, %v4324_v57  ;;  %v3470_v5 = vrot.slane %v3469_v51, 4  ;;  %v3483_v54 = vor.u32 %v3482_v34, %v3479_v58  ;;  %v3491_v49 = vshrl.u32 %v3402_v56, 16  ;;  %v3494_v6 = vshll.u32 %v3402_v56, 16  ;;  %v3644_v9 = vld [vmem:[#allocation2 + $0x38] sm:$0xe] }
 0x1ab   : > { %v4333_v10 = vrot.slane %v3638_v47, 9  ;;  %v3676_v11 = vrot.slane %v3639_v55, 5  ;;  %v3645_v12 = vld [vmem:[#allocation2 + $0x3c] sm:$0x1]  ;;  %v4335_v13 = vrot.slane %v3642_v0, 9  ;;  %v3684_v14 = vrot.slane %v3643_v62, 5  ;;  %4657 = vmatpush3.bf16.msra.mxu0 %v3856_v52 }
 0x1ac   : > { %4633 = vmatmul.mubr.msk.bf16.gmra.mrb[64].mxu1 %vm487_vm13, %v4766_v48  ;;  %v3475_v15 = vsel %vm5001_vm4, %v3470_v5, %v3474_v63  ;;  %v3484_v29 = vrot.slane %v3483_v54, 4  ;;  %v3488_v18 = vrot.slane %v3486_v36, 5  ;;  %v3493_v19 = vrot.slane %v3491_v49, 4  ;;  %v3648_v7 = vld [vmem:[#allocation2 + $0x48] sm:$0xe] }
 0x1ad   : > { %4648 = vmatprep.mubr.msk.bf16.mxu1 %vm487_vm13, %v4339_v53  ;;  %v3496_v20 = vrot.slane %v3494_v6, 5  ;;  %v3500_v21 = vshll.u32 %v3403_v38, 16  ;;  %v4336_v23 = vrot.slane %v3644_v9, 9  ;;  %v3681_v26 = vsel %vm5427_vm2, %v4334_v2, %v3680_v22  ;;  %v3646_v28 = vld [vmem:[#allocation2 + $0x40] sm:$0xe] }
 0x1ae   : > { %v3489_v24 = vsel %vm5001_vm4, %v3484_v29, %v3488_v18  ;;  %v3688_v27 = vrot.slane %v3645_v12, 5  ;;  %v3685_v59 = vsel %vm5427_vm2, %v4335_v13, %v3684_v14  ;;  %v3647_v32 = vld [vmem:[#allocation2 + $0x44] sm:$0x1]  ;;  %v3649_v31 = vld [vmem:[#allocation2 + $0x4c] sm:$0x1]  ;;  %v3677_v1 = vsel %vm5427_vm2, %v4333_v10, %v3676_v11 }
 0x1af   : > { %v4325_v45 = vcombine.low %v3475_v15, %v3489_v24  ;;  %v3497_v46 = vor.u32 %v3496_v20, %v3493_v19  ;;  %v3517_v8 = vsel %vm5001_vm4, %v5574_v61, %v5584_v33  ;;  %v4338_v30 = vrot.slane %v3648_v7, 9  ;;  %v4767_v33 = vld [vmem:[%s4964_s26 + $0xd8] ss:$8 sps:$4 sm:$0xff]   ;;  %v4768_v48 = vld [vmem:[%s4964_s26 + $0xe8] ss:$8 sps:$4 sm:$0xff]  }
 0x1b0   : > { %v4340_v52 = vcombine.low %v3677_v1, %v3681_v26  ;;  %v3502_v35 = vrot.slane %v3500_v21, 5  ;;  %v3689_v60 = vsel %vm5427_vm2, %v4336_v23, %v3688_v27  ;;  %v4337_v42 = vrot.slane %v3646_v28, 9  ;;  %v4770_v17 = vld [vmem:[%s4964_s26 + $0x108] ss:$8 sps:$4 sm:$0xff]   ;;  %s4380_s26 = sshll.u32 %s4915_s17, 10  ;;  %s5791_s17 = scalar_lea.sflag [#allocation5], %s350_s25 }
 0x1b1   : > { %4642 = vmatprep.mubr.msk.bf16.mxu0 %vm487_vm13, %v4325_v45  ;;  %v3498_v41 = vrot.slane %v3497_v46, 4  ;;  %v4341_v39 = vcombine.low %v3685_v59, %v3689_v60  ;;  %v3692_v37 = vrot.slane %v3647_v32, 5  ;;  %v3696_v16 = vrot.slane %v3649_v31, 5  ;;  %s5779_s20 = scalar_lea.hbm %s5842_s10, %s4380_s26 }
 0x1b3   : > { %v3503_v61 = vsel %vm5001_vm4, %v3498_v41, %v3502_v35  ;;  %v3693_v3 = vsel %vm5427_vm2, %v4337_v42, %v3692_v37  ;;  %v3697_v47 = vsel %vm5427_vm2, %v4338_v30, %v3696_v16 }
 0x1b4   : > { %4649 = vmatmul.mubr.msk.bf16.vlgmr.msra.gmra.mrb[68].mxu1 %vm487_vm13, %v4340_v52  ;;  %v4326_v43 = vcombine.low %v3503_v61, %v3517_v8  ;;  %v4342_v44 = vcombine.low %v3693_v3, %v3697_v47 }
 0x1b5   : > { %4652 = vmatprep.mubr.msk.bf16.mxu1 %vm487_vm13, %v4341_v39 }
 0x1b6   : > { %4643 = vmatmul.mubr.msk.bf16.gmra.mrb[64].mxu0 %vm487_vm13, %v4326_v43 }
 0x1b7   : > { %4658 = vmatprep.mubr.msk.bf16.mxu0 %vm405_vm1, %v4767_v33 }
 0x1bc   : > { %4653 = vmatmul.mubr.msk.bf16.gmra.mrb[72].mxu1 %vm487_vm13, %v4342_v44 }
 0x1be   : > { %4659 = vmatmul.mubr.msk.bf16.vlgmr.msra.gmra.mrb[68].mxu0 %vm405_vm1, %v4768_v48 }
 0x1bf   : > { %4662 = vmatprep.mubr.msk.bf16.mxu0 %vm405_vm1, %v4769_v40 }
 0x1c6   : > { %4663 = vmatmul.mubr.msk.bf16.gmra.mrb[72].mxu0 %vm405_vm1, %v4770_v17 }
 0x236   : > { %v4570_v25 = vpop.f32.mrb[36].mxu1 }
 0x237   : > { %2268 = vst.msk [vmem:[#allocation3 + $0x10] sm:$0xff] %vm487_vm13, %v4570_v25  ;;  %v2235_v50 = vpop.f32.mrb[37].mxu1 }
 0x238   : > { %2266 = vst.msk [vmem:[#allocation3] sm:$0xff] %vm487_vm13, %v2235_v50  ;;  %v4571_v4 = vpop.f32.mrb[38].mxu1 }
 0x239   : > { %2269 = vst.msk [vmem:[#allocation3 + $0x18] sm:$0xff] %vm487_vm13, %v4571_v4  ;;  %v2238_v36 = vpop.f32.mrb[39].mxu1 }
 0x23a   : > { %2267 = vst.msk [vmem:[#allocation3 + $0x8] sm:$0xff] %vm487_vm13, %v2238_v36 }
 0x23e   : > { %v2496_v58 = vld [vmem:[#allocation3 + $0x10] sm:$0xff] }
 0x23f   : > { %v2494_v53 = vld [vmem:[#allocation3] sm:$0xff] }
 0x240   : > { %v2497_v22 = vld [vmem:[#allocation3 + $0x18] sm:$0xff] }
 0x241   : > { %v2495_v54 = vld [vmem:[#allocation3 + $0x8] sm:$0xff] }
 0x243   : > { %v4574_v55 = vpop.f32.mrb[40].mxu1 }
 0x244   : > { %2272 = vst.msk [vmem:[#allocation3 + $0x30] sm:$0xff] %vm487_vm13, %v4574_v55  ;;  %v2251_v56 = vpop.f32.mrb[41].mxu1 }
 0x245   : > { %2270 = vst.msk [vmem:[#allocation3 + $0x20] sm:$0xff] %vm487_vm13, %v2251_v56  ;;  %v4575_v57 = vpop.f32.mrb[42].mxu1 }
 0x246   : > { %2273 = vst.msk [vmem:[#allocation3 + $0x38] sm:$0xff] %vm487_vm13, %v4575_v57  ;;  %v2254_v34 = vpop.f32.mrb[43].mxu1 }
 0x247   : > { %2271 = vst.msk [vmem:[#allocation3 + $0x28] sm:$0xff] %vm487_vm13, %v2254_v34 }
 0x248   : > { %v4580_v51 = vpop.f32.mrb[36].mxu0 }
 0x249   : > { %v2504_v0 = vadd.f32 %v4580_v51, %v2496_v58  ;;  %v2463_v62 = vpop.f32.mrb[37].mxu0 }
 0x24a   : > { %v2502_v63 = vadd.f32 %v2494_v53, %v2463_v62  ;;  %v4581_v2 = vpop.f32.mrb[38].mxu0 }
 0x24b   : > { %2512 = vst.msk [vmem:[#allocation3 + $0x10] sm:$0xff] %vm487_vm13, %v2504_v0  ;;  %v2505_v38 = vadd.f32 %v4581_v2, %v2497_v22  ;;  %v2466_v5 = vpop.f32.mrb[39].mxu0  ;;  %v4590_v6 = vpop.f32.mrb[44].mxu1  ;;  %v2500_v23 = vld [vmem:[#allocation3 + $0x30] sm:$0xff] }
 0x24c   : > { %2510 = vst.msk [vmem:[#allocation3] sm:$0xff] %vm487_vm13, %v2502_v63  ;;  %v2503_v49 = vadd.f32 %v2495_v54, %v2466_v5  ;;  %v2646_v9 = vpop.f32.mrb[45].mxu1  ;;  %v2498_v45 = vld [vmem:[#allocation3 + $0x20] sm:$0xff] }
 0x24d   : > { %2513 = vst.msk [vmem:[#allocation3 + $0x18] sm:$0xff] %vm487_vm13, %v2505_v38  ;;  %v4591_v10 = vpop.f32.mrb[46].mxu1  ;;  %v2501_v32 = vld [vmem:[#allocation3 + $0x38] sm:$0xff] }
 0x24e   : > { %2511 = vst.msk [vmem:[#allocation3 + $0x8] sm:$0xff] %vm487_vm13, %v2503_v49  ;;  %v2649_v11 = vpop.f32.mrb[47].mxu1  ;;  %v2499_v30 = vld [vmem:[#allocation3 + $0x28] sm:$0xff] }
 0x252   : > { %v2679_v12 = vld [vmem:[#allocation3 + $0x10] sm:$0xff] }
 0x253   : > { %v2687_v13 = vadd.f32 %v4590_v6, %v2679_v12  ;;  %v2677_v14 = vld [vmem:[#allocation3] sm:$0xff]  ;;  %v4594_v20 = vpop.f32.mrb[48].mxu1 }
 0x254   : > { %v2685_v15 = vadd.f32 %v2677_v14, %v2646_v9  ;;  %v2680_v29 = vld [vmem:[#allocation3 + $0x18] sm:$0xff]  ;;  %v2662_v24 = vpop.f32.mrb[49].mxu1 }
 0x255   : > { %2695 = vst.msk [vmem:[#allocation3 + $0x10] sm:$0xff] %vm487_vm13, %v2687_v13  ;;  %v2688_v18 = vadd.f32 %v4591_v10, %v2680_v29  ;;  %v2678_v19 = vld [vmem:[#allocation3 + $0x8] sm:$0xff]  ;;  %v4584_v21 = vpop.f32.mrb[40].mxu0  ;;  %v4595_v46 = vpop.f32.mrb[50].mxu1 }
 0x256   : > { %2693 = vst.msk [vmem:[#allocation3] sm:$0xff] %vm487_vm13, %v2685_v15  ;;  %v2686_v7 = vadd.f32 %v2678_v19, %v2649_v11  ;;  %v2508_v26 = vadd.f32 %v4584_v21, %v2500_v23  ;;  %v2479_v27 = vpop.f32.mrb[41].mxu0  ;;  %v2665_v31 = vpop.f32.mrb[51].mxu1 }
 0x257   : > { %2696 = vst.msk [vmem:[#allocation3 + $0x18] sm:$0xff] %vm487_vm13, %v2688_v18  ;;  %v2506_v59 = vadd.f32 %v2498_v45, %v2479_v27  ;;  %v4585_v28 = vpop.f32.mrb[42].mxu0 }
 0x258   : > { %2694 = vst.msk [vmem:[#allocation3 + $0x8] sm:$0xff] %vm487_vm13, %v2686_v7  ;;  %2516 = vst.msk [vmem:[#allocation3 + $0x30] sm:$0xff] %vm487_vm13, %v2508_v26  ;;  %v2509_v1 = vadd.f32 %v4585_v28, %v2501_v32  ;;  %v2482_v8 = vpop.f32.mrb[43].mxu0 }
 0x259   : > { %2514 = vst.msk [vmem:[#allocation3 + $0x20] sm:$0xff] %vm487_vm13, %v2506_v59  ;;  %v2507_v52 = vadd.f32 %v2499_v30, %v2482_v8 }
 0x25a   : > { %2517 = vst.msk [vmem:[#allocation3 + $0x38] sm:$0xff] %vm487_vm13, %v2509_v1 }
 0x25b   : > { %2515 = vst.msk [vmem:[#allocation3 + $0x28] sm:$0xff] %vm487_vm13, %v2507_v52 }
 0x25c   : > { %v2811_v41 = vld [vmem:[#allocation3 + $0x10] sm:$0xff] }
 0x25d   : > { %v2809_v35 = vld [vmem:[#allocation3] sm:$0xff]  ;;  %v4600_v60 = vpop.f32.mrb[44].mxu0 }
 0x25e   : > { %v2812_v39 = vld [vmem:[#allocation3 + $0x18] sm:$0xff]  ;;  %v2819_v42 = vadd.f32 %v4600_v60, %v2811_v41  ;;  %v2778_v37 = vpop.f32.mrb[45].mxu0 }
 0x25f   : > { %v2810_v16 = vld [vmem:[#allocation3 + $0x8] sm:$0xff]  ;;  %v2683_v61 = vld [vmem:[#allocation3 + $0x30] sm:$0xff]  ;;  %v2817_v33 = vadd.f32 %v2809_v35, %v2778_v37  ;;  %v4601_v43 = vpop.f32.mrb[46].mxu0 }
 0x260   : > { %v2691_v3 = vadd.f32 %v4594_v20, %v2683_v61  ;;  %v2681_v47 = vld [vmem:[#allocation3 + $0x20] sm:$0xff]  ;;  %2827 = vst.msk [vmem:[#allocation3 + $0x10] sm:$0xff] %vm487_vm13, %v2819_v42  ;;  %v2820_v44 = vadd.f32 %v4601_v43, %v2812_v39  ;;  %v2781_v48 = vpop.f32.mrb[47].mxu0 }
 0x261   : > { %v2689_v40 = vadd.f32 %v2681_v47, %v2662_v24  ;;  %v2684_v17 = vld [vmem:[#allocation3 + $0x38] sm:$0xff]  ;;  %2825 = vst.msk [vmem:[#allocation3] sm:$0xff] %vm487_vm13, %v2817_v33  ;;  %v2818_v25 = vadd.f32 %v2810_v16, %v2781_v48 }
 0x262   : > { %2699 = vst.msk [vmem:[#allocation3 + $0x30] sm:$0xff] %vm487_vm13, %v2691_v3  ;;  %v2692_v50 = vadd.f32 %v4595_v46, %v2684_v17  ;;  %v2682_v4 = vld [vmem:[#allocation3 + $0x28] sm:$0xff]  ;;  %2828 = vst.msk [vmem:[#allocation3 + $0x18] sm:$0xff] %vm487_vm13, %v2820_v44  ;;  %v4610_v55 = vpop.f32.mrb[52].mxu1 }
 0x263   : > { %2697 = vst.msk [vmem:[#allocation3 + $0x20] sm:$0xff] %vm487_vm13, %v2689_v40  ;;  %v2690_v36 = vadd.f32 %v2682_v4, %v2665_v31  ;;  %2826 = vst.msk [vmem:[#allocation3 + $0x8] sm:$0xff] %vm487_vm13, %v2818_v25  ;;  %v3022_v56 = vpop.f32.mrb[53].mxu1 }
 0x264   : > { %2700 = vst.msk [vmem:[#allocation3 + $0x38] sm:$0xff] %vm487_vm13, %v2692_v50  ;;  %v4611_v51 = vpop.f32.mrb[54].mxu1 }
 0x265   : > { %2698 = vst.msk [vmem:[#allocation3 + $0x28] sm:$0xff] %vm487_vm13, %v2690_v36  ;;  %v4604_v57 = vpop.f32.mrb[48].mxu0  ;;  %v3025_v34 = vpop.f32.mrb[55].mxu1 }
 0x266   : > { %v2794_v58 = vpop.f32.mrb[49].mxu0 }
 0x267   : > { %v3055_v0 = vld [vmem:[#allocation3 + $0x10] sm:$0xff]  ;;  %v4605_v62 = vpop.f32.mrb[50].mxu0 }
 0x268   : > { %v3063_v53 = vadd.f32 %v4610_v55, %v3055_v0  ;;  %v3053_v63 = vld [vmem:[#allocation3] sm:$0xff]  ;;  %v2797_v2 = vpop.f32.mrb[51].mxu0 }
 0x269   : > { %v2815_v22 = vld [vmem:[#allocation3 + $0x30] sm:$0xff]  ;;  %v3061_v38 = vadd.f32 %v3053_v63, %v3022_v56  ;;  %v3056_v5 = vld [vmem:[#allocation3 + $0x18] sm:$0xff] }
 0x26a   : > { %3071 = vst.msk [vmem:[#allocation3 + $0x10] sm:$0xff] %vm487_vm13, %v3063_v53  ;;  %v2823_v54 = vadd.f32 %v4604_v57, %v2815_v22  ;;  %v2813_v49 = vld [vmem:[#allocation3 + $0x20] sm:$0xff]  ;;  %v3064_v6 = vadd.f32 %v4611_v51, %v3056_v5  ;;  %v3054_v9 = vld [vmem:[#allocation3 + $0x8] sm:$0xff] }
 0x26b   : > { %3069 = vst.msk [vmem:[#allocation3] sm:$0xff] %vm487_vm13, %v3061_v38  ;;  %v2821_v10 = vadd.f32 %v2813_v49, %v2794_v58  ;;  %v2816_v11 = vld [vmem:[#allocation3 + $0x38] sm:$0xff]  ;;  %v3062_v12 = vadd.f32 %v3054_v9, %v3025_v34 }
 0x26c   : > { %2831 = vst.msk [vmem:[#allocation3 + $0x30] sm:$0xff] %vm487_vm13, %v2823_v54  ;;  %3072 = vst.msk [vmem:[#allocation3 + $0x18] sm:$0xff] %vm487_vm13, %v3064_v6  ;;  %v2824_v13 = vadd.f32 %v4605_v62, %v2816_v11  ;;  %v2814_v14 = vld [vmem:[#allocation3 + $0x28] sm:$0xff] }
 0x26d   : > { %2829 = vst.msk [vmem:[#allocation3 + $0x20] sm:$0xff] %vm487_vm13, %v2821_v10  ;;  %3070 = vst.msk [vmem:[#allocation3 + $0x8] sm:$0xff] %vm487_vm13, %v3062_v12  ;;  %v2822_v15 = vadd.f32 %v2814_v14, %v2797_v2  ;;  %v4620_v29 = vpop.f32.mrb[52].mxu0 }
 0x26e   : > { %2832 = vst.msk [vmem:[#allocation3 + $0x38] sm:$0xff] %vm487_vm13, %v2824_v13  ;;  %v3202_v18 = vpop.f32.mrb[53].mxu0 }
 0x26f   : > { %2830 = vst.msk [vmem:[#allocation3 + $0x28] sm:$0xff] %vm487_vm13, %v2822_v15  ;;  %v4621_v19 = vpop.f32.mrb[54].mxu0  ;;  %v4614_v21 = vpop.f32.mrb[56].mxu1 }
 0x270   : > { %v3205_v20 = vpop.f32.mrb[55].mxu0  ;;  %v3038_v7 = vpop.f32.mrb[57].mxu1 }
 0x271   : > { %v3235_v23 = vld [vmem:[#allocation3 + $0x10] sm:$0xff]  ;;  %v4615_v45 = vpop.f32.mrb[58].mxu1 }
 0x272   : > { %v3243_v24 = vadd.f32 %v4620_v29, %v3235_v23  ;;  %v3233_v26 = vld [vmem:[#allocation3] sm:$0xff]  ;;  %v3041_v31 = vpop.f32.mrb[59].mxu1 }
 0x273   : > { %v3059_v27 = vld [vmem:[#allocation3 + $0x30] sm:$0xff]  ;;  %v3241_v46 = vadd.f32 %v3233_v26, %v3202_v18  ;;  %v3236_v59 = vld [vmem:[#allocation3 + $0x18] sm:$0xff] }
 0x274   : > { %v3067_v28 = vadd.f32 %v4614_v21, %v3059_v27  ;;  %v3057_v32 = vld [vmem:[#allocation3 + $0x20] sm:$0xff]  ;;  %3251 = vst.msk [vmem:[#allocation3 + $0x10] sm:$0xff] %vm487_vm13, %v3243_v24  ;;  %v3244_v1 = vadd.f32 %v4621_v19, %v3236_v59  ;;  %v3234_v8 = vld [vmem:[#allocation3 + $0x8] sm:$0xff] }
 0x275   : > { %v3065_v30 = vadd.f32 %v3057_v32, %v3038_v7  ;;  %v3060_v52 = vld [vmem:[#allocation3 + $0x38] sm:$0xff]  ;;  %3249 = vst.msk [vmem:[#allocation3] sm:$0xff] %vm487_vm13, %v3241_v46  ;;  %v3242_v41 = vadd.f32 %v3234_v8, %v3205_v20  ;;  %v4624_v35 = vpop.f32.mrb[56].mxu0 }
 0x276   : > { %3075 = vst.msk [vmem:[#allocation3 + $0x30] sm:$0xff] %vm487_vm13, %v3067_v28  ;;  %v3068_v60 = vadd.f32 %v4615_v45, %v3060_v52  ;;  %v3058_v39 = vld [vmem:[#allocation3 + $0x28] sm:$0xff]  ;;  %3252 = vst.msk [vmem:[#allocation3 + $0x18] sm:$0xff] %vm487_vm13, %v3244_v1  ;;  %v3218_v42 = vpop.f32.mrb[57].mxu0 }
 0x277   : > { %3073 = vst.msk [vmem:[#allocation3 + $0x20] sm:$0xff] %vm487_vm13, %v3065_v30  ;;  %v3066_v37 = vadd.f32 %v3058_v39, %v3041_v31  ;;  %3250 = vst.msk [vmem:[#allocation3 + $0x8] sm:$0xff] %vm487_vm13, %v3242_v41  ;;  %v4625_v16 = vpop.f32.mrb[58].mxu0  ;;  %v4630_v33 = vpop.f32.mrb[60].mxu1 }
 0x278   : > { %3076 = vst.msk [vmem:[#allocation3 + $0x38] sm:$0xff] %vm487_vm13, %v3068_v60  ;;  %v3221_v61 = vpop.f32.mrb[59].mxu0  ;;  %v3335_v43 = vpop.f32.mrb[61].mxu1 }
 0x279   : > { %3074 = vst.msk [vmem:[#allocation3 + $0x28] sm:$0xff] %vm487_vm13, %v3066_v37  ;;  %v4631_v47 = vpop.f32.mrb[62].mxu1 }
 0x27a   : > { %v3338_v40 = vpop.f32.mrb[63].mxu1 }
 0x27b   : > { %v3368_v3 = vld [vmem:[#allocation3 + $0x10] sm:$0xff] }
 0x27c   : > { %v3376_v44 = vadd.f32 %v4630_v33, %v3368_v3  ;;  %v3366_v48 = vld [vmem:[#allocation3] sm:$0xff] }
 0x27d   : > { %v3239_v17 = vld [vmem:[#allocation3 + $0x30] sm:$0xff]  ;;  %v3374_v25 = vadd.f32 %v3366_v48, %v3335_v43  ;;  %v3369_v50 = vld [vmem:[#allocation3 + $0x18] sm:$0xff]  ;;  %v4640_v62 = vpop.f32.mrb[60].mxu0 }
 0x27e   : > { %3384 = vst.msk [vmem:[#allocation3 + $0x10] sm:$0xff] %vm487_vm13, %v3376_v44  ;;  %v3247_v4 = vadd.f32 %v4624_v35, %v3239_v17  ;;  %v3237_v36 = vld [vmem:[#allocation3 + $0x20] sm:$0xff]  ;;  %v3377_v55 = vadd.f32 %v4631_v47, %v3369_v50  ;;  %v3367_v56 = vld [vmem:[#allocation3 + $0x8] sm:$0xff]  ;;  %v3579_v2 = vpop.f32.mrb[61].mxu0  ;;  %v5700_v44 = vld [vmem:[%s5840_s8] ss:$0 sm:$0xff] }
 0x27f   : > { %3382 = vst.msk [vmem:[#allocation3] sm:$0xff] %vm487_vm13, %v3374_v25  ;;  %v3245_v57 = vadd.f32 %v3237_v36, %v3218_v42  ;;  %v3240_v51 = vld [vmem:[#allocation3 + $0x38] sm:$0xff]  ;;  %v3375_v58 = vadd.f32 %v3367_v56, %v3338_v40  ;;  %v4634_v63 = vpop.f32.mrb[64].mxu1  ;;  %v4641_v38 = vpop.f32.mrb[62].mxu0  ;;  %v5712_v56 = vld [vmem:[%s5841_s9] ss:$0 sm:$0xff] }
 0x280   : > { %3255 = vst.msk [vmem:[#allocation3 + $0x30] sm:$0xff] %vm487_vm13, %v3247_v4  ;;  %3385 = vst.msk [vmem:[#allocation3 + $0x18] sm:$0xff] %vm487_vm13, %v3377_v55  ;;  %v3248_v34 = vadd.f32 %v4625_v16, %v3240_v51  ;;  %v3238_v0 = vld [vmem:[#allocation3 + $0x28] sm:$0xff]  ;;  %v3351_v22 = vpop.f32.mrb[65].mxu1  ;;  %v3582_v54 = vpop.f32.mrb[63].mxu0 }
 0x281   : > { %3253 = vst.msk [vmem:[#allocation3 + $0x20] sm:$0xff] %vm487_vm13, %v3245_v57  ;;  %3383 = vst.msk [vmem:[#allocation3 + $0x8] sm:$0xff] %vm487_vm13, %v3375_v58  ;;  %v3246_v53 = vadd.f32 %v3238_v0, %v3221_v61  ;;  %v4635_v5 = vpop.f32.mrb[66].mxu1  ;;  %v5717_v57 = vld [vmem:[%s5837_s5] ss:$0 sm:$0xff] }
 0x282   : > { %3256 = vst.msk [vmem:[#allocation3 + $0x38] sm:$0xff] %vm487_vm13, %v3248_v34  ;;  %v3354_v49 = vpop.f32.mrb[67].mxu1  ;;  %v5724_v0 = vld [vmem:[%s5838_s6] ss:$0 sm:$0xff] }
 0x283   : > { %3254 = vst.msk [vmem:[#allocation3 + $0x28] sm:$0xff] %vm487_vm13, %v3246_v53 }
 0x285   : > { %v3612_v6 = vld [vmem:[#allocation3 + $0x10] sm:$0xff] }
 0x286   : > { %v3620_v9 = vadd.f32 %v4640_v62, %v3612_v6  ;;  %v3610_v10 = vld [vmem:[#allocation3] sm:$0xff] }
 0x287   : > { %v3372_v11 = vld [vmem:[#allocation3 + $0x30] sm:$0xff]  ;;  %v3618_v12 = vadd.f32 %v3610_v10, %v3579_v2  ;;  %v3613_v13 = vld [vmem:[#allocation3 + $0x18] sm:$0xff]  ;;  %v4650_v23 = vpop.f32.mrb[68].mxu1 }
 0x288   : > { %v3380_v14 = vadd.f32 %v4634_v63, %v3372_v11  ;;  %v3370_v15 = vld [vmem:[#allocation3 + $0x20] sm:$0xff]  ;;  %3628 = vst.msk [vmem:[#allocation3 + $0x10] sm:$0xff] %vm487_vm13, %v3620_v9  ;;  %v3621_v29 = vadd.f32 %v4641_v38, %v3613_v13  ;;  %v3611_v18 = vld [vmem:[#allocation3 + $0x8] sm:$0xff]  ;;  %v3759_v26 = vpop.f32.mrb[69].mxu1 }
 0x289   : > { %v3378_v19 = vadd.f32 %v3370_v15, %v3351_v22  ;;  %v3373_v20 = vld [vmem:[#allocation3 + $0x38] sm:$0xff]  ;;  %3626 = vst.msk [vmem:[#allocation3] sm:$0xff] %vm487_vm13, %v3618_v12  ;;  %v3619_v21 = vadd.f32 %v3611_v18, %v3582_v54  ;;  %v4651_v45 = vpop.f32.mrb[70].mxu1  ;;  %v4644_v46 = vpop.f32.mrb[64].mxu0 }
 0x28a   : > { %3388 = vst.msk [vmem:[#allocation3 + $0x30] sm:$0xff] %vm487_vm13, %v3380_v14  ;;  %v3381_v7 = vadd.f32 %v4635_v5, %v3373_v20  ;;  %v3371_v24 = vld [vmem:[#allocation3 + $0x28] sm:$0xff]  ;;  %3629 = vst.msk [vmem:[#allocation3 + $0x18] sm:$0xff] %vm487_vm13, %v3621_v29  ;;  %v3762_v59 = vpop.f32.mrb[71].mxu1  ;;  %v3595_v28 = vpop.f32.mrb[65].mxu0 }
 0x28b   : > { %3386 = vst.msk [vmem:[#allocation3 + $0x20] sm:$0xff] %vm487_vm13, %v3378_v19  ;;  %v3379_v27 = vadd.f32 %v3371_v24, %v3354_v49  ;;  %3627 = vst.msk [vmem:[#allocation3 + $0x8] sm:$0xff] %vm487_vm13, %v3619_v21  ;;  %v4645_v32 = vpop.f32.mrb[66].mxu0 }
 0x28c   : > { %3389 = vst.msk [vmem:[#allocation3 + $0x38] sm:$0xff] %vm487_vm13, %v3381_v7  ;;  %v3598_v1 = vpop.f32.mrb[67].mxu0 }
 0x28d   : > { %3387 = vst.msk [vmem:[#allocation3 + $0x28] sm:$0xff] %vm487_vm13, %v3379_v27 }
 0x28f   : > { %v3792_v31 = vld [vmem:[#allocation3 + $0x10] sm:$0xff]  ;;  %v4654_v60 = vpop.f32.mrb[72].mxu1 }
 0x290   : > { %v3800_v8 = vadd.f32 %v4650_v23, %v3792_v31  ;;  %v3790_v30 = vld [vmem:[#allocation3] sm:$0xff]  ;;  %v3775_v61 = vpop.f32.mrb[73].mxu1 }
 0x291   : > { %v3616_v52 = vld [vmem:[#allocation3 + $0x30] sm:$0xff]  ;;  %v3798_v41 = vadd.f32 %v3790_v30, %v3759_v26  ;;  %v3793_v35 = vld [vmem:[#allocation3 + $0x18] sm:$0xff]  ;;  %v4655_v47 = vpop.f32.mrb[74].mxu1  ;;  %v4660_v25 = vpop.f32.mrb[68].mxu0 }
 0x292   : > { %3808 = vst.msk [vmem:[#allocation3 + $0x10] sm:$0xff] %vm487_vm13, %v3800_v8  ;;  %v3624_v39 = vadd.f32 %v4644_v46, %v3616_v52  ;;  %v3614_v42 = vld [vmem:[#allocation3 + $0x20] sm:$0xff]  ;;  %v3801_v37 = vadd.f32 %v4651_v45, %v3793_v35  ;;  %v3791_v16 = vld [vmem:[#allocation3 + $0x8] sm:$0xff]  ;;  %v3778_v17 = vpop.f32.mrb[75].mxu1  ;;  %v3892_v4 = vpop.f32.mrb[69].mxu0  ;;  %v3932_v36 = vmul.f32 %v4660_v25, %v5700_v44 }
 0x293   : > { %3806 = vst.msk [vmem:[#allocation3] sm:$0xff] %vm487_vm13, %v3798_v41  ;;  %v3622_v33 = vadd.f32 %v3614_v42, %v3595_v28  ;;  %v3617_v43 = vld [vmem:[#allocation3 + $0x38] sm:$0xff]  ;;  %v3799_v3 = vadd.f32 %v3791_v16, %v3762_v59  ;;  %v4661_v55 = vpop.f32.mrb[70].mxu0  ;;  %v3930_v51 = vmul.f32 %v5700_v44, %v3892_v4 }
 0x294   : > { %3632 = vst.msk [vmem:[#allocation3 + $0x30] sm:$0xff] %vm487_vm13, %v3624_v39  ;;  %3809 = vst.msk [vmem:[#allocation3 + $0x18] sm:$0xff] %vm487_vm13, %v3801_v37  ;;  %v3625_v48 = vadd.f32 %v4645_v32, %v3617_v43  ;;  %v3615_v40 = vld [vmem:[#allocation3 + $0x28] sm:$0xff]  ;;  %v3895_v58 = vpop.f32.mrb[71].mxu0  ;;  %v3947_v62 = vadd.f32 %v5712_v56, %v3932_v36  ;;  %v3933_v2 = vmul.f32 %v4661_v55, %v5700_v44 }
 0x295   : > { %3630 = vst.msk [vmem:[#allocation3 + $0x20] sm:$0xff] %vm487_vm13, %v3622_v33  ;;  %3807 = vst.msk [vmem:[#allocation3 + $0x8] sm:$0xff] %vm487_vm13, %v3799_v3  ;;  %v3623_v50 = vadd.f32 %v3615_v40, %v3598_v1  ;;  %v3945_v38 = vadd.f32 %v5712_v56, %v3930_v51  ;;  %v3931_v49 = vmul.f32 %v5700_v44, %v3895_v58 }
 0x296   : > { %3633 = vst.msk [vmem:[#allocation3 + $0x38] sm:$0xff] %vm487_vm13, %v3625_v48  ;;  %v3948_v7 = vadd.f32 %v5712_v56, %v3933_v2 }
 0x297   : > { %3631 = vst.msk [vmem:[#allocation3 + $0x28] sm:$0xff] %vm487_vm13, %v3623_v50  ;;  %v3946_v46 = vadd.f32 %v5712_v56, %v3931_v49 }
 0x299   : > { %v3955_v34 = vld [vmem:[#allocation3 + $0x10] sm:$0xff]  ;;  %v4664_v13 = vpop.f32.mrb[72].mxu0 }
 0x29a   : > { %v3970_v53 = vmul.f32 %v5717_v57, %v3955_v34  ;;  %v3953_v63 = vld [vmem:[#allocation3] sm:$0xff]  ;;  %v3908_v19 = vpop.f32.mrb[73].mxu0  ;;  %v3936_v52 = vmul.f32 %v4664_v13, %v5700_v44 }
 0x29b   : > { %v3796_v22 = vld [vmem:[#allocation3 + $0x30] sm:$0xff]  ;;  %v3968_v5 = vmul.f32 %v5717_v57, %v3953_v63  ;;  %v3956_v54 = vld [vmem:[#allocation3 + $0x18] sm:$0xff]  ;;  %v4665_v26 = vpop.f32.mrb[74].mxu0  ;;  %v3934_v35 = vmul.f32 %v5700_v44, %v3908_v19 }
 0x29c   : > { %v3804_v6 = vadd.f32 %v4654_v60, %v3796_v22  ;;  %v3794_v9 = vld [vmem:[#allocation3 + $0x20] sm:$0xff]  ;;  %v3985_v10 = vadd.f32 %v5724_v0, %v3970_v53  ;;  %v3971_v11 = vmul.f32 %v5717_v57, %v3956_v54  ;;  %v3954_v12 = vld [vmem:[#allocation3 + $0x8] sm:$0xff]  ;;  %v3911_v28 = vpop.f32.mrb[75].mxu0  ;;  %v3951_v39 = vadd.f32 %v5712_v56, %v3936_v52 }
 0x29d   : > { %v3802_v14 = vadd.f32 %v3794_v9, %v3775_v61  ;;  %v3797_v15 = vld [vmem:[#allocation3 + $0x38] sm:$0xff]  ;;  %v3983_v29 = vadd.f32 %v5724_v0, %v3968_v5  ;;  %v3969_v18 = vmul.f32 %v5717_v57, %v3954_v12  ;;  %v3937_v16 = vmul.f32 %v4665_v26, %v5700_v44 }
 0x29e   : > { %3812 = vst.msk [vmem:[#allocation3 + $0x30] sm:$0xff] %vm487_vm13, %v3804_v6  ;;  %v3805_v20 = vadd.f32 %v4655_v47, %v3797_v15  ;;  %v3795_v21 = vld [vmem:[#allocation3 + $0x28] sm:$0xff]  ;;  %v3993_v23 = vadd.f32 %v3985_v10, %v3947_v62  ;;  %v3986_v24 = vadd.f32 %v5724_v0, %v3971_v11  ;;  %v3949_v61 = vadd.f32 %v5712_v56, %v3934_v35 }
 0x29f   : > { %3810 = vst.msk [vmem:[#allocation3 + $0x20] sm:$0xff] %vm487_vm13, %v3802_v14  ;;  %v3803_v27 = vadd.f32 %v3795_v21, %v3778_v17  ;;  %v3991_v45 = vadd.f32 %v3983_v29, %v3945_v38  ;;  %v3984_v59 = vadd.f32 %v5724_v0, %v3969_v18  ;;  %v3935_v3 = vmul.f32 %v5700_v44, %v3911_v28 }
 0x2a0   : > { %3813 = vst.msk [vmem:[#allocation3 + $0x38] sm:$0xff] %vm487_vm13, %v3805_v20  ;;  %v4001_v32 = vmax.f32 %v3993_v23, 0.0  ;;  %v3994_v31 = vadd.f32 %v3986_v24, %v3948_v7  ;;  %v3952_v4 = vadd.f32 %v5712_v56, %v3937_v16 }
 0x2a1   : > { %3811 = vst.msk [vmem:[#allocation3 + $0x28] sm:$0xff] %vm487_vm13, %v3803_v27  ;;  %v3999_v1 = vmax.f32 %v3991_v45, 0.0  ;;  %v3992_v8 = vadd.f32 %v3984_v59, %v3946_v46  ;;  %v3950_v44 = vadd.f32 %v5712_v56, %v3935_v3 }
 0x2a2   : > { %4009 = vst.msk [vmem:[%s5746_s30 + $0x10] sm:$0xff] %vm487_vm13, %v4001_v32  ;;  %v4002_v30 = vmax.f32 %v3994_v31, 0.0 }
 0x2a3   : > { %4007 = vst.msk [vmem:[%s5746_s30] sm:$0xff] %vm487_vm13, %v3999_v1  ;;  %v4000_v41 = vmax.f32 %v3992_v8, 0.0 }
 0x2a4   : > { %4010 = vst.msk [vmem:[%s5746_s30 + $0x18] sm:$0xff] %vm487_vm13, %v4002_v30 }
 0x2a5   : > { %4008 = vst.msk [vmem:[%s5746_s30 + $0x8] sm:$0xff] %vm487_vm13, %v4000_v41  ;;  %v3959_v60 = vld [vmem:[#allocation3 + $0x30] sm:$0xff] }
 0x2a6   : > { %v3974_v42 = vmul.f32 %v5717_v57, %v3959_v60  ;;  %v3957_v37 = vld [vmem:[#allocation3 + $0x20] sm:$0xff] }
 0x2a7   : > { %v3972_v33 = vmul.f32 %v5717_v57, %v3957_v37  ;;  %v3960_v43 = vld [vmem:[#allocation3 + $0x38] sm:$0xff] }
 0x2a8   : > { %v3989_v47 = vadd.f32 %v5724_v0, %v3974_v42  ;;  %v3975_v48 = vmul.f32 %v5717_v57, %v3960_v43  ;;  %v3958_v40 = vld [vmem:[#allocation3 + $0x28] sm:$0xff] }
 0x2a9   : > { %v3987_v17 = vadd.f32 %v5724_v0, %v3972_v33  ;;  %v3973_v25 = vmul.f32 %v5717_v57, %v3958_v40 }
 0x2aa   : > { %v3997_v50 = vadd.f32 %v3989_v47, %v3951_v39  ;;  %v3990_v36 = vadd.f32 %v5724_v0, %v3975_v48 }
 0x2ab   : > { %v3995_v55 = vadd.f32 %v3987_v17, %v3949_v61  ;;  %v3988_v51 = vadd.f32 %v5724_v0, %v3973_v25 }
 0x2ac   : > { %v4005_v58 = vmax.f32 %v3997_v50, 0.0  ;;  %v3998_v34 = vadd.f32 %v3990_v36, %v3952_v4 }
 0x2ad   : > { %v4003_v57 = vmax.f32 %v3995_v55, 0.0  ;;  %v3996_v62 = vadd.f32 %v3988_v51, %v3950_v44 }
 0x2ae   : > { %4013 = vst.msk [vmem:[%s5746_s30 + $0x30] sm:$0xff] %vm487_vm13, %v4005_v58  ;;  %v4006_v53 = vmax.f32 %v3998_v34, 0.0 }
 0x2af   : > { %4011 = vst.msk [vmem:[%s5746_s30 + $0x20] sm:$0xff] %vm487_vm13, %v4003_v57  ;;  %v4004_v56 = vmax.f32 %v3996_v62, 0.0 }
 0x2b0   : > { %4014 = vst.msk [vmem:[%s5746_s30 + $0x38] sm:$0xff] %vm487_vm13, %v4006_v53 }
 0x2b1   : > { %4012 = vst.msk [vmem:[%s5746_s30 + $0x28] sm:$0xff] %vm487_vm13, %v4004_v56 }
 0x2b2   : > { %4784 = shalt.err (!%p4781_p3)
}
 0x2b3   : > { %s4785_s25 = scalar_lea.hbm %s5779_s20, 1024  ;;  %s4789_s12 = scalar_lea.hbm %s5842_s10, 2048 }
 0x2b4   : > { %p4786_p4 = scmp.ne.s32.totalorder %s5779_s20, %s4785_s25  ;;  %p4790_p9 = scmp.lt.u32.totalorder %s5779_s20, %s5842_s10 }
 0x2b5   : > { %p4791_p10 = scmp.lt.u32.totalorder %s4789_s12, %s4785_s25  ;;  %p4793_p12 = scmp.lt.u32.totalorder %s4785_s25, %s5779_s20 }
 0x2b6   : > { %p4787_p7 = pnand %p4786_p4, %p4932_p5 }
 0x2b7   : > { %p4792_p11 = por %p4791_p10, %p4790_p9 }
 0x2b8   : > { %p4788_p8 = pneg %p4787_p7 }
 0x2b9   : > { %p4794_p13 = por %p4793_p12, %p4792_p11 }
 0x2bb   : > { %p4795_p0 = pnand %p4794_p13, %p4788_p8 }
 0x2bd   : > { %4798 = shalt.err (!%p4795_p0)
}
 0x2be   : > { %s4837_s21 = smov 128   ;;  %s4838_s28 = smov 8  }
 0x2bf   : > { %4689 = dma.vmem_to_hbm [thread:$0]  (%p4932_p5), %s5781_s11, 1024, %s5779_s20, %s5791_s17, %s4837_s21, %s4837_s21, %s4838_s28  }
 0x2c0 PF: > { %p4695_p1 = scmp.ge.s32.totalorder %s4833_s16, 2  ;;  %s4044_s29 = sand.u32 1, %s4821_s13  }
 0x2c1   : > { %s4045_s25 = scalar_lea.sflag [#allocation5], %s4044_s29 }
 0x2c2   : > { %p4692_p2 = pnand %p4695_p1, %p4936_p6 }
 0x2c4   : > { %4816 = dma.done.wait (!%p4692_p2), %s4045_s25, 1024  }
 0x2c5   : > { %4818 = vsyncadd (!%p4692_p2), %s4045_s25, 4294966272  ;;  %p20_p3 = scmp.ge.s32.totalorder %s4919_s19, 4   ;;  %s5855_s13 = smov %s4825_s14 }
 0x2c6   : > { %s5856_s14 = smov %s4829_s15  ;;  %s5857_s15 = smov %s4930_s22 }
 0x2c7   : > { %s5858_s16 = smov %s4919_s19  ;;  %22 = sbr.rel (!%p20_p3) target bundleno = 3 (0x3), region = 103 }
 0x2ce   :  { %4050 = vsyncpa [#allocation5], 1 }
 0x2cf   :  { %4052 = vsyncpa [#allocation5 + $0x1], 1 }

</bundles_post_ra>
